<compile_context>
chip_gen: v5e
topology: v5e:2x2
jax: 0.10.0
libtpu: 0.0.40
codegen_flags: <defaults>
</compile_context>

<pallas_src>
import jax
import jax.numpy as jnp
import numpy as np
from jax.experimental import pallas as pl
from jax.experimental.pallas import tpu as pltpu

tgt_max_pad = 32


# ----------------------------------------------------------------------------
# Pallas kernel: full teacher-forced decode.
# ----------------------------------------------------------------------------
def _decoder_kernel(stop_ref,       # (1,) int32 SMEM   early-stop step
                    tok_col_ref,    # (T*Bp, 1) int32   teacher tokens, t-major
                    embed_wih_ref,  # (Vp, 4H) f32      embed @ w_ih.T (padded)
                    w_hh_ref,       # (H, 4H) f32       lstm.weight_hh_l0.T
                    b_ref,          # (1, 4H) f32       b_ih + b_hh
                    w_fc_ref,       # (H, Vp) f32       fc.weight.T (padded)
                    b_fc_ref,       # (1, Vp) f32       fc.bias (padded)
                    h0_ref,         # (Bp, H) f32       enc_h (padded rows)
                    c0_ref,         # (Bp, H) f32       enc_c (padded rows)
                    out_ref,        # (T*Bp, Vp) f32    logits, t-major rows
                    gx_ref,         # scratch (T*Bp, 4H) f32
                    h_all_ref):     # scratch (T*Bp, H) f32
    TBp, Vp = out_ref.shape
    Bp, H = h0_ref.shape
    T = TBp // Bp

    # ---- 1) Input-gate pre-activation for ALL steps in one MXU call --------
    # one-hot(T*Bp, Vp) @ (Vp, 4H) == embed[tok] @ W_ih.T  (bias folded in).
    # Result goes straight to VMEM scratch so it is not live across the
    # unrolled recurrence.
    ids = jax.lax.broadcasted_iota(jnp.int32, (TBp, Vp), 1)
    onehot = (ids == tok_col_ref[...]).astype(jnp.float32)           # (TBp,Vp)
    gx_ref[...] = jnp.dot(onehot, embed_wih_ref[...],
                          preferred_element_type=jnp.float32) + b_ref[...]

    # ---- 2) Serial LSTM recurrence (fully unrolled, 8-row aligned slices) --
    # Only the tiny (Bp,H) @ (H,4H) matmul sits on the step-to-step path.
    w_hh = w_hh_ref[...]                                    # hoisted once
    h = h0_ref[...]
    c = c0_ref[...]
    for t in range(T):
        gates = gx_ref[t * Bp:(t + 1) * Bp, :] + jnp.dot(
            h, w_hh, preferred_element_type=jnp.float32)             # (Bp,4H)
        sig = jax.nn.sigmoid(gates)      # full 128-lane vreg, one EUP pass
        tnh = jnp.tanh(gates)
        i_g = sig[:, 0 * H:1 * H]
        f_g = sig[:, 1 * H:2 * H]
        g_g = tnh[:, 2 * H:3 * H]
        o_g = sig[:, 3 * H:4 * H]
        c = f_g * c + i_g * g_g
        h = o_g * jnp.tanh(c)
        h_all_ref[t * Bp:(t + 1) * Bp, :] = h        # sublane-aligned store

    # ---- 3) Deferred output projection: one matmul, one lane-dense store ---
    logits = jnp.dot(h_all_ref[...], w_fc_ref[...],
                     preferred_element_type=jnp.float32) + b_fc_ref[...]
    row_idx = jax.lax.broadcasted_iota(jnp.int32, (TBp, 1), 0)
    active = row_idx < stop_ref[0] * Bp          # rows are t-major (r=t*Bp+b)
    out_ref[...] = jnp.where(active, logits, 0.0)


def seq2seq_decoder_forward(params, enc_c, enc_h, x_tgt):
    """Training-mode forward with teacher forcing (teacher_prob = 1)."""
    B, H = enc_h.shape
    V, E = params["embed"].shape
    T = tgt_max_pad - 1

    Bp = ((B + 7) // 8) * 8          # sublane-aligned batch
    Vp = ((V + 127) // 128) * 128    # lane-dense vocab

    # One-time weight preprocessing (layout plumbing + embedding fold).
    embed_wih = params["embed"] @ params["w_ih"].T                  # (V, 4H)
    embed_wih = jnp.pad(embed_wih, ((0, Vp - V), (0, 0)))           # (Vp, 4H)
    w_hh_t = params["w_hh"].T                                       # (H, 4H)
    b = (params["b_ih"] + params["b_hh"]).reshape(1, 4 * H)
    w_fc_t = jnp.pad(params["w_fc"].T, ((0, 0), (0, Vp - V)))       # (H, Vp)
    b_fc = jnp.pad(params["b_fc"], (0, Vp - V)).reshape(1, Vp)

    # Teacher tokens in t-major, Bp-padded row layout: row r = t*Bp + b.
    # (Token ids >= V silently embed to zero; nn.Embedding would raise.)
    x_tgt = x_tgt.astype(jnp.int32)
    tok_tb = jnp.pad(jnp.transpose(x_tgt[:, :T]), ((0, 0), (0, Bp - B)))
    tok_col = tok_tb.reshape(T * Bp, 1)

    h0 = jnp.pad(enc_h, ((0, Bp - B), (0, 0)))
    c0 = jnp.pad(enc_c, ((0, Bp - B), (0, 0)))

    # Early-stop step (PyTorch breaks before step t>=1 when all teacher tokens
    # fed at step t are in {2, 3}); computed once, passed as SMEM scalar.
    tok_next = x_tgt[:, 1:T]                                        # (B, T-1)
    col_eos = jnp.all((tok_next == 2) | (tok_next == 3), axis=0)    # (T-1,)
    s_idx = jnp.arange(1, T, dtype=jnp.int32)
    stop_t = jnp.min(jnp.where(col_eos, s_idx, jnp.int32(T)))
    stop_t = stop_t.astype(jnp.int32).reshape(1)

    vmem = pl.BlockSpec(memory_space=pltpu.MemorySpace.VMEM)
    smem = pl.BlockSpec(memory_space=pltpu.MemorySpace.SMEM)

    # VMEM budget: all-resident f32 tensors + scratch, with 2x headroom,
    # floored at the smallest cross-generation default (16 MiB) and capped
    # well inside v7x's 64 MiB physical VMEM.
    vmem_bytes = 4 * (T * Bp * Vp          # out
                      + T * Bp * 4 * H     # gx scratch
                      + T * Bp * H         # h_all scratch
                      + Vp * 4 * H + H * 4 * H + H * Vp
                      + T * Bp + 2 * Bp * H + 4 * H + Vp)
    vmem_limit = int(min(max(2 * vmem_bytes, 16 << 20), 48 << 20))

    out = pl.pallas_call(
        _decoder_kernel,
        out_shape=jax.ShapeDtypeStruct((T * Bp, Vp), jnp.float32),
        in_specs=[smem] + [vmem] * 8,
        out_specs=vmem,
        scratch_shapes=[pltpu.VMEM((T * Bp, 4 * H), jnp.float32),
                        pltpu.VMEM((T * Bp, H), jnp.float32)],
        compiler_params=pltpu.CompilerParams(vmem_limit_bytes=vmem_limit),
    )(stop_t, tok_col, embed_wih, w_hh_t, b, w_fc_t, b_fc, h0, c0)

    # (T*Bp, Vp) -> (B, T, V): drop padded batch rows and padded vocab lanes.
    out = out.reshape(T, Bp, Vp)[:, :B, :V]
    return jnp.transpose(out, (1, 0, 2))


# ----------------------------------------------------------------------------
# Pure-JAX/numpy reference (mirrors the PyTorch forward) for correctness.
# ----------------------------------------------------------------------------
def reference_forward(params, enc_c, enc_h, x_tgt):
    B, H = enc_h.shape
    V, E = params["embed"].shape
    T = tgt_max_pad - 1
    h, c = enc_h, enc_c
    dec = np.zeros((B, T, V), dtype=np.float32)
    for t in range(T):
        tok = x_tgt[:, t]
        if t > 0 and bool(jnp.all((tok == 2) | (tok == 3))):
            break
        x = params["embed"][tok]                                    # (B, E)
        gates = (x @ params["w_ih"].T + h @ params["w_hh"].T
                 + params["b_ih"] + params["b_hh"])
        i_g = jax.nn.sigmoid(gates[:, 0 * H:1 * H])
        f_g = jax.nn.sigmoid(gates[:, 1 * H:2 * H])
        g_g = jnp.tanh(gates[:, 2 * H:3 * H])
        o_g = jax.nn.sigmoid(gates[:, 3 * H:4 * H])
        c = f_g * c + i_g * g_g
        h = o_g * jnp.tanh(c)
        logits = h @ params["w_fc"].T + params["b_fc"]
        dec[:, t] = np.asarray(logits)
    return dec


# ----------------------------------------------------------------------------
# Deterministic parameter construction (shapes from Seq2SeqDecoder.__init__).
# ----------------------------------------------------------------------------
def make_params(key, output_size, hidden_size, num_embeddings):
    E, H, V = output_size, hidden_size, num_embeddings
    ks = jax.random.split(key, 5)

    def xavier(k, shape):
        fan_out, fan_in = shape
        std = float(np.sqrt(2.0 / (fan_in + fan_out)))
        return std * jax.random.normal(k, shape, dtype=jnp.float32)

    return {
        "embed": jax.random.normal(ks[0], (V, E), dtype=jnp.float32),
        "w_ih": xavier(ks[1], (4 * H, E)),
        "w_hh": xavier(ks[2], (4 * H, H)),
        "b_ih": jnp.zeros((4 * H,), jnp.float32),
        "b_hh": jnp.zeros((4 * H,), jnp.float32),
        "w_fc": xavier(ks[3], (V, H)),
        "b_fc": (1.0 / np.sqrt(H)) * (2.0 * jax.random.uniform(
            ks[4], (V,), dtype=jnp.float32) - 1.0),
    }


if __name__ == "__main__":
    B, E, H, V = 2, 16, 32, 64           # batch, output_size, hidden, vocab

    key = jax.random.PRNGKey(0)
    kp, kh, kc, kt = jax.random.split(key, 4)
    params = make_params(kp, E, H, V)

    enc_h = jax.random.normal(kh, (B, H), dtype=jnp.float32)
    enc_c = jax.random.normal(kc, (B, H), dtype=jnp.float32)
    x_tgt = jax.random.randint(kt, (B, tgt_max_pad), 4, V, dtype=jnp.int32)

    # Case 1: no early EOS break.
    dec_out = jax.block_until_ready(
        seq2seq_decoder_forward(params, enc_c, enc_h, x_tgt))
    ref = reference_forward(params, enc_c, enc_h, x_tgt)
    np.testing.assert_allclose(np.asarray(dec_out), ref, rtol=1e-4, atol=1e-4)

    # Case 2: all-EOS teacher tokens at step 10 -> early break / zero tail.
    x_tgt_eos = x_tgt.at[:, 10].set(2)
    dec_out2 = jax.block_until_ready(
        seq2seq_decoder_forward(params, enc_c, enc_h, x_tgt_eos))
    ref2 = reference_forward(params, enc_c, enc_h, x_tgt_eos)
    np.testing.assert_allclose(np.asarray(dec_out2), ref2, rtol=1e-4, atol=1e-4)

    print("KERNEL_OK")
</pallas_src>

<mosaic_0001>
module attributes {stable_mosaic.version = 11 : i64} {
  func.func @_decoder_kernel(%arg0: memref<1xi32, #tpu.memory_space<smem>>, %arg1: memref<248x1xi32, #tpu.memory_space<vmem>>, %arg2: memref<128x128xf32, #tpu.memory_space<vmem>>, %arg3: memref<32x128xf32, #tpu.memory_space<vmem>>, %arg4: memref<1x128xf32, #tpu.memory_space<vmem>>, %arg5: memref<32x128xf32, #tpu.memory_space<vmem>>, %arg6: memref<1x128xf32, #tpu.memory_space<vmem>>, %arg7: memref<8x32xf32, #tpu.memory_space<vmem>>, %arg8: memref<8x32xf32, #tpu.memory_space<vmem>>, %arg9: memref<248x128xf32, #tpu.memory_space<vmem>>, %arg10: memref<248x128xf32, #tpu.memory_space<vmem>>, %arg11: memref<248x32xf32, #tpu.memory_space<vmem>>) attributes {dimension_semantics = [], scalar_prefetch = 0 : i64, scratch_operands = 2 : i64, tpu.core_type = #tpu.core_type<tc>} {
    %0 = tpu.iota {dimensions = array<i32: 1>} : vector<248x128xi32>
    %c0 = arith.constant 0 : index
    %c0_0 = arith.constant 0 : index
    %1 = vector.load %arg1[%c0, %c0_0] : memref<248x1xi32, #tpu.memory_space<vmem>>, vector<248x1xi32>
    %2 = vector.broadcast %1 : vector<248x1xi32> to vector<248x128xi32>
    %3 = arith.cmpi eq, %0, %2 : vector<248x128xi32>
    %4 = arith.extui %3 : vector<248x128xi1> to vector<248x128xi32>
    %5 = arith.sitofp %4 : vector<248x128xi32> to vector<248x128xf32>
    %c0_1 = arith.constant 0 : index
    %c0_2 = arith.constant 0 : index
    %6 = vector.load %arg2[%c0_1, %c0_2] : memref<128x128xf32, #tpu.memory_space<vmem>>, vector<128x128xf32>
    %cst = arith.constant dense<0.000000e+00> : vector<248x128xf32>
    %7 = tpu.matmul %5, %6, %cst {dimension_numbers = #tpu.dot_dimension_numbers<[1], [0], [0], [1], [0, 0, 1, 1], [], []>} : vector<248x128xf32>, vector<128x128xf32>, vector<248x128xf32> -> vector<248x128xf32>
    %c0_3 = arith.constant 0 : index
    %c0_4 = arith.constant 0 : index
    %8 = vector.load %arg4[%c0_3, %c0_4] : memref<1x128xf32, #tpu.memory_space<vmem>>, vector<1x128xf32>
    %9 = vector.broadcast %8 : vector<1x128xf32> to vector<248x128xf32>
    %10 = arith.addf %7, %9 : vector<248x128xf32>
    %c0_5 = arith.constant 0 : index
    %c0_6 = arith.constant 0 : index
    %11 = vector.load %arg10[%c0_5, %c0_6] : memref<248x128xf32, #tpu.memory_space<vmem>>, vector<248x128xf32>
    tpu.vector_store %arg10[%c0_5, %c0_6], %10 {strides = array<i32>} : memref<248x128xf32, #tpu.memory_space<vmem>>, vector<248x128xf32>,
    %c0_7 = arith.constant 0 : index
    %c0_8 = arith.constant 0 : index
    %12 = vector.load %arg3[%c0_7, %c0_8] : memref<32x128xf32, #tpu.memory_space<vmem>>, vector<32x128xf32>
    %c0_9 = arith.constant 0 : index
    %c0_10 = arith.constant 0 : index
    %13 = vector.load %arg7[%c0_9, %c0_10] : memref<8x32xf32, #tpu.memory_space<vmem>>, vector<8x32xf32>
    %c0_11 = arith.constant 0 : index
    %c0_12 = arith.constant 0 : index
    %14 = vector.load %arg8[%c0_11, %c0_12] : memref<8x32xf32, #tpu.memory_space<vmem>>, vector<8x32xf32>
    %c0_13 = arith.constant 0 : index
    %c0_14 = arith.constant 0 : index
    %15 = vector.load %arg10[%c0_13, %c0_14] : memref<248x128xf32, #tpu.memory_space<vmem>>, vector<8x128xf32>
    %cst_15 = arith.constant dense<0.000000e+00> : vector<8x128xf32>
    %16 = tpu.matmul %13, %12, %cst_15 {dimension_numbers = #tpu.dot_dimension_numbers<[1], [0], [0], [1], [0, 0, 1, 1], [], []>} : vector<8x32xf32>, vector<32x128xf32>, vector<8x128xf32> -> vector<8x128xf32>
    %17 = arith.addf %15, %16 : vector<8x128xf32>
    %18 = arith.negf %17 : vector<8x128xf32>
    %19 = math.exp %18 : vector<8x128xf32>
    %cst_16 = arith.constant 1.000000e+00 : f32
    %20 = vector.broadcast %cst_16 : f32 to vector<8x128xf32>
    %21 = arith.addf %20, %19 : vector<8x128xf32>
    %22 = arith.divf %20, %21 : vector<8x128xf32>
    %23 = math.tanh %17 : vector<8x128xf32>
    %24 = vector.extract_strided_slice %22 {offsets = [0, 0], sizes = [8, 32], strides = [1, 1]} : vector<8x128xf32> to vector<8x32xf32>
    %25 = vector.extract_strided_slice %22 {offsets = [0, 32], sizes = [8, 32], strides = [1, 1]} : vector<8x128xf32> to vector<8x32xf32>
    %26 = vector.extract_strided_slice %23 {offsets = [0, 64], sizes = [8, 32], strides = [1, 1]} : vector<8x128xf32> to vector<8x32xf32>
    %27 = vector.extract_strided_slice %22 {offsets = [0, 96], sizes = [8, 32], strides = [1, 1]} : vector<8x128xf32> to vector<8x32xf32>
    %28 = arith.mulf %25, %14 : vector<8x32xf32>
    %29 = arith.mulf %24, %26 : vector<8x32xf32>
    %30 = arith.addf %28, %29 : vector<8x32xf32>
    %31 = math.tanh %30 : vector<8x32xf32>
    %32 = arith.mulf %27, %31 : vector<8x32xf32>
    %c0_17 = arith.constant 0 : index
    %c0_18 = arith.constant 0 : index
    %33 = vector.load %arg11[%c0_17, %c0_18] : memref<248x32xf32, #tpu.memory_space<vmem>>, vector<8x32xf32>
    tpu.vector_store %arg11[%c0_17, %c0_18], %32 {strides = array<i32>} : memref<248x32xf32, #tpu.memory_space<vmem>>, vector<8x32xf32>,
    %c8 = arith.constant 8 : index
    %c0_19 = arith.constant 0 : index
    %34 = vector.load %arg10[%c8, %c0_19] : memref<248x128xf32, #tpu.memory_space<vmem>>, vector<8x128xf32>
    %cst_20 = arith.constant dense<0.000000e+00> : vector<8x128xf32>
    %35 = tpu.matmul %32, %12, %cst_20 {dimension_numbers = #tpu.dot_dimension_numbers<[1], [0], [0], [1], [0, 0, 1, 1], [], []>} : vector<8x32xf32>, vector<32x128xf32>, vector<8x128xf32> -> vector<8x128xf32>
    %36 = arith.addf %34, %35 : vector<8x128xf32>
    %37 = arith.negf %36 : vector<8x128xf32>
    %38 = math.exp %37 : vector<8x128xf32>
    %cst_21 = arith.constant 1.000000e+00 : f32
    %39 = vector.broadcast %cst_21 : f32 to vector<8x128xf32>
    %40 = arith.addf %39, %38 : vector<8x128xf32>
    %41 = arith.divf %39, %40 : vector<8x128xf32>
    %42 = math.tanh %36 : vector<8x128xf32>
    %43 = vector.extract_strided_slice %41 {offsets = [0, 0], sizes = [8, 32], strides = [1, 1]} : vector<8x128xf32> to vector<8x32xf32>
    %44 = vector.extract_strided_slice %41 {offsets = [0, 32], sizes = [8, 32], strides = [1, 1]} : vector<8x128xf32> to vector<8x32xf32>
    %45 = vector.extract_strided_slice %42 {offsets = [0, 64], sizes = [8, 32], strides = [1, 1]} : vector<8x128xf32> to vector<8x32xf32>
    %46 = vector.extract_strided_slice %41 {offsets = [0, 96], sizes = [8, 32], strides = [1, 1]} : vector<8x128xf32> to vector<8x32xf32>
    %47 = arith.mulf %44, %30 : vector<8x32xf32>
    %48 = arith.mulf %43, %45 : vector<8x32xf32>
    %49 = arith.addf %47, %48 : vector<8x32xf32>
    %50 = math.tanh %49 : vector<8x32xf32>
    %51 = arith.mulf %46, %50 : vector<8x32xf32>
    %c8_22 = arith.constant 8 : index
    %c0_23 = arith.constant 0 : index
    %52 = vector.load %arg11[%c8_22, %c0_23] : memref<248x32xf32, #tpu.memory_space<vmem>>, vector<8x32xf32>
    tpu.vector_store %arg11[%c8_22, %c0_23], %51 {strides = array<i32>} : memref<248x32xf32, #tpu.memory_space<vmem>>, vector<8x32xf32>,
    %c16 = arith.constant 16 : index
    %c0_24 = arith.constant 0 : index
    %53 = vector.load %arg10[%c16, %c0_24] : memref<248x128xf32, #tpu.memory_space<vmem>>, vector<8x128xf32>
    %cst_25 = arith.constant dense<0.000000e+00> : vector<8x128xf32>
    %54 = tpu.matmul %51, %12, %cst_25 {dimension_numbers = #tpu.dot_dimension_numbers<[1], [0], [0], [1], [0, 0, 1, 1], [], []>} : vector<8x32xf32>, vector<32x128xf32>, vector<8x128xf32> -> vector<8x128xf32>
    %55 = arith.addf %53, %54 : vector<8x128xf32>
    %56 = arith.negf %55 : vector<8x128xf32>
    %57 = math.exp %56 : vector<8x128xf32>
    %cst_26 = arith.constant 1.000000e+00 : f32
    %58 = vector.broadcast %cst_26 : f32 to vector<8x128xf32>
    %59 = arith.addf %58, %57 : vector<8x128xf32>
    %60 = arith.divf %58, %59 : vector<8x128xf32>
    %61 = math.tanh %55 : vector<8x128xf32>
    %62 = vector.extract_strided_slice %60 {offsets = [0, 0], sizes = [8, 32], strides = [1, 1]} : vector<8x128xf32> to vector<8x32xf32>
    %63 = vector.extract_strided_slice %60 {offsets = [0, 32], sizes = [8, 32], strides = [1, 1]} : vector<8x128xf32> to vector<8x32xf32>
    %64 = vector.extract_strided_slice %61 {offsets = [0, 64], sizes = [8, 32], strides = [1, 1]} : vector<8x128xf32> to vector<8x32xf32>
    %65 = vector.extract_strided_slice %60 {offsets = [0, 96], sizes = [8, 32], strides = [1, 1]} : vector<8x128xf32> to vector<8x32xf32>
    %66 = arith.mulf %63, %49 : vector<8x32xf32>
    %67 = arith.mulf %62, %64 : vector<8x32xf32>
    %68 = arith.addf %66, %67 : vector<8x32xf32>
    %69 = math.tanh %68 : vector<8x32xf32>
    %70 = arith.mulf %65, %69 : vector<8x32xf32>
    %c16_27 = arith.constant 16 : index
    %c0_28 = arith.constant 0 : index
    %71 = vector.load %arg11[%c16_27, %c0_28] : memref<248x32xf32, #tpu.memory_space<vmem>>, vector<8x32xf32>
    tpu.vector_store %arg11[%c16_27, %c0_28], %70 {strides = array<i32>} : memref<248x32xf32, #tpu.memory_space<vmem>>, vector<8x32xf32>,
    %c24 = arith.constant 24 : index
    %c0_29 = arith.constant 0 : index
    %72 = vector.load %arg10[%c24, %c0_29] : memref<248x128xf32, #tpu.memory_space<vmem>>, vector<8x128xf32>
    %cst_30 = arith.constant dense<0.000000e+00> : vector<8x128xf32>
    %73 = tpu.matmul %70, %12, %cst_30 {dimension_numbers = #tpu.dot_dimension_numbers<[1], [0], [0], [1], [0, 0, 1, 1], [], []>} : vector<8x32xf32>, vector<32x128xf32>, vector<8x128xf32> -> vector<8x128xf32>
    %74 = arith.addf %72, %73 : vector<8x128xf32>
    %75 = arith.negf %74 : vector<8x128xf32>
    %76 = math.exp %75 : vector<8x128xf32>
    %cst_31 = arith.constant 1.000000e+00 : f32
    %77 = vector.broadcast %cst_31 : f32 to vector<8x128xf32>
    %78 = arith.addf %77, %76 : vector<8x128xf32>
    %79 = arith.divf %77, %78 : vector<8x128xf32>
    %80 = math.tanh %74 : vector<8x128xf32>
    %81 = vector.extract_strided_slice %79 {offsets = [0, 0], sizes = [8, 32], strides = [1, 1]} : vector<8x128xf32> to vector<8x32xf32>
    %82 = vector.extract_strided_slice %79 {offsets = [0, 32], sizes = [8, 32], strides = [1, 1]} : vector<8x128xf32> to vector<8x32xf32>
    %83 = vector.extract_strided_slice %80 {offsets = [0, 64], sizes = [8, 32], strides = [1, 1]} : vector<8x128xf32> to vector<8x32xf32>
    %84 = vector.extract_strided_slice %79 {offsets = [0, 96], sizes = [8, 32], strides = [1, 1]} : vector<8x128xf32> to vector<8x32xf32>
    %85 = arith.mulf %82, %68 : vector<8x32xf32>
    %86 = arith.mulf %81, %83 : vector<8x32xf32>
    %87 = arith.addf %85, %86 : vector<8x32xf32>
    %88 = math.tanh %87 : vector<8x32xf32>
    %89 = arith.mulf %84, %88 : vector<8x32xf32>
    %c24_32 = arith.constant 24 : index
    %c0_33 = arith.constant 0 : index
    %90 = vector.load %arg11[%c24_32, %c0_33] : memref<248x32xf32, #tpu.memory_space<vmem>>, vector<8x32xf32>
    tpu.vector_store %arg11[%c24_32, %c0_33], %89 {strides = array<i32>} : memref<248x32xf32, #tpu.memory_space<vmem>>, vector<8x32xf32>,
    %c32 = arith.constant 32 : index
    %c0_34 = arith.constant 0 : index
    %91 = vector.load %arg10[%c32, %c0_34] : memref<248x128xf32, #tpu.memory_space<vmem>>, vector<8x128xf32>
    %cst_35 = arith.constant dense<0.000000e+00> : vector<8x128xf32>
    %92 = tpu.matmul %89, %12, %cst_35 {dimension_numbers = #tpu.dot_dimension_numbers<[1], [0], [0], [1], [0, 0, 1, 1], [], []>} : vector<8x32xf32>, vector<32x128xf32>, vector<8x128xf32> -> vector<8x128xf32>
    %93 = arith.addf %91, %92 : vector<8x128xf32>
    %94 = arith.negf %93 : vector<8x128xf32>
    %95 = math.exp %94 : vector<8x128xf32>
    %cst_36 = arith.constant 1.000000e+00 : f32
    %96 = vector.broadcast %cst_36 : f32 to vector<8x128xf32>
    %97 = arith.addf %96, %95 : vector<8x128xf32>
    %98 = arith.divf %96, %97 : vector<8x128xf32>
    %99 = math.tanh %93 : vector<8x128xf32>
    %100 = vector.extract_strided_slice %98 {offsets = [0, 0], sizes = [8, 32], strides = [1, 1]} : vector<8x128xf32> to vector<8x32xf32>
    %101 = vector.extract_strided_slice %98 {offsets = [0, 32], sizes = [8, 32], strides = [1, 1]} : vector<8x128xf32> to vector<8x32xf32>
    %102 = vector.extract_strided_slice %99 {offsets = [0, 64], sizes = [8, 32], strides = [1, 1]} : vector<8x128xf32> to vector<8x32xf32>
    %103 = vector.extract_strided_slice %98 {offsets = [0, 96], sizes = [8, 32], strides = [1, 1]} : vector<8x128xf32> to vector<8x32xf32>
    %104 = arith.mulf %101, %87 : vector<8x32xf32>
    %105 = arith.mulf %100, %102 : vector<8x32xf32>
    %106 = arith.addf %104, %105 : vector<8x32xf32>
    %107 = math.tanh %106 : vector<8x32xf32>
    %108 = arith.mulf %103, %107 : vector<8x32xf32>
    %c32_37 = arith.constant 32 : index
    %c0_38 = arith.constant 0 : index
    %109 = vector.load %arg11[%c32_37, %c0_38] : memref<248x32xf32, #tpu.memory_space<vmem>>, vector<8x32xf32>
    tpu.vector_store %arg11[%c32_37, %c0_38], %108 {strides = array<i32>} : memref<248x32xf32, #tpu.memory_space<vmem>>, vector<8x32xf32>,
    %c40 = arith.constant 40 : index
    %c0_39 = arith.constant 0 : index
    %110 = vector.load %arg10[%c40, %c0_39] : memref<248x128xf32, #tpu.memory_space<vmem>>, vector<8x128xf32>
    %cst_40 = arith.constant dense<0.000000e+00> : vector<8x128xf32>
    %111 = tpu.matmul %108, %12, %cst_40 {dimension_numbers = #tpu.dot_dimension_numbers<[1], [0], [0], [1], [0, 0, 1, 1], [], []>} : vector<8x32xf32>, vector<32x128xf32>, vector<8x128xf32> -> vector<8x128xf32>
    %112 = arith.addf %110, %111 : vector<8x128xf32>
    %113 = arith.negf %112 : vector<8x128xf32>
    %114 = math.exp %113 : vector<8x128xf32>
    %cst_41 = arith.constant 1.000000e+00 : f32
    %115 = vector.broadcast %cst_41 : f32 to vector<8x128xf32>
    %116 = arith.addf %115, %114 : vector<8x128xf32>
    %117 = arith.divf %115, %116 : vector<8x128xf32>
    %118 = math.tanh %112 : vector<8x128xf32>
    %119 = vector.extract_strided_slice %117 {offsets = [0, 0], sizes = [8, 32], strides = [1, 1]} : vector<8x128xf32> to vector<8x32xf32>
    %120 = vector.extract_strided_slice %117 {offsets = [0, 32], sizes = [8, 32], strides = [1, 1]} : vector<8x128xf32> to vector<8x32xf32>
    %121 = vector.extract_strided_slice %118 {offsets = [0, 64], sizes = [8, 32], strides = [1, 1]} : vector<8x128xf32> to vector<8x32xf32>
    %122 = vector.extract_strided_slice %117 {offsets = [0, 96], sizes = [8, 32], strides = [1, 1]} : vector<8x128xf32> to vector<8x32xf32>
    %123 = arith.mulf %120, %106 : vector<8x32xf32>
    %124 = arith.mulf %119, %121 : vector<8x32xf32>
    %125 = arith.addf %123, %124 : vector<8x32xf32>
    %126 = math.tanh %125 : vector<8x32xf32>
    %127 = arith.mulf %122, %126 : vector<8x32xf32>
    %c40_42 = arith.constant 40 : index
    %c0_43 = arith.constant 0 : index
    %128 = vector.load %arg11[%c40_42, %c0_43] : memref<248x32xf32, #tpu.memory_space<vmem>>, vector<8x32xf32>
    tpu.vector_store %arg11[%c40_42, %c0_43], %127 {strides = array<i32>} : memref<248x32xf32, #tpu.memory_space<vmem>>, vector<8x32xf32>,
    %c48 = arith.constant 48 : index
    %c0_44 = arith.constant 0 : index
    %129 = vector.load %arg10[%c48, %c0_44] : memref<248x128xf32, #tpu.memory_space<vmem>>, vector<8x128xf32>
    %cst_45 = arith.constant dense<0.000000e+00> : vector<8x128xf32>
    %130 = tpu.matmul %127, %12, %cst_45 {dimension_numbers = #tpu.dot_dimension_numbers<[1], [0], [0], [1], [0, 0, 1, 1], [], []>} : vector<8x32xf32>, vector<32x128xf32>, vector<8x128xf32> -> vector<8x128xf32>
    %131 = arith.addf %129, %130 : vector<8x128xf32>
    %132 = arith.negf %131 : vector<8x128xf32>
    %133 = math.exp %132 : vector<8x128xf32>
    %cst_46 = arith.constant 1.000000e+00 : f32
    %134 = vector.broadcast %cst_46 : f32 to vector<8x128xf32>
    %135 = arith.addf %134, %133 : vector<8x128xf32>
    %136 = arith.divf %134, %135 : vector<8x128xf32>
    %137 = math.tanh %131 : vector<8x128xf32>
    %138 = vector.extract_strided_slice %136 {offsets = [0, 0], sizes = [8, 32], strides = [1, 1]} : vector<8x128xf32> to vector<8x32xf32>
    %139 = vector.extract_strided_slice %136 {offsets = [0, 32], sizes = [8, 32], strides = [1, 1]} : vector<8x128xf32> to vector<8x32xf32>
    %140 = vector.extract_strided_slice %137 {offsets = [0, 64], sizes = [8, 32], strides = [1, 1]} : vector<8x128xf32> to vector<8x32xf32>
    %141 = vector.extract_strided_slice %136 {offsets = [0, 96], sizes = [8, 32], strides = [1, 1]} : vector<8x128xf32> to vector<8x32xf32>
    %142 = arith.mulf %139, %125 : vector<8x32xf32>
    %143 = arith.mulf %138, %140 : vector<8x32xf32>
    %144 = arith.addf %142, %143 : vector<8x32xf32>
    %145 = math.tanh %144 : vector<8x32xf32>
    %146 = arith.mulf %141, %145 : vector<8x32xf32>
    %c48_47 = arith.constant 48 : index
    %c0_48 = arith.constant 0 : index
    %147 = vector.load %arg11[%c48_47, %c0_48] : memref<248x32xf32, #tpu.memory_space<vmem>>, vector<8x32xf32>
    tpu.vector_store %arg11[%c48_47, %c0_48], %146 {strides = array<i32>} : memref<248x32xf32, #tpu.memory_space<vmem>>, vector<8x32xf32>,
    %c56 = arith.constant 56 : index
    %c0_49 = arith.constant 0 : index
    %148 = vector.load %arg10[%c56, %c0_49] : memref<248x128xf32, #tpu.memory_space<vmem>>, vector<8x128xf32>
    %cst_50 = arith.constant dense<0.000000e+00> : vector<8x128xf32>
    %149 = tpu.matmul %146, %12, %cst_50 {dimension_numbers = #tpu.dot_dimension_numbers<[1], [0], [0], [1], [0, 0, 1, 1], [], []>} : vector<8x32xf32>, vector<32x128xf32>, vector<8x128xf32> -> vector<8x128xf32>
    %150 = arith.addf %148, %149 : vector<8x128xf32>
    %151 = arith.negf %150 : vector<8x128xf32>
    %152 = math.exp %151 : vector<8x128xf32>
    %cst_51 = arith.constant 1.000000e+00 : f32
    %153 = vector.broadcast %cst_51 : f32 to vector<8x128xf32>
    %154 = arith.addf %153, %152 : vector<8x128xf32>
    %155 = arith.divf %153, %154 : vector<8x128xf32>
    %156 = math.tanh %150 : vector<8x128xf32>
    %157 = vector.extract_strided_slice %155 {offsets = [0, 0], sizes = [8, 32], strides = [1, 1]} : vector<8x128xf32> to vector<8x32xf32>
    %158 = vector.extract_strided_slice %155 {offsets = [0, 32], sizes = [8, 32], strides = [1, 1]} : vector<8x128xf32> to vector<8x32xf32>
    %159 = vector.extract_strided_slice %156 {offsets = [0, 64], sizes = [8, 32], strides = [1, 1]} : vector<8x128xf32> to vector<8x32xf32>
    %160 = vector.extract_strided_slice %155 {offsets = [0, 96], sizes = [8, 32], strides = [1, 1]} : vector<8x128xf32> to vector<8x32xf32>
    %161 = arith.mulf %158, %144 : vector<8x32xf32>
    %162 = arith.mulf %157, %159 : vector<8x32xf32>
    %163 = arith.addf %161, %162 : vector<8x32xf32>
    %164 = math.tanh %163 : vector<8x32xf32>
    %165 = arith.mulf %160, %164 : vector<8x32xf32>
    %c56_52 = arith.constant 56 : index
    %c0_53 = arith.constant 0 : index
    %166 = vector.load %arg11[%c56_52, %c0_53] : memref<248x32xf32, #tpu.memory_space<vmem>>, vector<8x32xf32>
    tpu.vector_store %arg11[%c56_52, %c0_53], %165 {strides = array<i32>} : memref<248x32xf32, #tpu.memory_space<vmem>>, vector<8x32xf32>,
    %c64 = arith.constant 64 : index
    %c0_54 = arith.constant 0 : index
    %167 = vector.load %arg10[%c64, %c0_54] : memref<248x128xf32, #tpu.memory_space<vmem>>, vector<8x128xf32>
    %cst_55 = arith.constant dense<0.000000e+00> : vector<8x128xf32>
    %168 = tpu.matmul %165, %12, %cst_55 {dimension_numbers = #tpu.dot_dimension_numbers<[1], [0], [0], [1], [0, 0, 1, 1], [], []>} : vector<8x32xf32>, vector<32x128xf32>, vector<8x128xf32> -> vector<8x128xf32>
    %169 = arith.addf %167, %168 : vector<8x128xf32>
    %170 = arith.negf %169 : vector<8x128xf32>
    %171 = math.exp %170 : vector<8x128xf32>
    %cst_56 = arith.constant 1.000000e+00 : f32
    %172 = vector.broadcast %cst_56 : f32 to vector<8x128xf32>
    %173 = arith.addf %172, %171 : vector<8x128xf32>
    %174 = arith.divf %172, %173 : vector<8x128xf32>
    %175 = math.tanh %169 : vector<8x128xf32>
    %176 = vector.extract_strided_slice %174 {offsets = [0, 0], sizes = [8, 32], strides = [1, 1]} : vector<8x128xf32> to vector<8x32xf32>
    %177 = vector.extract_strided_slice %174 {offsets = [0, 32], sizes = [8, 32], strides = [1, 1]} : vector<8x128xf32> to vector<8x32xf32>
    %178 = vector.extract_strided_slice %175 {offsets = [0, 64], sizes = [8, 32], strides = [1, 1]} : vector<8x128xf32> to vector<8x32xf32>
    %179 = vector.extract_strided_slice %174 {offsets = [0, 96], sizes = [8, 32], strides = [1, 1]} : vector<8x128xf32> to vector<8x32xf32>
    %180 = arith.mulf %177, %163 : vector<8x32xf32>
    %181 = arith.mulf %176, %178 : vector<8x32xf32>
    %182 = arith.addf %180, %181 : vector<8x32xf32>
    %183 = math.tanh %182 : vector<8x32xf32>
    %184 = arith.mulf %179, %183 : vector<8x32xf32>
    %c64_57 = arith.constant 64 : index
    %c0_58 = arith.constant 0 : index
    %185 = vector.load %arg11[%c64_57, %c0_58] : memref<248x32xf32, #tpu.memory_space<vmem>>, vector<8x32xf32>
    tpu.vector_store %arg11[%c64_57, %c0_58], %184 {strides = array<i32>} : memref<248x32xf32, #tpu.memory_space<vmem>>, vector<8x32xf32>,
    %c72 = arith.constant 72 : index
    %c0_59 = arith.constant 0 : index
    %186 = vector.load %arg10[%c72, %c0_59] : memref<248x128xf32, #tpu.memory_space<vmem>>, vector<8x128xf32>
    %cst_60 = arith.constant dense<0.000000e+00> : vector<8x128xf32>
    %187 = tpu.matmul %184, %12, %cst_60 {dimension_numbers = #tpu.dot_dimension_numbers<[1], [0], [0], [1], [0, 0, 1, 1], [], []>} : vector<8x32xf32>, vector<32x128xf32>, vector<8x128xf32> -> vector<8x128xf32>
    %188 = arith.addf %186, %187 : vector<8x128xf32>
    %189 = arith.negf %188 : vector<8x128xf32>
    %190 = math.exp %189 : vector<8x128xf32>
    %cst_61 = arith.constant 1.000000e+00 : f32
    %191 = vector.broadcast %cst_61 : f32 to vector<8x128xf32>
    %192 = arith.addf %191, %190 : vector<8x128xf32>
    %193 = arith.divf %191, %192 : vector<8x128xf32>
    %194 = math.tanh %188 : vector<8x128xf32>
    %195 = vector.extract_strided_slice %193 {offsets = [0, 0], sizes = [8, 32], strides = [1, 1]} : vector<8x128xf32> to vector<8x32xf32>
    %196 = vector.extract_strided_slice %193 {offsets = [0, 32], sizes = [8, 32], strides = [1, 1]} : vector<8x128xf32> to vector<8x32xf32>
    %197 = vector.extract_strided_slice %194 {offsets = [0, 64], sizes = [8, 32], strides = [1, 1]} : vector<8x128xf32> to vector<8x32xf32>
    %198 = vector.extract_strided_slice %193 {offsets = [0, 96], sizes = [8, 32], strides = [1, 1]} : vector<8x128xf32> to vector<8x32xf32>
    %199 = arith.mulf %196, %182 : vector<8x32xf32>
    %200 = arith.mulf %195, %197 : vector<8x32xf32>
    %201 = arith.addf %199, %200 : vector<8x32xf32>
    %202 = math.tanh %201 : vector<8x32xf32>
    %203 = arith.mulf %198, %202 : vector<8x32xf32>
    %c72_62 = arith.constant 72 : index
    %c0_63 = arith.constant 0 : index
    %204 = vector.load %arg11[%c72_62, %c0_63] : memref<248x32xf32, #tpu.memory_space<vmem>>, vector<8x32xf32>
    tpu.vector_store %arg11[%c72_62, %c0_63], %203 {strides = array<i32>} : memref<248x32xf32, #tpu.memory_space<vmem>>, vector<8x32xf32>,
    %c80 = arith.constant 80 : index
    %c0_64 = arith.constant 0 : index
    %205 = vector.load %arg10[%c80, %c0_64] : memref<248x128xf32, #tpu.memory_space<vmem>>, vector<8x128xf32>
    %cst_65 = arith.constant dense<0.000000e+00> : vector<8x128xf32>
    %206 = tpu.matmul %203, %12, %cst_65 {dimension_numbers = #tpu.dot_dimension_numbers<[1], [0], [0], [1], [0, 0, 1, 1], [], []>} : vector<8x32xf32>, vector<32x128xf32>, vector<8x128xf32> -> vector<8x128xf32>
    %207 = arith.addf %205, %206 : vector<8x128xf32>
    %208 = arith.negf %207 : vector<8x128xf32>
    %209 = math.exp %208 : vector<8x128xf32>
    %cst_66 = arith.constant 1.000000e+00 : f32
    %210 = vector.broadcast %cst_66 : f32 to vector<8x128xf32>
    %211 = arith.addf %210, %209 : vector<8x128xf32>
    %212 = arith.divf %210, %211 : vector<8x128xf32>
    %213 = math.tanh %207 : vector<8x128xf32>
    %214 = vector.extract_strided_slice %212 {offsets = [0, 0], sizes = [8, 32], strides = [1, 1]} : vector<8x128xf32> to vector<8x32xf32>
    %215 = vector.extract_strided_slice %212 {offsets = [0, 32], sizes = [8, 32], strides = [1, 1]} : vector<8x128xf32> to vector<8x32xf32>
    %216 = vector.extract_strided_slice %213 {offsets = [0, 64], sizes = [8, 32], strides = [1, 1]} : vector<8x128xf32> to vector<8x32xf32>
    %217 = vector.extract_strided_slice %212 {offsets = [0, 96], sizes = [8, 32], strides = [1, 1]} : vector<8x128xf32> to vector<8x32xf32>
    %218 = arith.mulf %215, %201 : vector<8x32xf32>
    %219 = arith.mulf %214, %216 : vector<8x32xf32>
    %220 = arith.addf %218, %219 : vector<8x32xf32>
    %221 = math.tanh %220 : vector<8x32xf32>
    %222 = arith.mulf %217, %221 : vector<8x32xf32>
    %c80_67 = arith.constant 80 : index
    %c0_68 = arith.constant 0 : index
    %223 = vector.load %arg11[%c80_67, %c0_68] : memref<248x32xf32, #tpu.memory_space<vmem>>, vector<8x32xf32>
    tpu.vector_store %arg11[%c80_67, %c0_68], %222 {strides = array<i32>} : memref<248x32xf32, #tpu.memory_space<vmem>>, vector<8x32xf32>,
    %c88 = arith.constant 88 : index
    %c0_69 = arith.constant 0 : index
    %224 = vector.load %arg10[%c88, %c0_69] : memref<248x128xf32, #tpu.memory_space<vmem>>, vector<8x128xf32>
    %cst_70 = arith.constant dense<0.000000e+00> : vector<8x128xf32>
    %225 = tpu.matmul %222, %12, %cst_70 {dimension_numbers = #tpu.dot_dimension_numbers<[1], [0], [0], [1], [0, 0, 1, 1], [], []>} : vector<8x32xf32>, vector<32x128xf32>, vector<8x128xf32> -> vector<8x128xf32>
    %226 = arith.addf %224, %225 : vector<8x128xf32>
    %227 = arith.negf %226 : vector<8x128xf32>
    %228 = math.exp %227 : vector<8x128xf32>
    %cst_71 = arith.constant 1.000000e+00 : f32
    %229 = vector.broadcast %cst_71 : f32 to vector<8x128xf32>
    %230 = arith.addf %229, %228 : vector<8x128xf32>
    %231 = arith.divf %229, %230 : vector<8x128xf32>
    %232 = math.tanh %226 : vector<8x128xf32>
    %233 = vector.extract_strided_slice %231 {offsets = [0, 0], sizes = [8, 32], strides = [1, 1]} : vector<8x128xf32> to vector<8x32xf32>
    %234 = vector.extract_strided_slice %231 {offsets = [0, 32], sizes = [8, 32], strides = [1, 1]} : vector<8x128xf32> to vector<8x32xf32>
    %235 = vector.extract_strided_slice %232 {offsets = [0, 64], sizes = [8, 32], strides = [1, 1]} : vector<8x128xf32> to vector<8x32xf32>
    %236 = vector.extract_strided_slice %231 {offsets = [0, 96], sizes = [8, 32], strides = [1, 1]} : vector<8x128xf32> to vector<8x32xf32>
    %237 = arith.mulf %234, %220 : vector<8x32xf32>
    %238 = arith.mulf %233, %235 : vector<8x32xf32>
    %239 = arith.addf %237, %238 : vector<8x32xf32>
    %240 = math.tanh %239 : vector<8x32xf32>
    %241 = arith.mulf %236, %240 : vector<8x32xf32>
    %c88_72 = arith.constant 88 : index
    %c0_73 = arith.constant 0 : index
    %242 = vector.load %arg11[%c88_72, %c0_73] : memref<248x32xf32, #tpu.memory_space<vmem>>, vector<8x32xf32>
    tpu.vector_store %arg11[%c88_72, %c0_73], %241 {strides = array<i32>} : memref<248x32xf32, #tpu.memory_space<vmem>>, vector<8x32xf32>,
    %c96 = arith.constant 96 : index
    %c0_74 = arith.constant 0 : index
    %243 = vector.load %arg10[%c96, %c0_74] : memref<248x128xf32, #tpu.memory_space<vmem>>, vector<8x128xf32>
    %cst_75 = arith.constant dense<0.000000e+00> : vector<8x128xf32>
    %244 = tpu.matmul %241, %12, %cst_75 {dimension_numbers = #tpu.dot_dimension_numbers<[1], [0], [0], [1], [0, 0, 1, 1], [], []>} : vector<8x32xf32>, vector<32x128xf32>, vector<8x128xf32> -> vector<8x128xf32>
    %245 = arith.addf %243, %244 : vector<8x128xf32>
    %246 = arith.negf %245 : vector<8x128xf32>
    %247 = math.exp %246 : vector<8x128xf32>
    %cst_76 = arith.constant 1.000000e+00 : f32
    %248 = vector.broadcast %cst_76 : f32 to vector<8x128xf32>
    %249 = arith.addf %248, %247 : vector<8x128xf32>
    %250 = arith.divf %248, %249 : vector<8x128xf32>
    %251 = math.tanh %245 : vector<8x128xf32>
    %252 = vector.extract_strided_slice %250 {offsets = [0, 0], sizes = [8, 32], strides = [1, 1]} : vector<8x128xf32> to vector<8x32xf32>
    %253 = vector.extract_strided_slice %250 {offsets = [0, 32], sizes = [8, 32], strides = [1, 1]} : vector<8x128xf32> to vector<8x32xf32>
    %254 = vector.extract_strided_slice %251 {offsets = [0, 64], sizes = [8, 32], strides = [1, 1]} : vector<8x128xf32> to vector<8x32xf32>
    %255 = vector.extract_strided_slice %250 {offsets = [0, 96], sizes = [8, 32], strides = [1, 1]} : vector<8x128xf32> to vector<8x32xf32>
    %256 = arith.mulf %253, %239 : vector<8x32xf32>
    %257 = arith.mulf %252, %254 : vector<8x32xf32>
    %258 = arith.addf %256, %257 : vector<8x32xf32>
    %259 = math.tanh %258 : vector<8x32xf32>
    %260 = arith.mulf %255, %259 : vector<8x32xf32>
    %c96_77 = arith.constant 96 : index
    %c0_78 = arith.constant 0 : index
    %261 = vector.load %arg11[%c96_77, %c0_78] : memref<248x32xf32, #tpu.memory_space<vmem>>, vector<8x32xf32>
    tpu.vector_store %arg11[%c96_77, %c0_78], %260 {strides = array<i32>} : memref<248x32xf32, #tpu.memory_space<vmem>>, vector<8x32xf32>,
    %c104 = arith.constant 104 : index
    %c0_79 = arith.constant 0 : index
    %262 = vector.load %arg10[%c104, %c0_79] : memref<248x128xf32, #tpu.memory_space<vmem>>, vector<8x128xf32>
    %cst_80 = arith.constant dense<0.000000e+00> : vector<8x128xf32>
    %263 = tpu.matmul %260, %12, %cst_80 {dimension_numbers = #tpu.dot_dimension_numbers<[1], [0], [0], [1], [0, 0, 1, 1], [], []>} : vector<8x32xf32>, vector<32x128xf32>, vector<8x128xf32> -> vector<8x128xf32>
    %264 = arith.addf %262, %263 : vector<8x128xf32>
    %265 = arith.negf %264 : vector<8x128xf32>
    %266 = math.exp %265 : vector<8x128xf32>
    %cst_81 = arith.constant 1.000000e+00 : f32
    %267 = vector.broadcast %cst_81 : f32 to vector<8x128xf32>
    %268 = arith.addf %267, %266 : vector<8x128xf32>
    %269 = arith.divf %267, %268 : vector<8x128xf32>
    %270 = math.tanh %264 : vector<8x128xf32>
    %271 = vector.extract_strided_slice %269 {offsets = [0, 0], sizes = [8, 32], strides = [1, 1]} : vector<8x128xf32> to vector<8x32xf32>
    %272 = vector.extract_strided_slice %269 {offsets = [0, 32], sizes = [8, 32], strides = [1, 1]} : vector<8x128xf32> to vector<8x32xf32>
    %273 = vector.extract_strided_slice %270 {offsets = [0, 64], sizes = [8, 32], strides = [1, 1]} : vector<8x128xf32> to vector<8x32xf32>
    %274 = vector.extract_strided_slice %269 {offsets = [0, 96], sizes = [8, 32], strides = [1, 1]} : vector<8x128xf32> to vector<8x32xf32>
    %275 = arith.mulf %272, %258 : vector<8x32xf32>
    %276 = arith.mulf %271, %273 : vector<8x32xf32>
    %277 = arith.addf %275, %276 : vector<8x32xf32>
    %278 = math.tanh %277 : vector<8x32xf32>
    %279 = arith.mulf %274, %278 : vector<8x32xf32>
    %c104_82 = arith.constant 104 : index
    %c0_83 = arith.constant 0 : index
    %280 = vector.load %arg11[%c104_82, %c0_83] : memref<248x32xf32, #tpu.memory_space<vmem>>, vector<8x32xf32>
    tpu.vector_store %arg11[%c104_82, %c0_83], %279 {strides = array<i32>} : memref<248x32xf32, #tpu.memory_space<vmem>>, vector<8x32xf32>,
    %c112 = arith.constant 112 : index
    %c0_84 = arith.constant 0 : index
    %281 = vector.load %arg10[%c112, %c0_84] : memref<248x128xf32, #tpu.memory_space<vmem>>, vector<8x128xf32>
    %cst_85 = arith.constant dense<0.000000e+00> : vector<8x128xf32>
    %282 = tpu.matmul %279, %12, %cst_85 {dimension_numbers = #tpu.dot_dimension_numbers<[1], [0], [0], [1], [0, 0, 1, 1], [], []>} : vector<8x32xf32>, vector<32x128xf32>, vector<8x128xf32> -> vector<8x128xf32>
    %283 = arith.addf %281, %282 : vector<8x128xf32>
    %284 = arith.negf %283 : vector<8x128xf32>
    %285 = math.exp %284 : vector<8x128xf32>
    %cst_86 = arith.constant 1.000000e+00 : f32
    %286 = vector.broadcast %cst_86 : f32 to vector<8x128xf32>
    %287 = arith.addf %286, %285 : vector<8x128xf32>
    %288 = arith.divf %286, %287 : vector<8x128xf32>
    %289 = math.tanh %283 : vector<8x128xf32>
    %290 = vector.extract_strided_slice %288 {offsets = [0, 0], sizes = [8, 32], strides = [1, 1]} : vector<8x128xf32> to vector<8x32xf32>
    %291 = vector.extract_strided_slice %288 {offsets = [0, 32], sizes = [8, 32], strides = [1, 1]} : vector<8x128xf32> to vector<8x32xf32>
    %292 = vector.extract_strided_slice %289 {offsets = [0, 64], sizes = [8, 32], strides = [1, 1]} : vector<8x128xf32> to vector<8x32xf32>
    %293 = vector.extract_strided_slice %288 {offsets = [0, 96], sizes = [8, 32], strides = [1, 1]} : vector<8x128xf32> to vector<8x32xf32>
    %294 = arith.mulf %291, %277 : vector<8x32xf32>
    %295 = arith.mulf %290, %292 : vector<8x32xf32>
    %296 = arith.addf %294, %295 : vector<8x32xf32>
    %297 = math.tanh %296 : vector<8x32xf32>
    %298 = arith.mulf %293, %297 : vector<8x32xf32>
    %c112_87 = arith.constant 112 : index
    %c0_88 = arith.constant 0 : index
    %299 = vector.load %arg11[%c112_87, %c0_88] : memref<248x32xf32, #tpu.memory_space<vmem>>, vector<8x32xf32>
    tpu.vector_store %arg11[%c112_87, %c0_88], %298 {strides = array<i32>} : memref<248x32xf32, #tpu.memory_space<vmem>>, vector<8x32xf32>,
    %c120 = arith.constant 120 : index
    %c0_89 = arith.constant 0 : index
    %300 = vector.load %arg10[%c120, %c0_89] : memref<248x128xf32, #tpu.memory_space<vmem>>, vector<8x128xf32>
    %cst_90 = arith.constant dense<0.000000e+00> : vector<8x128xf32>
    %301 = tpu.matmul %298, %12, %cst_90 {dimension_numbers = #tpu.dot_dimension_numbers<[1], [0], [0], [1], [0, 0, 1, 1], [], []>} : vector<8x32xf32>, vector<32x128xf32>, vector<8x128xf32> -> vector<8x128xf32>
    %302 = arith.addf %300, %301 : vector<8x128xf32>
    %303 = arith.negf %302 : vector<8x128xf32>
    %304 = math.exp %303 : vector<8x128xf32>
    %cst_91 = arith.constant 1.000000e+00 : f32
    %305 = vector.broadcast %cst_91 : f32 to vector<8x128xf32>
    %306 = arith.addf %305, %304 : vector<8x128xf32>
    %307 = arith.divf %305, %306 : vector<8x128xf32>
    %308 = math.tanh %302 : vector<8x128xf32>
    %309 = vector.extract_strided_slice %307 {offsets = [0, 0], sizes = [8, 32], strides = [1, 1]} : vector<8x128xf32> to vector<8x32xf32>
    %310 = vector.extract_strided_slice %307 {offsets = [0, 32], sizes = [8, 32], strides = [1, 1]} : vector<8x128xf32> to vector<8x32xf32>
    %311 = vector.extract_strided_slice %308 {offsets = [0, 64], sizes = [8, 32], strides = [1, 1]} : vector<8x128xf32> to vector<8x32xf32>
    %312 = vector.extract_strided_slice %307 {offsets = [0, 96], sizes = [8, 32], strides = [1, 1]} : vector<8x128xf32> to vector<8x32xf32>
    %313 = arith.mulf %310, %296 : vector<8x32xf32>
    %314 = arith.mulf %309, %311 : vector<8x32xf32>
    %315 = arith.addf %313, %314 : vector<8x32xf32>
    %316 = math.tanh %315 : vector<8x32xf32>
    %317 = arith.mulf %312, %316 : vector<8x32xf32>
    %c120_92 = arith.constant 120 : index
    %c0_93 = arith.constant 0 : index
    %318 = vector.load %arg11[%c120_92, %c0_93] : memref<248x32xf32, #tpu.memory_space<vmem>>, vector<8x32xf32>
    tpu.vector_store %arg11[%c120_92, %c0_93], %317 {strides = array<i32>} : memref<248x32xf32, #tpu.memory_space<vmem>>, vector<8x32xf32>,
    %c128 = arith.constant 128 : index
    %c0_94 = arith.constant 0 : index
    %319 = vector.load %arg10[%c128, %c0_94] : memref<248x128xf32, #tpu.memory_space<vmem>>, vector<8x128xf32>
    %cst_95 = arith.constant dense<0.000000e+00> : vector<8x128xf32>
    %320 = tpu.matmul %317, %12, %cst_95 {dimension_numbers = #tpu.dot_dimension_numbers<[1], [0], [0], [1], [0, 0, 1, 1], [], []>} : vector<8x32xf32>, vector<32x128xf32>, vector<8x128xf32> -> vector<8x128xf32>
    %321 = arith.addf %319, %320 : vector<8x128xf32>
    %322 = arith.negf %321 : vector<8x128xf32>
    %323 = math.exp %322 : vector<8x128xf32>
    %cst_96 = arith.constant 1.000000e+00 : f32
    %324 = vector.broadcast %cst_96 : f32 to vector<8x128xf32>
    %325 = arith.addf %324, %323 : vector<8x128xf32>
    %326 = arith.divf %324, %325 : vector<8x128xf32>
    %327 = math.tanh %321 : vector<8x128xf32>
    %328 = vector.extract_strided_slice %326 {offsets = [0, 0], sizes = [8, 32], strides = [1, 1]} : vector<8x128xf32> to vector<8x32xf32>
    %329 = vector.extract_strided_slice %326 {offsets = [0, 32], sizes = [8, 32], strides = [1, 1]} : vector<8x128xf32> to vector<8x32xf32>
    %330 = vector.extract_strided_slice %327 {offsets = [0, 64], sizes = [8, 32], strides = [1, 1]} : vector<8x128xf32> to vector<8x32xf32>
    %331 = vector.extract_strided_slice %326 {offsets = [0, 96], sizes = [8, 32], strides = [1, 1]} : vector<8x128xf32> to vector<8x32xf32>
    %332 = arith.mulf %329, %315 : vector<8x32xf32>
    %333 = arith.mulf %328, %330 : vector<8x32xf32>
    %334 = arith.addf %332, %333 : vector<8x32xf32>
    %335 = math.tanh %334 : vector<8x32xf32>
    %336 = arith.mulf %331, %335 : vector<8x32xf32>
    %c128_97 = arith.constant 128 : index
    %c0_98 = arith.constant 0 : index
    %337 = vector.load %arg11[%c128_97, %c0_98] : memref<248x32xf32, #tpu.memory_space<vmem>>, vector<8x32xf32>
    tpu.vector_store %arg11[%c128_97, %c0_98], %336 {strides = array<i32>} : memref<248x32xf32, #tpu.memory_space<vmem>>, vector<8x32xf32>,
    %c136 = arith.constant 136 : index
    %c0_99 = arith.constant 0 : index
    %338 = vector.load %arg10[%c136, %c0_99] : memref<248x128xf32, #tpu.memory_space<vmem>>, vector<8x128xf32>
    %cst_100 = arith.constant dense<0.000000e+00> : vector<8x128xf32>
    %339 = tpu.matmul %336, %12, %cst_100 {dimension_numbers = #tpu.dot_dimension_numbers<[1], [0], [0], [1], [0, 0, 1, 1], [], []>} : vector<8x32xf32>, vector<32x128xf32>, vector<8x128xf32> -> vector<8x128xf32>
    %340 = arith.addf %338, %339 : vector<8x128xf32>
    %341 = arith.negf %340 : vector<8x128xf32>
    %342 = math.exp %341 : vector<8x128xf32>
    %cst_101 = arith.constant 1.000000e+00 : f32
    %343 = vector.broadcast %cst_101 : f32 to vector<8x128xf32>
    %344 = arith.addf %343, %342 : vector<8x128xf32>
    %345 = arith.divf %343, %344 : vector<8x128xf32>
    %346 = math.tanh %340 : vector<8x128xf32>
    %347 = vector.extract_strided_slice %345 {offsets = [0, 0], sizes = [8, 32], strides = [1, 1]} : vector<8x128xf32> to vector<8x32xf32>
    %348 = vector.extract_strided_slice %345 {offsets = [0, 32], sizes = [8, 32], strides = [1, 1]} : vector<8x128xf32> to vector<8x32xf32>
    %349 = vector.extract_strided_slice %346 {offsets = [0, 64], sizes = [8, 32], strides = [1, 1]} : vector<8x128xf32> to vector<8x32xf32>
    %350 = vector.extract_strided_slice %345 {offsets = [0, 96], sizes = [8, 32], strides = [1, 1]} : vector<8x128xf32> to vector<8x32xf32>
    %351 = arith.mulf %348, %334 : vector<8x32xf32>
    %352 = arith.mulf %347, %349 : vector<8x32xf32>
    %353 = arith.addf %351, %352 : vector<8x32xf32>
    %354 = math.tanh %353 : vector<8x32xf32>
    %355 = arith.mulf %350, %354 : vector<8x32xf32>
    %c136_102 = arith.constant 136 : index
    %c0_103 = arith.constant 0 : index
    %356 = vector.load %arg11[%c136_102, %c0_103] : memref<248x32xf32, #tpu.memory_space<vmem>>, vector<8x32xf32>
    tpu.vector_store %arg11[%c136_102, %c0_103], %355 {strides = array<i32>} : memref<248x32xf32, #tpu.memory_space<vmem>>, vector<8x32xf32>,
    %c144 = arith.constant 144 : index
    %c0_104 = arith.constant 0 : index
    %357 = vector.load %arg10[%c144, %c0_104] : memref<248x128xf32, #tpu.memory_space<vmem>>, vector<8x128xf32>
    %cst_105 = arith.constant dense<0.000000e+00> : vector<8x128xf32>
    %358 = tpu.matmul %355, %12, %cst_105 {dimension_numbers = #tpu.dot_dimension_numbers<[1], [0], [0], [1], [0, 0, 1, 1], [], []>} : vector<8x32xf32>, vector<32x128xf32>, vector<8x128xf32> -> vector<8x128xf32>
    %359 = arith.addf %357, %358 : vector<8x128xf32>
    %360 = arith.negf %359 : vector<8x128xf32>
    %361 = math.exp %360 : vector<8x128xf32>
    %cst_106 = arith.constant 1.000000e+00 : f32
    %362 = vector.broadcast %cst_106 : f32 to vector<8x128xf32>
    %363 = arith.addf %362, %361 : vector<8x128xf32>
    %364 = arith.divf %362, %363 : vector<8x128xf32>
    %365 = math.tanh %359 : vector<8x128xf32>
    %366 = vector.extract_strided_slice %364 {offsets = [0, 0], sizes = [8, 32], strides = [1, 1]} : vector<8x128xf32> to vector<8x32xf32>
    %367 = vector.extract_strided_slice %364 {offsets = [0, 32], sizes = [8, 32], strides = [1, 1]} : vector<8x128xf32> to vector<8x32xf32>
    %368 = vector.extract_strided_slice %365 {offsets = [0, 64], sizes = [8, 32], strides = [1, 1]} : vector<8x128xf32> to vector<8x32xf32>
    %369 = vector.extract_strided_slice %364 {offsets = [0, 96], sizes = [8, 32], strides = [1, 1]} : vector<8x128xf32> to vector<8x32xf32>
    %370 = arith.mulf %367, %353 : vector<8x32xf32>
    %371 = arith.mulf %366, %368 : vector<8x32xf32>
    %372 = arith.addf %370, %371 : vector<8x32xf32>
    %373 = math.tanh %372 : vector<8x32xf32>
    %374 = arith.mulf %369, %373 : vector<8x32xf32>
    %c144_107 = arith.constant 144 : index
    %c0_108 = arith.constant 0 : index
    %375 = vector.load %arg11[%c144_107, %c0_108] : memref<248x32xf32, #tpu.memory_space<vmem>>, vector<8x32xf32>
    tpu.vector_store %arg11[%c144_107, %c0_108], %374 {strides = array<i32>} : memref<248x32xf32, #tpu.memory_space<vmem>>, vector<8x32xf32>,
    %c152 = arith.constant 152 : index
    %c0_109 = arith.constant 0 : index
    %376 = vector.load %arg10[%c152, %c0_109] : memref<248x128xf32, #tpu.memory_space<vmem>>, vector<8x128xf32>
    %cst_110 = arith.constant dense<0.000000e+00> : vector<8x128xf32>
    %377 = tpu.matmul %374, %12, %cst_110 {dimension_numbers = #tpu.dot_dimension_numbers<[1], [0], [0], [1], [0, 0, 1, 1], [], []>} : vector<8x32xf32>, vector<32x128xf32>, vector<8x128xf32> -> vector<8x128xf32>
    %378 = arith.addf %376, %377 : vector<8x128xf32>
    %379 = arith.negf %378 : vector<8x128xf32>
    %380 = math.exp %379 : vector<8x128xf32>
    %cst_111 = arith.constant 1.000000e+00 : f32
    %381 = vector.broadcast %cst_111 : f32 to vector<8x128xf32>
    %382 = arith.addf %381, %380 : vector<8x128xf32>
    %383 = arith.divf %381, %382 : vector<8x128xf32>
    %384 = math.tanh %378 : vector<8x128xf32>
    %385 = vector.extract_strided_slice %383 {offsets = [0, 0], sizes = [8, 32], strides = [1, 1]} : vector<8x128xf32> to vector<8x32xf32>
    %386 = vector.extract_strided_slice %383 {offsets = [0, 32], sizes = [8, 32], strides = [1, 1]} : vector<8x128xf32> to vector<8x32xf32>
    %387 = vector.extract_strided_slice %384 {offsets = [0, 64], sizes = [8, 32], strides = [1, 1]} : vector<8x128xf32> to vector<8x32xf32>
    %388 = vector.extract_strided_slice %383 {offsets = [0, 96], sizes = [8, 32], strides = [1, 1]} : vector<8x128xf32> to vector<8x32xf32>
    %389 = arith.mulf %386, %372 : vector<8x32xf32>
    %390 = arith.mulf %385, %387 : vector<8x32xf32>
    %391 = arith.addf %389, %390 : vector<8x32xf32>
    %392 = math.tanh %391 : vector<8x32xf32>
    %393 = arith.mulf %388, %392 : vector<8x32xf32>
    %c152_112 = arith.constant 152 : index
    %c0_113 = arith.constant 0 : index
    %394 = vector.load %arg11[%c152_112, %c0_113] : memref<248x32xf32, #tpu.memory_space<vmem>>, vector<8x32xf32>
    tpu.vector_store %arg11[%c152_112, %c0_113], %393 {strides = array<i32>} : memref<248x32xf32, #tpu.memory_space<vmem>>, vector<8x32xf32>,
    %c160 = arith.constant 160 : index
    %c0_114 = arith.constant 0 : index
    %395 = vector.load %arg10[%c160, %c0_114] : memref<248x128xf32, #tpu.memory_space<vmem>>, vector<8x128xf32>
    %cst_115 = arith.constant dense<0.000000e+00> : vector<8x128xf32>
    %396 = tpu.matmul %393, %12, %cst_115 {dimension_numbers = #tpu.dot_dimension_numbers<[1], [0], [0], [1], [0, 0, 1, 1], [], []>} : vector<8x32xf32>, vector<32x128xf32>, vector<8x128xf32> -> vector<8x128xf32>
    %397 = arith.addf %395, %396 : vector<8x128xf32>
    %398 = arith.negf %397 : vector<8x128xf32>
    %399 = math.exp %398 : vector<8x128xf32>
    %cst_116 = arith.constant 1.000000e+00 : f32
    %400 = vector.broadcast %cst_116 : f32 to vector<8x128xf32>
    %401 = arith.addf %400, %399 : vector<8x128xf32>
    %402 = arith.divf %400, %401 : vector<8x128xf32>
    %403 = math.tanh %397 : vector<8x128xf32>
    %404 = vector.extract_strided_slice %402 {offsets = [0, 0], sizes = [8, 32], strides = [1, 1]} : vector<8x128xf32> to vector<8x32xf32>
    %405 = vector.extract_strided_slice %402 {offsets = [0, 32], sizes = [8, 32], strides = [1, 1]} : vector<8x128xf32> to vector<8x32xf32>
    %406 = vector.extract_strided_slice %403 {offsets = [0, 64], sizes = [8, 32], strides = [1, 1]} : vector<8x128xf32> to vector<8x32xf32>
    %407 = vector.extract_strided_slice %402 {offsets = [0, 96], sizes = [8, 32], strides = [1, 1]} : vector<8x128xf32> to vector<8x32xf32>
    %408 = arith.mulf %405, %391 : vector<8x32xf32>
    %409 = arith.mulf %404, %406 : vector<8x32xf32>
    %410 = arith.addf %408, %409 : vector<8x32xf32>
    %411 = math.tanh %410 : vector<8x32xf32>
    %412 = arith.mulf %407, %411 : vector<8x32xf32>
    %c160_117 = arith.constant 160 : index
    %c0_118 = arith.constant 0 : index
    %413 = vector.load %arg11[%c160_117, %c0_118] : memref<248x32xf32, #tpu.memory_space<vmem>>, vector<8x32xf32>
    tpu.vector_store %arg11[%c160_117, %c0_118], %412 {strides = array<i32>} : memref<248x32xf32, #tpu.memory_space<vmem>>, vector<8x32xf32>,
    %c168 = arith.constant 168 : index
    %c0_119 = arith.constant 0 : index
    %414 = vector.load %arg10[%c168, %c0_119] : memref<248x128xf32, #tpu.memory_space<vmem>>, vector<8x128xf32>
    %cst_120 = arith.constant dense<0.000000e+00> : vector<8x128xf32>
    %415 = tpu.matmul %412, %12, %cst_120 {dimension_numbers = #tpu.dot_dimension_numbers<[1], [0], [0], [1], [0, 0, 1, 1], [], []>} : vector<8x32xf32>, vector<32x128xf32>, vector<8x128xf32> -> vector<8x128xf32>
    %416 = arith.addf %414, %415 : vector<8x128xf32>
    %417 = arith.negf %416 : vector<8x128xf32>
    %418 = math.exp %417 : vector<8x128xf32>
    %cst_121 = arith.constant 1.000000e+00 : f32
    %419 = vector.broadcast %cst_121 : f32 to vector<8x128xf32>
    %420 = arith.addf %419, %418 : vector<8x128xf32>
    %421 = arith.divf %419, %420 : vector<8x128xf32>
    %422 = math.tanh %416 : vector<8x128xf32>
    %423 = vector.extract_strided_slice %421 {offsets = [0, 0], sizes = [8, 32], strides = [1, 1]} : vector<8x128xf32> to vector<8x32xf32>
    %424 = vector.extract_strided_slice %421 {offsets = [0, 32], sizes = [8, 32], strides = [1, 1]} : vector<8x128xf32> to vector<8x32xf32>
    %425 = vector.extract_strided_slice %422 {offsets = [0, 64], sizes = [8, 32], strides = [1, 1]} : vector<8x128xf32> to vector<8x32xf32>
    %426 = vector.extract_strided_slice %421 {offsets = [0, 96], sizes = [8, 32], strides = [1, 1]} : vector<8x128xf32> to vector<8x32xf32>
    %427 = arith.mulf %424, %410 : vector<8x32xf32>
    %428 = arith.mulf %423, %425 : vector<8x32xf32>
    %429 = arith.addf %427, %428 : vector<8x32xf32>
    %430 = math.tanh %429 : vector<8x32xf32>
    %431 = arith.mulf %426, %430 : vector<8x32xf32>
    %c168_122 = arith.constant 168 : index
    %c0_123 = arith.constant 0 : index
    %432 = vector.load %arg11[%c168_122, %c0_123] : memref<248x32xf32, #tpu.memory_space<vmem>>, vector<8x32xf32>
    tpu.vector_store %arg11[%c168_122, %c0_123], %431 {strides = array<i32>} : memref<248x32xf32, #tpu.memory_space<vmem>>, vector<8x32xf32>,
    %c176 = arith.constant 176 : index
    %c0_124 = arith.constant 0 : index
    %433 = vector.load %arg10[%c176, %c0_124] : memref<248x128xf32, #tpu.memory_space<vmem>>, vector<8x128xf32>
    %cst_125 = arith.constant dense<0.000000e+00> : vector<8x128xf32>
    %434 = tpu.matmul %431, %12, %cst_125 {dimension_numbers = #tpu.dot_dimension_numbers<[1], [0], [0], [1], [0, 0, 1, 1], [], []>} : vector<8x32xf32>, vector<32x128xf32>, vector<8x128xf32> -> vector<8x128xf32>
    %435 = arith.addf %433, %434 : vector<8x128xf32>
    %436 = arith.negf %435 : vector<8x128xf32>
    %437 = math.exp %436 : vector<8x128xf32>
    %cst_126 = arith.constant 1.000000e+00 : f32
    %438 = vector.broadcast %cst_126 : f32 to vector<8x128xf32>
    %439 = arith.addf %438, %437 : vector<8x128xf32>
    %440 = arith.divf %438, %439 : vector<8x128xf32>
    %441 = math.tanh %435 : vector<8x128xf32>
    %442 = vector.extract_strided_slice %440 {offsets = [0, 0], sizes = [8, 32], strides = [1, 1]} : vector<8x128xf32> to vector<8x32xf32>
    %443 = vector.extract_strided_slice %440 {offsets = [0, 32], sizes = [8, 32], strides = [1, 1]} : vector<8x128xf32> to vector<8x32xf32>
    %444 = vector.extract_strided_slice %441 {offsets = [0, 64], sizes = [8, 32], strides = [1, 1]} : vector<8x128xf32> to vector<8x32xf32>
    %445 = vector.extract_strided_slice %440 {offsets = [0, 96], sizes = [8, 32], strides = [1, 1]} : vector<8x128xf32> to vector<8x32xf32>
    %446 = arith.mulf %443, %429 : vector<8x32xf32>
    %447 = arith.mulf %442, %444 : vector<8x32xf32>
    %448 = arith.addf %446, %447 : vector<8x32xf32>
    %449 = math.tanh %448 : vector<8x32xf32>
    %450 = arith.mulf %445, %449 : vector<8x32xf32>
    %c176_127 = arith.constant 176 : index
    %c0_128 = arith.constant 0 : index
    %451 = vector.load %arg11[%c176_127, %c0_128] : memref<248x32xf32, #tpu.memory_space<vmem>>, vector<8x32xf32>
    tpu.vector_store %arg11[%c176_127, %c0_128], %450 {strides = array<i32>} : memref<248x32xf32, #tpu.memory_space<vmem>>, vector<8x32xf32>,
    %c184 = arith.constant 184 : index
    %c0_129 = arith.constant 0 : index
    %452 = vector.load %arg10[%c184, %c0_129] : memref<248x128xf32, #tpu.memory_space<vmem>>, vector<8x128xf32>
    %cst_130 = arith.constant dense<0.000000e+00> : vector<8x128xf32>
    %453 = tpu.matmul %450, %12, %cst_130 {dimension_numbers = #tpu.dot_dimension_numbers<[1], [0], [0], [1], [0, 0, 1, 1], [], []>} : vector<8x32xf32>, vector<32x128xf32>, vector<8x128xf32> -> vector<8x128xf32>
    %454 = arith.addf %452, %453 : vector<8x128xf32>
    %455 = arith.negf %454 : vector<8x128xf32>
    %456 = math.exp %455 : vector<8x128xf32>
    %cst_131 = arith.constant 1.000000e+00 : f32
    %457 = vector.broadcast %cst_131 : f32 to vector<8x128xf32>
    %458 = arith.addf %457, %456 : vector<8x128xf32>
    %459 = arith.divf %457, %458 : vector<8x128xf32>
    %460 = math.tanh %454 : vector<8x128xf32>
    %461 = vector.extract_strided_slice %459 {offsets = [0, 0], sizes = [8, 32], strides = [1, 1]} : vector<8x128xf32> to vector<8x32xf32>
    %462 = vector.extract_strided_slice %459 {offsets = [0, 32], sizes = [8, 32], strides = [1, 1]} : vector<8x128xf32> to vector<8x32xf32>
    %463 = vector.extract_strided_slice %460 {offsets = [0, 64], sizes = [8, 32], strides = [1, 1]} : vector<8x128xf32> to vector<8x32xf32>
    %464 = vector.extract_strided_slice %459 {offsets = [0, 96], sizes = [8, 32], strides = [1, 1]} : vector<8x128xf32> to vector<8x32xf32>
    %465 = arith.mulf %462, %448 : vector<8x32xf32>
    %466 = arith.mulf %461, %463 : vector<8x32xf32>
    %467 = arith.addf %465, %466 : vector<8x32xf32>
    %468 = math.tanh %467 : vector<8x32xf32>
    %469 = arith.mulf %464, %468 : vector<8x32xf32>
    %c184_132 = arith.constant 184 : index
    %c0_133 = arith.constant 0 : index
    %470 = vector.load %arg11[%c184_132, %c0_133] : memref<248x32xf32, #tpu.memory_space<vmem>>, vector<8x32xf32>
    tpu.vector_store %arg11[%c184_132, %c0_133], %469 {strides = array<i32>} : memref<248x32xf32, #tpu.memory_space<vmem>>, vector<8x32xf32>,
    %c192 = arith.constant 192 : index
    %c0_134 = arith.constant 0 : index
    %471 = vector.load %arg10[%c192, %c0_134] : memref<248x128xf32, #tpu.memory_space<vmem>>, vector<8x128xf32>
    %cst_135 = arith.constant dense<0.000000e+00> : vector<8x128xf32>
    %472 = tpu.matmul %469, %12, %cst_135 {dimension_numbers = #tpu.dot_dimension_numbers<[1], [0], [0], [1], [0, 0, 1, 1], [], []>} : vector<8x32xf32>, vector<32x128xf32>, vector<8x128xf32> -> vector<8x128xf32>
    %473 = arith.addf %471, %472 : vector<8x128xf32>
    %474 = arith.negf %473 : vector<8x128xf32>
    %475 = math.exp %474 : vector<8x128xf32>
    %cst_136 = arith.constant 1.000000e+00 : f32
    %476 = vector.broadcast %cst_136 : f32 to vector<8x128xf32>
    %477 = arith.addf %476, %475 : vector<8x128xf32>
    %478 = arith.divf %476, %477 : vector<8x128xf32>
    %479 = math.tanh %473 : vector<8x128xf32>
    %480 = vector.extract_strided_slice %478 {offsets = [0, 0], sizes = [8, 32], strides = [1, 1]} : vector<8x128xf32> to vector<8x32xf32>
    %481 = vector.extract_strided_slice %478 {offsets = [0, 32], sizes = [8, 32], strides = [1, 1]} : vector<8x128xf32> to vector<8x32xf32>
    %482 = vector.extract_strided_slice %479 {offsets = [0, 64], sizes = [8, 32], strides = [1, 1]} : vector<8x128xf32> to vector<8x32xf32>
    %483 = vector.extract_strided_slice %478 {offsets = [0, 96], sizes = [8, 32], strides = [1, 1]} : vector<8x128xf32> to vector<8x32xf32>
    %484 = arith.mulf %481, %467 : vector<8x32xf32>
    %485 = arith.mulf %480, %482 : vector<8x32xf32>
    %486 = arith.addf %484, %485 : vector<8x32xf32>
    %487 = math.tanh %486 : vector<8x32xf32>
    %488 = arith.mulf %483, %487 : vector<8x32xf32>
    %c192_137 = arith.constant 192 : index
    %c0_138 = arith.constant 0 : index
    %489 = vector.load %arg11[%c192_137, %c0_138] : memref<248x32xf32, #tpu.memory_space<vmem>>, vector<8x32xf32>
    tpu.vector_store %arg11[%c192_137, %c0_138], %488 {strides = array<i32>} : memref<248x32xf32, #tpu.memory_space<vmem>>, vector<8x32xf32>,
    %c200 = arith.constant 200 : index
    %c0_139 = arith.constant 0 : index
    %490 = vector.load %arg10[%c200, %c0_139] : memref<248x128xf32, #tpu.memory_space<vmem>>, vector<8x128xf32>
    %cst_140 = arith.constant dense<0.000000e+00> : vector<8x128xf32>
    %491 = tpu.matmul %488, %12, %cst_140 {dimension_numbers = #tpu.dot_dimension_numbers<[1], [0], [0], [1], [0, 0, 1, 1], [], []>} : vector<8x32xf32>, vector<32x128xf32>, vector<8x128xf32> -> vector<8x128xf32>
    %492 = arith.addf %490, %491 : vector<8x128xf32>
    %493 = arith.negf %492 : vector<8x128xf32>
    %494 = math.exp %493 : vector<8x128xf32>
    %cst_141 = arith.constant 1.000000e+00 : f32
    %495 = vector.broadcast %cst_141 : f32 to vector<8x128xf32>
    %496 = arith.addf %495, %494 : vector<8x128xf32>
    %497 = arith.divf %495, %496 : vector<8x128xf32>
    %498 = math.tanh %492 : vector<8x128xf32>
    %499 = vector.extract_strided_slice %497 {offsets = [0, 0], sizes = [8, 32], strides = [1, 1]} : vector<8x128xf32> to vector<8x32xf32>
    %500 = vector.extract_strided_slice %497 {offsets = [0, 32], sizes = [8, 32], strides = [1, 1]} : vector<8x128xf32> to vector<8x32xf32>
    %501 = vector.extract_strided_slice %498 {offsets = [0, 64], sizes = [8, 32], strides = [1, 1]} : vector<8x128xf32> to vector<8x32xf32>
    %502 = vector.extract_strided_slice %497 {offsets = [0, 96], sizes = [8, 32], strides = [1, 1]} : vector<8x128xf32> to vector<8x32xf32>
    %503 = arith.mulf %500, %486 : vector<8x32xf32>
    %504 = arith.mulf %499, %501 : vector<8x32xf32>
    %505 = arith.addf %503, %504 : vector<8x32xf32>
    %506 = math.tanh %505 : vector<8x32xf32>
    %507 = arith.mulf %502, %506 : vector<8x32xf32>
    %c200_142 = arith.constant 200 : index
    %c0_143 = arith.constant 0 : index
    %508 = vector.load %arg11[%c200_142, %c0_143] : memref<248x32xf32, #tpu.memory_space<vmem>>, vector<8x32xf32>
    tpu.vector_store %arg11[%c200_142, %c0_143], %507 {strides = array<i32>} : memref<248x32xf32, #tpu.memory_space<vmem>>, vector<8x32xf32>,
    %c208 = arith.constant 208 : index
    %c0_144 = arith.constant 0 : index
    %509 = vector.load %arg10[%c208, %c0_144] : memref<248x128xf32, #tpu.memory_space<vmem>>, vector<8x128xf32>
    %cst_145 = arith.constant dense<0.000000e+00> : vector<8x128xf32>
    %510 = tpu.matmul %507, %12, %cst_145 {dimension_numbers = #tpu.dot_dimension_numbers<[1], [0], [0], [1], [0, 0, 1, 1], [], []>} : vector<8x32xf32>, vector<32x128xf32>, vector<8x128xf32> -> vector<8x128xf32>
    %511 = arith.addf %509, %510 : vector<8x128xf32>
    %512 = arith.negf %511 : vector<8x128xf32>
    %513 = math.exp %512 : vector<8x128xf32>
    %cst_146 = arith.constant 1.000000e+00 : f32
    %514 = vector.broadcast %cst_146 : f32 to vector<8x128xf32>
    %515 = arith.addf %514, %513 : vector<8x128xf32>
    %516 = arith.divf %514, %515 : vector<8x128xf32>
    %517 = math.tanh %511 : vector<8x128xf32>
    %518 = vector.extract_strided_slice %516 {offsets = [0, 0], sizes = [8, 32], strides = [1, 1]} : vector<8x128xf32> to vector<8x32xf32>
    %519 = vector.extract_strided_slice %516 {offsets = [0, 32], sizes = [8, 32], strides = [1, 1]} : vector<8x128xf32> to vector<8x32xf32>
    %520 = vector.extract_strided_slice %517 {offsets = [0, 64], sizes = [8, 32], strides = [1, 1]} : vector<8x128xf32> to vector<8x32xf32>
    %521 = vector.extract_strided_slice %516 {offsets = [0, 96], sizes = [8, 32], strides = [1, 1]} : vector<8x128xf32> to vector<8x32xf32>
    %522 = arith.mulf %519, %505 : vector<8x32xf32>
    %523 = arith.mulf %518, %520 : vector<8x32xf32>
    %524 = arith.addf %522, %523 : vector<8x32xf32>
    %525 = math.tanh %524 : vector<8x32xf32>
    %526 = arith.mulf %521, %525 : vector<8x32xf32>
    %c208_147 = arith.constant 208 : index
    %c0_148 = arith.constant 0 : index
    %527 = vector.load %arg11[%c208_147, %c0_148] : memref<248x32xf32, #tpu.memory_space<vmem>>, vector<8x32xf32>
    tpu.vector_store %arg11[%c208_147, %c0_148], %526 {strides = array<i32>} : memref<248x32xf32, #tpu.memory_space<vmem>>, vector<8x32xf32>,
    %c216 = arith.constant 216 : index
    %c0_149 = arith.constant 0 : index
    %528 = vector.load %arg10[%c216, %c0_149] : memref<248x128xf32, #tpu.memory_space<vmem>>, vector<8x128xf32>
    %cst_150 = arith.constant dense<0.000000e+00> : vector<8x128xf32>
    %529 = tpu.matmul %526, %12, %cst_150 {dimension_numbers = #tpu.dot_dimension_numbers<[1], [0], [0], [1], [0, 0, 1, 1], [], []>} : vector<8x32xf32>, vector<32x128xf32>, vector<8x128xf32> -> vector<8x128xf32>
    %530 = arith.addf %528, %529 : vector<8x128xf32>
    %531 = arith.negf %530 : vector<8x128xf32>
    %532 = math.exp %531 : vector<8x128xf32>
    %cst_151 = arith.constant 1.000000e+00 : f32
    %533 = vector.broadcast %cst_151 : f32 to vector<8x128xf32>
    %534 = arith.addf %533, %532 : vector<8x128xf32>
    %535 = arith.divf %533, %534 : vector<8x128xf32>
    %536 = math.tanh %530 : vector<8x128xf32>
    %537 = vector.extract_strided_slice %535 {offsets = [0, 0], sizes = [8, 32], strides = [1, 1]} : vector<8x128xf32> to vector<8x32xf32>
    %538 = vector.extract_strided_slice %535 {offsets = [0, 32], sizes = [8, 32], strides = [1, 1]} : vector<8x128xf32> to vector<8x32xf32>
    %539 = vector.extract_strided_slice %536 {offsets = [0, 64], sizes = [8, 32], strides = [1, 1]} : vector<8x128xf32> to vector<8x32xf32>
    %540 = vector.extract_strided_slice %535 {offsets = [0, 96], sizes = [8, 32], strides = [1, 1]} : vector<8x128xf32> to vector<8x32xf32>
    %541 = arith.mulf %538, %524 : vector<8x32xf32>
    %542 = arith.mulf %537, %539 : vector<8x32xf32>
    %543 = arith.addf %541, %542 : vector<8x32xf32>
    %544 = math.tanh %543 : vector<8x32xf32>
    %545 = arith.mulf %540, %544 : vector<8x32xf32>
    %c216_152 = arith.constant 216 : index
    %c0_153 = arith.constant 0 : index
    %546 = vector.load %arg11[%c216_152, %c0_153] : memref<248x32xf32, #tpu.memory_space<vmem>>, vector<8x32xf32>
    tpu.vector_store %arg11[%c216_152, %c0_153], %545 {strides = array<i32>} : memref<248x32xf32, #tpu.memory_space<vmem>>, vector<8x32xf32>,
    %c224 = arith.constant 224 : index
    %c0_154 = arith.constant 0 : index
    %547 = vector.load %arg10[%c224, %c0_154] : memref<248x128xf32, #tpu.memory_space<vmem>>, vector<8x128xf32>
    %cst_155 = arith.constant dense<0.000000e+00> : vector<8x128xf32>
    %548 = tpu.matmul %545, %12, %cst_155 {dimension_numbers = #tpu.dot_dimension_numbers<[1], [0], [0], [1], [0, 0, 1, 1], [], []>} : vector<8x32xf32>, vector<32x128xf32>, vector<8x128xf32> -> vector<8x128xf32>
    %549 = arith.addf %547, %548 : vector<8x128xf32>
    %550 = arith.negf %549 : vector<8x128xf32>
    %551 = math.exp %550 : vector<8x128xf32>
    %cst_156 = arith.constant 1.000000e+00 : f32
    %552 = vector.broadcast %cst_156 : f32 to vector<8x128xf32>
    %553 = arith.addf %552, %551 : vector<8x128xf32>
    %554 = arith.divf %552, %553 : vector<8x128xf32>
    %555 = math.tanh %549 : vector<8x128xf32>
    %556 = vector.extract_strided_slice %554 {offsets = [0, 0], sizes = [8, 32], strides = [1, 1]} : vector<8x128xf32> to vector<8x32xf32>
    %557 = vector.extract_strided_slice %554 {offsets = [0, 32], sizes = [8, 32], strides = [1, 1]} : vector<8x128xf32> to vector<8x32xf32>
    %558 = vector.extract_strided_slice %555 {offsets = [0, 64], sizes = [8, 32], strides = [1, 1]} : vector<8x128xf32> to vector<8x32xf32>
    %559 = vector.extract_strided_slice %554 {offsets = [0, 96], sizes = [8, 32], strides = [1, 1]} : vector<8x128xf32> to vector<8x32xf32>
    %560 = arith.mulf %557, %543 : vector<8x32xf32>
    %561 = arith.mulf %556, %558 : vector<8x32xf32>
    %562 = arith.addf %560, %561 : vector<8x32xf32>
    %563 = math.tanh %562 : vector<8x32xf32>
    %564 = arith.mulf %559, %563 : vector<8x32xf32>
    %c224_157 = arith.constant 224 : index
    %c0_158 = arith.constant 0 : index
    %565 = vector.load %arg11[%c224_157, %c0_158] : memref<248x32xf32, #tpu.memory_space<vmem>>, vector<8x32xf32>
    tpu.vector_store %arg11[%c224_157, %c0_158], %564 {strides = array<i32>} : memref<248x32xf32, #tpu.memory_space<vmem>>, vector<8x32xf32>,
    %c232 = arith.constant 232 : index
    %c0_159 = arith.constant 0 : index
    %566 = vector.load %arg10[%c232, %c0_159] : memref<248x128xf32, #tpu.memory_space<vmem>>, vector<8x128xf32>
    %cst_160 = arith.constant dense<0.000000e+00> : vector<8x128xf32>
    %567 = tpu.matmul %564, %12, %cst_160 {dimension_numbers = #tpu.dot_dimension_numbers<[1], [0], [0], [1], [0, 0, 1, 1], [], []>} : vector<8x32xf32>, vector<32x128xf32>, vector<8x128xf32> -> vector<8x128xf32>
    %568 = arith.addf %566, %567 : vector<8x128xf32>
    %569 = arith.negf %568 : vector<8x128xf32>
    %570 = math.exp %569 : vector<8x128xf32>
    %cst_161 = arith.constant 1.000000e+00 : f32
    %571 = vector.broadcast %cst_161 : f32 to vector<8x128xf32>
    %572 = arith.addf %571, %570 : vector<8x128xf32>
    %573 = arith.divf %571, %572 : vector<8x128xf32>
    %574 = math.tanh %568 : vector<8x128xf32>
    %575 = vector.extract_strided_slice %573 {offsets = [0, 0], sizes = [8, 32], strides = [1, 1]} : vector<8x128xf32> to vector<8x32xf32>
    %576 = vector.extract_strided_slice %573 {offsets = [0, 32], sizes = [8, 32], strides = [1, 1]} : vector<8x128xf32> to vector<8x32xf32>
    %577 = vector.extract_strided_slice %574 {offsets = [0, 64], sizes = [8, 32], strides = [1, 1]} : vector<8x128xf32> to vector<8x32xf32>
    %578 = vector.extract_strided_slice %573 {offsets = [0, 96], sizes = [8, 32], strides = [1, 1]} : vector<8x128xf32> to vector<8x32xf32>
    %579 = arith.mulf %576, %562 : vector<8x32xf32>
    %580 = arith.mulf %575, %577 : vector<8x32xf32>
    %581 = arith.addf %579, %580 : vector<8x32xf32>
    %582 = math.tanh %581 : vector<8x32xf32>
    %583 = arith.mulf %578, %582 : vector<8x32xf32>
    %c232_162 = arith.constant 232 : index
    %c0_163 = arith.constant 0 : index
    %584 = vector.load %arg11[%c232_162, %c0_163] : memref<248x32xf32, #tpu.memory_space<vmem>>, vector<8x32xf32>
    tpu.vector_store %arg11[%c232_162, %c0_163], %583 {strides = array<i32>} : memref<248x32xf32, #tpu.memory_space<vmem>>, vector<8x32xf32>,
    %c240 = arith.constant 240 : index
    %c0_164 = arith.constant 0 : index
    %585 = vector.load %arg10[%c240, %c0_164] : memref<248x128xf32, #tpu.memory_space<vmem>>, vector<8x128xf32>
    %cst_165 = arith.constant dense<0.000000e+00> : vector<8x128xf32>
    %586 = tpu.matmul %583, %12, %cst_165 {dimension_numbers = #tpu.dot_dimension_numbers<[1], [0], [0], [1], [0, 0, 1, 1], [], []>} : vector<8x32xf32>, vector<32x128xf32>, vector<8x128xf32> -> vector<8x128xf32>
    %587 = arith.addf %585, %586 : vector<8x128xf32>
    %588 = arith.negf %587 : vector<8x128xf32>
    %589 = math.exp %588 : vector<8x128xf32>
    %cst_166 = arith.constant 1.000000e+00 : f32
    %590 = vector.broadcast %cst_166 : f32 to vector<8x128xf32>
    %591 = arith.addf %590, %589 : vector<8x128xf32>
    %592 = arith.divf %590, %591 : vector<8x128xf32>
    %593 = math.tanh %587 : vector<8x128xf32>
    %594 = vector.extract_strided_slice %592 {offsets = [0, 0], sizes = [8, 32], strides = [1, 1]} : vector<8x128xf32> to vector<8x32xf32>
    %595 = vector.extract_strided_slice %592 {offsets = [0, 32], sizes = [8, 32], strides = [1, 1]} : vector<8x128xf32> to vector<8x32xf32>
    %596 = vector.extract_strided_slice %593 {offsets = [0, 64], sizes = [8, 32], strides = [1, 1]} : vector<8x128xf32> to vector<8x32xf32>
    %597 = vector.extract_strided_slice %592 {offsets = [0, 96], sizes = [8, 32], strides = [1, 1]} : vector<8x128xf32> to vector<8x32xf32>
    %598 = arith.mulf %595, %581 : vector<8x32xf32>
    %599 = arith.mulf %594, %596 : vector<8x32xf32>
    %600 = arith.addf %598, %599 : vector<8x32xf32>
    %601 = math.tanh %600 : vector<8x32xf32>
    %602 = arith.mulf %597, %601 : vector<8x32xf32>
    %c240_167 = arith.constant 240 : index
    %c0_168 = arith.constant 0 : index
    %603 = vector.load %arg11[%c240_167, %c0_168] : memref<248x32xf32, #tpu.memory_space<vmem>>, vector<8x32xf32>
    tpu.vector_store %arg11[%c240_167, %c0_168], %602 {strides = array<i32>} : memref<248x32xf32, #tpu.memory_space<vmem>>, vector<8x32xf32>,
    %c0_169 = arith.constant 0 : index
    %c0_170 = arith.constant 0 : index
    %604 = vector.load %arg11[%c0_169, %c0_170] : memref<248x32xf32, #tpu.memory_space<vmem>>, vector<248x32xf32>
    %c0_171 = arith.constant 0 : index
    %c0_172 = arith.constant 0 : index
    %605 = vector.load %arg5[%c0_171, %c0_172] : memref<32x128xf32, #tpu.memory_space<vmem>>, vector<32x128xf32>
    %cst_173 = arith.constant dense<0.000000e+00> : vector<248x128xf32>
    %606 = tpu.matmul %604, %605, %cst_173 {dimension_numbers = #tpu.dot_dimension_numbers<[1], [0], [0], [1], [0, 0, 1, 1], [], []>} : vector<248x32xf32>, vector<32x128xf32>, vector<248x128xf32> -> vector<248x128xf32>
    %c0_174 = arith.constant 0 : index
    %c0_175 = arith.constant 0 : index
    %607 = vector.load %arg6[%c0_174, %c0_175] : memref<1x128xf32, #tpu.memory_space<vmem>>, vector<1x128xf32>
    %608 = vector.broadcast %607 : vector<1x128xf32> to vector<248x128xf32>
    %609 = arith.addf %606, %608 : vector<248x128xf32>
    %610 = tpu.iota {dimensions = array<i32: 0>} : vector<248x1xi32>
    %c0_176 = arith.constant 0 : index
    %611 = memref.load %arg0[%c0_176] : memref<1xi32, #tpu.memory_space<smem>>
    %c8_i32 = arith.constant 8 : i32
    %612 = arith.muli %611, %c8_i32 : i32
    %613 = vector.broadcast %612 : i32 to vector<248x1xi32>
    %614 = arith.cmpi slt, %610, %613 : vector<248x1xi32>
    %cst_177 = arith.constant 0.000000e+00 : f32
    %615 = vector.shape_cast %614 : vector<248x1xi1> to vector<248x1xi1>
    %616 = vector.broadcast %615 : vector<248x1xi1> to vector<248x128xi1>
    %617 = vector.broadcast %cst_177 : f32 to vector<248x128xf32>
    %618 = arith.select %616, %609, %617 : vector<248x128xi1>, vector<248x128xf32>
    %c0_178 = arith.constant 0 : index
    %c0_179 = arith.constant 0 : index
    %619 = vector.load %arg9[%c0_178, %c0_179] : memref<248x128xf32, #tpu.memory_space<vmem>>, vector<248x128xf32>
    tpu.vector_store %arg9[%c0_178, %c0_179], %618 {strides = array<i32>} : memref<248x128xf32, #tpu.memory_space<vmem>>, vector<248x128xf32>,
    return
  }
}

</mosaic_0001>

<bundles_post_ra>
// kernel: tpu_custom_call.1
= control target key start
LH: loop header
LB: loop body
LE: loop exit
PB: predicated region body
PF: predicated region fallthrough
CT: control target
= control target key end

     0   :  { %v3399_v2 = vmov 0   ;;  %s4274_s0 = inlined_call_operand.<no memory space> [shape: s32[1], index: 0, kind: input, shape index: {}]   ;;  %s4275_s1 = inlined_call_operand.vmem [shape: s32[248,1], index: 1, kind: input, shape index: {}]   ;;  %s4276_s2 = inlined_call_operand.vmem [shape: f32[128,128], index: 2, kind: input, shape index: {}]   ;;  %s4277_s3 = inlined_call_operand.vmem [shape: f32[32,128], index: 3, kind: input, shape index: {}]   ;;  %s4278_s4 = inlined_call_operand.vmem [shape: f32[1,128], index: 4, kind: input, shape index: {}]   ;;  %s4279_s5 = inlined_call_operand.vmem [shape: f32[32,128], index: 5, kind: input, shape index: {}]   ;;  %s4280_s6 = inlined_call_operand.vmem [shape: f32[1,128], index: 6, kind: input, shape index: {}]   ;;  %s4281_s7 = inlined_call_operand.vmem [shape: f32[8,32], index: 7, kind: input, shape index: {}]   ;;  %s4282_s8 = inlined_call_operand.vmem [shape: f32[8,32], index: 8, kind: input, shape index: {}]   ;;  %s4283_s9 = inlined_call_operand.hbm [shape: f32[248,128], index: 9, kind: output, shape index: {}]  }
   0x1   :  { %v60_v0 = vld [vmem:[%s4275_s1 + $0xc0] sm:$0xff]  ;;  %v58_v1 = vld [vmem:[%s4275_s1 + $0xb0] sm:$0xff]  ;;  %3110 = vset.pattern.permute.xlu1 %v3399_v2  ;;  %3109 = vset.pattern.permute.xlu0 %v3399_v2  ;;  %v268_v4 = vld [vmem:[%s4276_s2 + $0x78] sm:$0xff] }
   0x2   :  { %140 = vperm.xlu1 %3110, %v60_v0   ;;  %134 = vperm.xlu0 %3109, %v58_v1   ;;  %v62_v3 = vld [vmem:[%s4275_s1 + $0xd0] sm:$0xff]  ;;  %v266_v6 = vld [vmem:[%s4276_s2 + $0x68] sm:$0xff]  ;;  %v59_v8 = vld [vmem:[%s4275_s1 + $0xb8] sm:$0xff] }
   0x3   :  { %3111 = vset.pattern.permute.xlu2 %v3399_v2  ;;  %v267_v5 = vld [vmem:[%s4276_s2 + $0x70] sm:$0xff]  ;;  %3078 = vmatpush.msra.mxu1 %v268_v4  ;;  %v61_v7 = vld [vmem:[%s4275_s1 + $0xc8] sm:$0xff]  ;;  %v265_v9 = vld [vmem:[%s4276_s2 + $0x60] sm:$0xff] }
   0x4   :  { %146 = vperm.xlu2 %3111, %v62_v3   ;;  %273 = vmatpush.msra.mxu0 %v268_v4  ;;  %v63_v10 = vld [vmem:[%s4275_s1 + $0xd8] sm:$0xff] }
   0x5   :  { %3079 = vmatpush.msra.mxu1 %v267_v5 }
   0x6   :  { %274 = vmatpush.msra.mxu0 %v267_v5 }
   0x7   :  { %3080 = vmatpush.msra.mxu1 %v266_v6 }
   0x8   :  { %275 = vmatpush.msra.mxu0 %v266_v6 }
   0x9   :  { %15 = vsyncpa [#allocation6], 0  ;;  %v264_v11 = vld [vmem:[%s4276_s2 + $0x58] sm:$0xff]  ;;  %3081 = vmatpush.msra.mxu1 %v265_v9  ;;  %v263_v12 = vld [vmem:[%s4276_s2 + $0x50] sm:$0xff]  ;;  %v34_v29 = vlaneseq  ;;  %v3400_v32 = vmov 1.0   ;;  %vm421_vm10 = vcmask 261120  }
   0xa   :  { %143 = vperm.xlu1 %3110, %v61_v7   ;;  %137 = vperm.xlu0 %3109, %v59_v8   ;;  %v262_v13 = vld [vmem:[%s4276_s2 + $0x48] sm:$0xff]  ;;  %v64_v15 = vld [vmem:[%s4275_s1 + $0xe0] sm:$0xff]  ;;  %v66_v17 = vld [vmem:[%s4275_s1 + $0xf0] sm:$0xff]  ;;  %s3401_s30 = smov 32   ;;  %s3402_s10 = smov 64  }
   0xb   :  { %276 = vmatpush.msra.mxu0 %v265_v9  ;;  %3082 = vmatpush.msra.mxu1 %v264_v11  ;;  %v65_v14 = vld [vmem:[%s4275_s1 + $0xe8] sm:$0xff]  ;;  %v261_v16 = vld [vmem:[%s4276_s2 + $0x40] sm:$0xff]  ;;  %v260_v18 = vld [vmem:[%s4276_s2 + $0x38] sm:$0xff]  ;;  %v3551_v30 = vand.u32 127, %v34_v29  ;;  %s3077_s14 = sshll.u32 %s4274_s0, 3  ;;  %s2910_s20 = sshll.u32 %s4283_s9, 4  ;;  %s2911_s20 = int_to_ptr.hbm [resolvable:$true] %s2910_s20 }
   0xc   :  { %149 = vperm.xlu2 %3111, %v63_v10   ;;  %v259_v19 = vld [vmem:[%s4276_s2 + $0x30] sm:$0xff]  ;;  %v258_v20 = vld [vmem:[%s4276_s2 + $0x28] sm:$0xff]  ;;  %v36_v21 = vld [vmem:[%s4275_s1] sm:$0xff] }
   0xd   :  { %277 = vmatpush.msra.mxu0 %v264_v11  ;;  %3083 = vmatpush.msra.mxu1 %v263_v12  ;;  %v257_v22 = vld [vmem:[%s4276_s2 + $0x20] sm:$0xff]  ;;  %v256_v23 = vld [vmem:[%s4276_s2 + $0x18] sm:$0xff]  ;;  %v255_v24 = vld [vmem:[%s4276_s2 + $0x10] sm:$0xff] }
   0xe   :  { %v254_v25 = vld [vmem:[%s4276_s2 + $0x8] sm:$0xff]  ;;  %v253_v26 = vld [vmem:[%s4276_s2] sm:$0xff]  ;;  %v3537_v27 = vld [vmem:[%s4277_s3 + $0x18] sm:$0xff] }
   0xf   :  { %278 = vmatpush.msra.mxu0 %v263_v12  ;;  %3084 = vmatpush.msra.mxu1 %v262_v13  ;;  %v3545_v28 = vld [vmem:[%s4277_s3 + $0x10] sm:$0xff]  ;;  %v3558_v33 = vld [vmem:[%s4277_s3 + $0x8] sm:$0xff]  ;;  %v3570_v37 = vld [vmem:[%s4277_s3] sm:$0xff] }
  0x10   :  { %507 = vmatpush.msra.mxu2 %v3537_v27  ;;  %573 = vmatpush.msra.mxu3 %v3537_v27  ;;  %v418_v44 = vld [vmem:[%s4281_s7] sm:$0xff]  ;;  %v37_v12 = vld [vmem:[%s4275_s1 + $0x8] sm:$0xff] }
  0x11   :  { %279 = vmatpush.msra.mxu0 %v262_v13  ;;  %3085 = vmatpush.msra.mxu1 %v261_v16  ;;  %v419_v45 = vld [vmem:[%s4282_s8] sm:$0xff] }
  0x12   :  { %155 = vperm.xlu1 %3110, %v65_v14   ;;  %152 = vperm.xlu0 %3109, %v64_v15   ;;  %v3634_v56 = vld [vmem:[%s4278_s4] ss:$0 sm:$0xff] }
  0x13   :  { %280 = vmatpush.msra.mxu0 %v261_v16  ;;  %3086 = vmatpush.msra.mxu1 %v260_v18 }
  0x14   :  { %158 = vperm.xlu2 %3111, %v66_v17   ;;  %508 = vmatpush.msra.mxu2 %v3545_v28 }
  0x15   :  { %281 = vmatpush.msra.mxu0 %v260_v18  ;;  %3087 = vmatpush.msra.mxu1 %v259_v19 }
  0x16   :  { %574 = vmatpush.msra.mxu3 %v3545_v28  ;;  %509 = vmatpush.msra.mxu2 %v3558_v33 }
  0x17   :  { %282 = vmatpush.msra.mxu0 %v259_v19  ;;  %3088 = vmatpush.msra.mxu1 %v258_v20 }
  0x18   :  { %575 = vmatpush.msra.mxu3 %v3558_v33  ;;  %510 = vmatpush.msra.mxu2 %v3570_v37 }
  0x19   :  { %283 = vmatpush.msra.mxu0 %v258_v20  ;;  %3089 = vmatpush.msra.mxu1 %v257_v22 }
  0x1a   :  { %68 = vperm.xlu0 %3109, %v36_v21   ;;  %576 = vmatpush.msra.mxu3 %v3570_v37 }
  0x1b   :  { %284 = vmatpush.msra.mxu0 %v257_v22  ;;  %3090 = vmatpush.msra.mxu1 %v256_v23 }
  0x1c   :  { %705 = vmatpush.msrb.mxu2 %v3537_v27  ;;  %771 = vmatpush.msrb.mxu3 %v3537_v27 }
  0x1d   :  { %285 = vmatpush.msra.mxu0 %v256_v23  ;;  %3091 = vmatpush.msra.mxu1 %v255_v24 }
  0x1e   :  { %706 = vmatpush.msrb.mxu2 %v3545_v28  ;;  %772 = vmatpush.msrb.mxu3 %v3545_v28 }
  0x1f   :  { %286 = vmatpush.msra.mxu0 %v255_v24  ;;  %3092 = vmatpush.msra.mxu1 %v254_v25 }
  0x20   :  { %707 = vmatpush.msrb.mxu2 %v3558_v33  ;;  %773 = vmatpush.msrb.mxu3 %v3558_v33 }
  0x21   :  { %287 = vmatpush.msra.mxu0 %v254_v25  ;;  %3093 = vmatpush.msra.mxu1 %v253_v26 }
  0x22   :  { %708 = vmatpush.msrb.mxu2 %v3570_v37  ;;  %774 = vmatpush.msrb.mxu3 %v3570_v37 }
  0x23   :  { %288 = vmatpush.msra.mxu0 %v253_v26  ;;  %437 = vmatpush.msrb.mxu1 %v3537_v27 }
  0x24   :  { %467 = vrot.lane.b32.xlu2 %v419_v45, %s3401_s30 }
  0x25   :  { %438 = vmatpush.msrb.mxu1 %v3545_v28 }
  0x27   :  { %439 = vmatpush.msrb.mxu1 %v3558_v33 }
  0x29   :  { %440 = vmatpush.msrb.mxu1 %v3570_v37 }
  0x5e   :  { %v147_v40 = vpop.permute.xlu2 %146 }
  0x5f   :  { %vm186_vm5 = vcmp.eq.s32.totalorder %v3551_v30, %v147_v40 }
  0x66   :  { %v150_v41 = vpop.permute.xlu2 %149 }
  0x67   :  { %vm187_vm6 = vcmp.eq.s32.totalorder %v3551_v30, %v150_v41 }
  0x6e   :  { %v159_v43 = vpop.permute.xlu2 %158 }
  0x6f   :  { %vm190_vm9 = vcmp.eq.s32.totalorder %v3551_v30, %v159_v43 }
  0x74   :  { %v135_v31 = vpop.permute.xlu0 %134  ;;  %v141_v35 = vpop.permute.xlu1 %140 }
  0x75   :  { %vm182_vm0 = vcmp.eq.s32.totalorder %v3551_v30, %v135_v31  ;;  %vm184_vm2 = vcmp.eq.s32.totalorder %v3551_v30, %v141_v35 }
  0x76   :  { %2975 = vmatmul.msk.f32.vlgmr.msra.gmra.mxu1 %vm182_vm0, %v3400_v32 }
  0x77   :  { %639 = vmatpush.msra.mxu1 %v3537_v27 }
  0x79   :  { %640 = vmatpush.msra.mxu1 %v3545_v28 }
  0x7b   :  { %641 = vmatpush.msra.mxu1 %v3558_v33 }
  0x7c   :  { %v138_v34 = vpop.permute.xlu0 %137  ;;  %v144_v38 = vpop.permute.xlu1 %143 }
  0x7d   :  { %vm183_vm1 = vcmp.eq.s32.totalorder %v3551_v30, %v138_v34  ;;  %vm185_vm4 = vcmp.eq.s32.totalorder %v3551_v30, %v144_v38  ;;  %642 = vmatpush.msra.mxu1 %v3570_v37 }
  0x7e   :  { %2976 = vmatmul.msk.f32.gmra.mxu1 %vm183_vm1, %v3400_v32  ;;  %v468_v13 = vpop.permute.xlu2 %467 }
  0x84   :  { %v153_v36 = vpop.permute.xlu0 %152  ;;  %v156_v42 = vpop.permute.xlu1 %155 }
  0x85   :  { %vm188_vm7 = vcmp.eq.s32.totalorder %v3551_v30, %v153_v36  ;;  %vm189_vm8 = vcmp.eq.s32.totalorder %v3551_v30, %v156_v42 }
  0x86   :  { %2977 = vmatmul.msk.f32.gmra.mxu1 %vm184_vm2, %v3400_v32 }
  0x8c   :  { %v69_v39 = vpop.permute.xlu0 %68 }
  0x8d   :  { %vm160_vm3 = vcmp.eq.s32.totalorder %v3551_v30, %v69_v39 }
  0x8e   :  { %2953 = vmatmul.msk.f32.vlgmr.msra.gmra.mxu0 %vm160_vm3, %v3400_v32  ;;  %2978 = vmatmul.msk.f32.gmra.mxu1 %vm185_vm4, %v3400_v32 }
  0x96   :  { %2979 = vmatmul.msk.f32.gmra.mxu1 %vm186_vm5, %v3400_v32 }
  0x9e   :  { %2980 = vmatmul.msk.f32.gmra.mxu1 %vm187_vm6, %v3400_v32 }
  0xa6   :  { %2981 = vmatmul.msk.f32.gmra.mxu1 %vm188_vm7, %v3400_v32 }
  0xae   :  { %2982 = vmatmul.msk.f32.gmra.mxu1 %vm189_vm8, %v3400_v32 }
  0xb6   :  { %2983 = vmatmul.msk.f32.gmra.mxu1 %vm190_vm9, %v3400_v32 }
  0xbe   :  { %2984 = vmatmul.msk.f32.vlgmr.msrb.gmra.mxu1 %vm421_vm10, %v418_v44 }
  0xbf   :  { %837 = vmatpush.msrb.mxu1 %v3537_v27 }
  0xc1   :  { %838 = vmatpush.msrb.mxu1 %v3545_v28 }
  0xc3   :  { %839 = vmatpush.msrb.mxu1 %v3558_v33 }
  0xc5   :  { %840 = vmatpush.msrb.mxu1 %v3570_v37 }
  0xf3   :  { %v3613_v46 = vpop.f32.mrf.mxu1 }
  0xfb   :  { %v3615_v47 = vpop.f32.mrf.mxu1 }
 0x103   :  { %v3617_v48 = vpop.f32.mrf.mxu1 }
 0x10b   :  { %v3619_v49 = vpop.f32.mrf.mxu1  ;;  %v290_v55 = vpop.f32.mrf.mxu0 }
 0x10c   :  { %v291_v57 = vadd.f32 %v3634_v56, %v290_v55 }
 0x113   :  { %v3621_v50 = vpop.f32.mrf.mxu1 }
 0x11b   :  { %v3623_v51 = vpop.f32.mrf.mxu1 }
 0x123   :  { %v3625_v52 = vpop.f32.mrf.mxu1 }
 0x12b   :  { %v3627_v53 = vpop.f32.mrf.mxu1 }
 0x133   :  { %v3629_v54 = vpop.f32.mrf.mxu1 }
 0x13b   :  { %v442_v58 = vpop.f32.mrf.mxu1 }
 0x13c   :  { %v445_v59 = vadd.f32 %v442_v58, %v291_v57 }
 0x13e   :  { %3114 = vtanh.f32 %v445_v59  ;;  %v2985_v61 = vmul.f32 -1.442695, %v445_v59  ;;  %v38_v59 = vld [vmem:[%s4275_s1 + $0x10] sm:$0xff] }
 0x140   :  { %3116 = vpow2.f32 %v2985_v61 }
 0x144   :  { %v3115_v60 = vpop.eup %3114 }
 0x145   :  { %472 = vrot.lane.b32.xlu1 %v3115_v60, %s3402_s10 }
 0x146   :  { %v3117_v62 = vpop.eup %3116 }
 0x147   :  { %v449_v63 = vadd.f32 1.0, %v3117_v62 }
 0x149   :  { %3118 = vrcp.f32 %v449_v63  ;;  %v461_v5 = vand.u32 2147483648, %v449_v63  ;;  %vm455_vm12 = vweird.f32 %v449_v63  ;;  %v459_v6 = vand.u32 2147483647, %v449_v63 }
 0x14b   :  { %v462_v8 = vor.u32 1.1754944e-38, %v461_v5  ;;  %vm460_vm14 = vcmp.eq.f32.partialorder %v459_v6, 8.507059e+37 }
 0x14f   :  { %v3119_v0 = vpop.eup %3118 }
 0x150   :  { %v451_v1 = vmul.f32 %v3119_v0, %v449_v63  ;;  %vm456_vm11 = vweird.f32 %v3119_v0 }
 0x151   :  { %vm457_vm13 = vmor %vm455_vm12, %vm456_vm11 }
 0x152   :  { %v452_v2 = vsub.f32 1.0, %v451_v1 }
 0x154   :  { %v453_v3 = vmul.f32 %v3119_v0, %v452_v2 }
 0x156   :  { %v454_v4 = vadd.f32 %v3119_v0, %v453_v3 }
 0x158   :  { %v458_v7 = vsel %vm457_vm13, %v3119_v0, %v454_v4 }
 0x159   :  { %v463_v9 = vsel %vm460_vm14, %v462_v8, %v458_v7 }
 0x15a   :  { %v470_v14 = vmul.f32 %v468_v13, %v463_v9 }
 0x1b7   :  { %v473_v10 = vpop.permute.xlu1 %472 }
 0x1b8   :  { %v475_v11 = vmul.f32 %v473_v10, %v463_v9 }
 0x1ba   :  { %477 = vrot.lane.b32.xlu0 %v475_v11, %s3401_s30 }
 0x1c2   :  { %71 = vperm.xlu0 %3109, %v37_v12  }
 0x22c   :  { %v478_v15 = vpop.permute.xlu0 %477 }
 0x22d   :  { %v480_v16 = vadd.f32 %v478_v15, %v470_v14 }
 0x22f   :  { %3120 = vtanh.f32 %v480_v16 }
 0x234   :  { %v72_v17 = vpop.permute.xlu0 %71 }
 0x235   :  { %v3121_v18 = vpop.eup %3120  ;;  %vm161_vm15 = vcmp.eq.s32.totalorder %v3551_v30, %v72_v17 }
 0x236   :  { %2954 = vmatmul.msk.f32.gmra.mxu0 %vm161_vm15, %v3400_v32  ;;  %483 = vrot.lane.b32.xlu1 %v3121_v18, %s3402_s10 }
 0x2a8   :  { %v484_v19 = vpop.permute.xlu1 %483 }
 0x2a9   :  { %v486_v20 = vmul.f32 %v484_v19, %v463_v9  ;;  %v39_v9 = vld [vmem:[%s4275_s1 + $0x18] sm:$0xff] }
 0x2ab   :  { %488 = vrot.lane.b32.xlu2 %v486_v20, %s3401_s30 }
 0x2b3   :  { %v293_v22 = vpop.f32.mrf.mxu0 }
 0x2b4   :  { %v294_v23 = vadd.f32 %v3634_v56, %v293_v22 }
 0x305   :  { %v489_v21 = vpop.permute.xlu2 %488 }
 0x306   :  { %491 = vst.msk [vmem:[#allocation3] sm:$0xff] %vm421_vm10, %v489_v21  ;;  %2986 = vmatmul.msk.f32.vlgmr.msra.gmra.mxu2 %vm421_vm10, %v489_v21 }
 0x307   :  { %903 = vmatpush.msra.mxu2 %v3537_v27 }
 0x309   :  { %904 = vmatpush.msra.mxu2 %v3545_v28 }
 0x30b   :  { %905 = vmatpush.msra.mxu2 %v3558_v33 }
 0x30d   :  { %906 = vmatpush.msra.mxu2 %v3570_v37 }
 0x389   :  { %v512_v24 = vpop.f32.mrf.mxu2 }
 0x38a   :  { %v515_v25 = vadd.f32 %v512_v24, %v294_v23 }
 0x38c   :  { %3122 = vtanh.f32 %v515_v25  ;;  %v2987_v31 = vmul.f32 -1.442695, %v515_v25 }
 0x38e   :  { %3124 = vpow2.f32 %v2987_v31 }
 0x392   :  { %v3123_v26 = vpop.eup %3122 }
 0x393   :  { %538 = vrot.lane.b32.xlu1 %v3123_v26, %s3402_s10 }
 0x394   :  { %v3125_v34 = vpop.eup %3124 }
 0x395   :  { %v519_v35 = vadd.f32 1.0, %v3125_v34 }
 0x397   :  { %3126 = vrcp.f32 %v519_v35  ;;  %v531_v42 = vand.u32 2147483648, %v519_v35  ;;  %vm525_vm1 = vweird.f32 %v519_v35  ;;  %v529_v43 = vand.u32 2147483647, %v519_v35 }
 0x399   :  { %v532_v45 = vor.u32 1.1754944e-38, %v531_v42  ;;  %vm530_vm3 = vcmp.eq.f32.partialorder %v529_v43, 8.507059e+37 }
 0x39d   :  { %v3127_v36 = vpop.eup %3126 }
 0x39e   :  { %v521_v38 = vmul.f32 %v3127_v36, %v519_v35  ;;  %vm526_vm0 = vweird.f32 %v3127_v36 }
 0x39f   :  { %vm527_vm2 = vmor %vm525_vm1, %vm526_vm0 }
 0x3a0   :  { %v522_v39 = vsub.f32 1.0, %v521_v38 }
 0x3a2   :  { %v523_v40 = vmul.f32 %v3127_v36, %v522_v39 }
 0x3a4   :  { %v524_v41 = vadd.f32 %v3127_v36, %v523_v40 }
 0x3a6   :  { %v528_v44 = vsel %vm527_vm2, %v3127_v36, %v524_v41 }
 0x3a7   :  { %v533_v57 = vsel %vm530_vm3, %v532_v45, %v528_v44 }
 0x3a8   :  { %v536_v60 = vmul.f32 %v533_v57, %v480_v16 }
 0x405   :  { %v539_v55 = vpop.permute.xlu1 %538 }
 0x406   :  { %v541_v58 = vmul.f32 %v539_v55, %v533_v57 }
 0x408   :  { %543 = vrot.lane.b32.xlu2 %v541_v58, %s3401_s30 }
 0x410   :  { %74 = vperm.xlu2 %3111, %v38_v59  }
 0x462   :  { %v544_v61 = vpop.permute.xlu2 %543 }
 0x463   :  { %v546_v62 = vadd.f32 %v544_v61, %v536_v60 }
 0x465   :  { %3128 = vtanh.f32 %v546_v62 }
 0x46a   :  { %v75_v63 = vpop.permute.xlu2 %74 }
 0x46b   :  { %v3129_v0 = vpop.eup %3128  ;;  %vm162_vm4 = vcmp.eq.s32.totalorder %v3551_v30, %v75_v63 }
 0x46c   :  { %2955 = vmatmul.msk.f32.gmra.mxu0 %vm162_vm4, %v3400_v32  ;;  %549 = vrot.lane.b32.xlu0 %v3129_v0, %s3402_s10 }
 0x4de   :  { %v550_v1 = vpop.permute.xlu0 %549 }
 0x4df   :  { %v552_v2 = vmul.f32 %v550_v1, %v533_v57 }
 0x4e1   :  { %554 = vrot.lane.b32.xlu1 %v552_v2, %s3401_s30 }
 0x4e9   :  { %v296_v4 = vpop.f32.mrf.mxu0 }
 0x4ea   :  { %v297_v5 = vadd.f32 %v3634_v56, %v296_v4 }
 0x553   :  { %v555_v3 = vpop.permute.xlu1 %554 }
 0x554   :  { %557 = vst.msk [vmem:[#allocation3 + $0x8] sm:$0xff] %vm421_vm10, %v555_v3  ;;  %2988 = vmatmul.msk.f32.vlgmr.msra.gmra.mxu3 %vm421_vm10, %v555_v3 }
 0x555   :  { %969 = vmatpush.msra.mxu3 %v3537_v27 }
 0x557   :  { %970 = vmatpush.msra.mxu3 %v3545_v28 }
 0x559   :  { %971 = vmatpush.msra.mxu3 %v3558_v33 }
 0x55b   :  { %972 = vmatpush.msra.mxu3 %v3570_v37 }
 0x5d7   :  { %v578_v6 = vpop.f32.mrf.mxu3 }
 0x5d8   :  { %v581_v7 = vadd.f32 %v578_v6, %v297_v5  ;;  %v40_v6 = vld [vmem:[%s4275_s1 + $0x20] sm:$0xff] }
 0x5da   :  { %3130 = vtanh.f32 %v581_v7  ;;  %v2989_v10 = vmul.f32 -1.442695, %v581_v7 }
 0x5dc   :  { %3132 = vpow2.f32 %v2989_v10 }
 0x5e0   :  { %v3131_v8 = vpop.eup %3130 }
 0x5e1   :  { %604 = vrot.lane.b32.xlu0 %v3131_v8, %s3402_s10 }
 0x5e2   :  { %v3133_v11 = vpop.eup %3132 }
 0x5e3   :  { %v585_v12 = vadd.f32 1.0, %v3133_v11 }
 0x5e5   :  { %3134 = vrcp.f32 %v585_v12  ;;  %v597_v18 = vand.u32 2147483648, %v585_v12  ;;  %vm591_vm6 = vweird.f32 %v585_v12  ;;  %v595_v19 = vand.u32 2147483647, %v585_v12 }
 0x5e7   :  { %v598_v21 = vor.u32 1.1754944e-38, %v597_v18  ;;  %vm596_vm8 = vcmp.eq.f32.partialorder %v595_v19, 8.507059e+37 }
 0x5e9   :  { %77 = vperm.xlu0 %3109, %v39_v9  }
 0x5eb   :  { %v3135_v13 = vpop.eup %3134 }
 0x5ec   :  { %v587_v14 = vmul.f32 %v3135_v13, %v585_v12  ;;  %vm592_vm5 = vweird.f32 %v3135_v13 }
 0x5ed   :  { %vm593_vm7 = vmor %vm591_vm6, %vm592_vm5 }
 0x5ee   :  { %v588_v15 = vsub.f32 1.0, %v587_v14 }
 0x5f0   :  { %v589_v16 = vmul.f32 %v3135_v13, %v588_v15 }
 0x5f2   :  { %v590_v17 = vadd.f32 %v3135_v13, %v589_v16 }
 0x5f4   :  { %v594_v20 = vsel %vm593_vm7, %v3135_v13, %v590_v17 }
 0x5f5   :  { %v599_v23 = vsel %vm596_vm8, %v598_v21, %v594_v20 }
 0x5f6   :  { %v602_v26 = vmul.f32 %v599_v23, %v546_v62 }
 0x653   :  { %v605_v22 = vpop.permute.xlu0 %604 }
 0x654   :  { %v607_v24 = vmul.f32 %v605_v22, %v599_v23 }
 0x656   :  { %609 = vrot.lane.b32.xlu1 %v607_v24, %s3401_s30 }
 0x65b   :  { %v78_v25 = vpop.permute.xlu0 %77 }
 0x65c   :  { %vm163_vm9 = vcmp.eq.s32.totalorder %v3551_v30, %v78_v25 }
 0x65d   :  { %2956 = vmatmul.msk.f32.gmra.mxu0 %vm163_vm9, %v3400_v32 }
 0x6c8   :  { %v610_v31 = vpop.permute.xlu1 %609 }
 0x6c9   :  { %v612_v34 = vadd.f32 %v610_v31, %v602_v26 }
 0x6cb   :  { %3136 = vtanh.f32 %v612_v34 }
 0x6d1   :  { %v3137_v35 = vpop.eup %3136 }
 0x6d2   :  { %615 = vrot.lane.b32.xlu2 %v3137_v35, %s3402_s10 }
 0x6da   :  { %v299_v40 = vpop.f32.mrf.mxu0 }
 0x6db   :  { %v300_v41 = vadd.f32 %v3634_v56, %v299_v40 }
 0x72c   :  { %v616_v36 = vpop.permute.xlu2 %615 }
 0x72d   :  { %v618_v38 = vmul.f32 %v616_v36, %v599_v23 }
 0x72f   :  { %620 = vrot.lane.b32.xlu1 %v618_v38, %s3401_s30 }
 0x7a1   :  { %v621_v39 = vpop.permute.xlu1 %620 }
 0x7a2   :  { %623 = vst.msk [vmem:[#allocation3 + $0x10] sm:$0xff] %vm421_vm10, %v621_v39  ;;  %2990 = vmatmul.msk.f32.vlgmr.msra.gmra.mxu1 %vm421_vm10, %v621_v39 }
 0x7a3   :  { %1035 = vmatpush.msra.mxu1 %v3537_v27 }
 0x7a5   :  { %1036 = vmatpush.msra.mxu1 %v3545_v28 }
 0x7a7   :  { %1037 = vmatpush.msra.mxu1 %v3558_v33 }
 0x7a9   :  { %1038 = vmatpush.msra.mxu1 %v3570_v37 }
 0x81f   :  { %v644_v42 = vpop.f32.mrf.mxu1 }
 0x820   :  { %v647_v43 = vadd.f32 %v644_v42, %v300_v41  ;;  %v41_v42 = vld [vmem:[%s4275_s1 + $0x28] sm:$0xff] }
 0x822   :  { %3138 = vtanh.f32 %v647_v43  ;;  %v2991_v45 = vmul.f32 -1.442695, %v647_v43 }
 0x824   :  { %3140 = vpow2.f32 %v2991_v45 }
 0x828   :  { %v3139_v44 = vpop.eup %3138 }
 0x829   :  { %670 = vrot.lane.b32.xlu2 %v3139_v44, %s3402_s10 }
 0x82a   :  { %v3141_v55 = vpop.eup %3140 }
 0x82b   :  { %v651_v57 = vadd.f32 1.0, %v3141_v55 }
 0x82d   :  { %3142 = vrcp.f32 %v651_v57  ;;  %v663_v63 = vand.u32 2147483648, %v651_v57  ;;  %vm657_vm12 = vweird.f32 %v651_v57  ;;  %v661_v0 = vand.u32 2147483647, %v651_v57 }
 0x82f   :  { %v664_v2 = vor.u32 1.1754944e-38, %v663_v63  ;;  %vm662_vm14 = vcmp.eq.f32.partialorder %v661_v0, 8.507059e+37 }
 0x833   :  { %v3143_v58 = vpop.eup %3142 }
 0x834   :  { %v653_v59 = vmul.f32 %v3143_v58, %v651_v57  ;;  %vm658_vm11 = vweird.f32 %v3143_v58 }
 0x835   :  { %vm659_vm13 = vmor %vm657_vm12, %vm658_vm11 }
 0x836   :  { %v654_v60 = vsub.f32 1.0, %v653_v59 }
 0x838   :  { %v655_v61 = vmul.f32 %v3143_v58, %v654_v60 }
 0x83a   :  { %v656_v62 = vadd.f32 %v3143_v58, %v655_v61 }
 0x83c   :  { %v660_v1 = vsel %vm659_vm13, %v3143_v58, %v656_v62 }
 0x83d   :  { %v665_v4 = vsel %vm662_vm14, %v664_v2, %v660_v1  ;;  %v42_v2 = vld [vmem:[%s4275_s1 + $0x30] sm:$0xff] }
 0x83e   :  { %v668_v7 = vmul.f32 %v665_v4, %v612_v34 }
 0x883   :  { %v671_v3 = vpop.permute.xlu2 %670 }
 0x884   :  { %v673_v5 = vmul.f32 %v671_v3, %v665_v4 }
 0x886   :  { %675 = vrot.lane.b32.xlu0 %v673_v5, %s3401_s30 }
 0x88e   :  { %80 = vperm.xlu0 %3109, %v40_v6  }
 0x8f8   :  { %v676_v8 = vpop.permute.xlu0 %675 }
 0x8f9   :  { %v678_v9 = vadd.f32 %v676_v8, %v668_v7 }
 0x8fb   :  { %3144 = vtanh.f32 %v678_v9 }
 0x900   :  { %v81_v10 = vpop.permute.xlu0 %80 }
 0x901   :  { %v3145_v11 = vpop.eup %3144  ;;  %vm164_vm15 = vcmp.eq.s32.totalorder %v3551_v30, %v81_v10 }
 0x902   :  { %2957 = vmatmul.msk.f32.gmra.mxu0 %vm164_vm15, %v3400_v32  ;;  %681 = vrot.lane.b32.xlu1 %v3145_v11, %s3402_s10 }
 0x974   :  { %v682_v12 = vpop.permute.xlu1 %681 }
 0x975   :  { %v684_v13 = vmul.f32 %v682_v12, %v665_v4 }
 0x977   :  { %686 = vrot.lane.b32.xlu2 %v684_v13, %s3401_s30 }
 0x97f   :  { %v302_v15 = vpop.f32.mrf.mxu0 }
 0x980   :  { %v303_v16 = vadd.f32 %v3634_v56, %v302_v15 }
 0x9d1   :  { %v687_v14 = vpop.permute.xlu2 %686 }
 0x9d2   :  { %689 = vst.msk [vmem:[#allocation3 + $0x18] sm:$0xff] %vm421_vm10, %v687_v14  ;;  %2992 = vmatmul.msk.f32.vlgmr.msrb.gmra.mxu2 %vm421_vm10, %v687_v14 }
 0x9d3   :  { %1101 = vmatpush.msrb.mxu2 %v3537_v27 }
 0x9d5   :  { %1102 = vmatpush.msrb.mxu2 %v3545_v28 }
 0x9d7   :  { %1103 = vmatpush.msrb.mxu2 %v3558_v33 }
 0x9d9   :  { %1104 = vmatpush.msrb.mxu2 %v3570_v37 }
 0xa55   :  { %v710_v17 = vpop.f32.mrf.mxu2 }
 0xa56   :  { %v713_v18 = vadd.f32 %v710_v17, %v303_v16 }
 0xa58   :  { %3146 = vtanh.f32 %v713_v18  ;;  %v2993_v20 = vmul.f32 -1.442695, %v713_v18 }
 0xa5a   :  { %3148 = vpow2.f32 %v2993_v20 }
 0xa5e   :  { %v3147_v19 = vpop.eup %3146 }
 0xa5f   :  { %736 = vrot.lane.b32.xlu1 %v3147_v19, %s3402_s10 }
 0xa60   :  { %v3149_v21 = vpop.eup %3148 }
 0xa61   :  { %v717_v22 = vadd.f32 1.0, %v3149_v21 }
 0xa63   :  { %3150 = vrcp.f32 %v717_v22  ;;  %v729_v34 = vand.u32 2147483648, %v717_v22  ;;  %vm723_vm1 = vweird.f32 %v717_v22  ;;  %v727_v35 = vand.u32 2147483647, %v717_v22 }
 0xa65   :  { %v730_v38 = vor.u32 1.1754944e-38, %v729_v34  ;;  %vm728_vm3 = vcmp.eq.f32.partialorder %v727_v35, 8.507059e+37 }
 0xa69   :  { %v3151_v23 = vpop.eup %3150 }
 0xa6a   :  { %v719_v24 = vmul.f32 %v3151_v23, %v717_v22  ;;  %vm724_vm0 = vweird.f32 %v3151_v23 }
 0xa6b   :  { %vm725_vm2 = vmor %vm723_vm1, %vm724_vm0 }
 0xa6c   :  { %v720_v25 = vsub.f32 1.0, %v719_v24 }
 0xa6e   :  { %v721_v26 = vmul.f32 %v3151_v23, %v720_v25 }
 0xa70   :  { %v722_v31 = vadd.f32 %v3151_v23, %v721_v26 }
 0xa72   :  { %v726_v36 = vsel %vm725_vm2, %v3151_v23, %v722_v31 }
 0xa73   :  { %v731_v40 = vsel %vm728_vm3, %v730_v38, %v726_v36 }
 0xa74   :  { %v734_v43 = vmul.f32 %v731_v40, %v678_v9 }
 0xad1   :  { %v737_v39 = vpop.permute.xlu1 %736 }
 0xad2   :  { %v739_v41 = vmul.f32 %v737_v39, %v731_v40 }
 0xad4   :  { %741 = vrot.lane.b32.xlu2 %v739_v41, %s3401_s30 }
 0xadc   :  { %83 = vperm.xlu2 %3111, %v41_v42  }
 0xb2e   :  { %v742_v44 = vpop.permute.xlu2 %741 }
 0xb2f   :  { %v744_v45 = vadd.f32 %v742_v44, %v734_v43 }
 0xb31   :  { %3152 = vtanh.f32 %v744_v45 }
 0xb36   :  { %v84_v55 = vpop.permute.xlu2 %83 }
 0xb37   :  { %v3153_v57 = vpop.eup %3152  ;;  %vm165_vm4 = vcmp.eq.s32.totalorder %v3551_v30, %v84_v55 }
 0xb38   :  { %2958 = vmatmul.msk.f32.gmra.mxu0 %vm165_vm4, %v3400_v32  ;;  %747 = vrot.lane.b32.xlu0 %v3153_v57, %s3402_s10 }
 0xbaa   :  { %v748_v58 = vpop.permute.xlu0 %747 }
 0xbab   :  { %v750_v59 = vmul.f32 %v748_v58, %v731_v40 }
 0xbad   :  { %752 = vrot.lane.b32.xlu1 %v750_v59, %s3401_s30 }
 0xbb5   :  { %v305_v61 = vpop.f32.mrf.mxu0 }
 0xbb6   :  { %v306_v62 = vadd.f32 %v3634_v56, %v305_v61 }
 0xc1f   :  { %v753_v60 = vpop.permute.xlu1 %752 }
 0xc20   :  { %755 = vst.msk [vmem:[#allocation3 + $0x20] sm:$0xff] %vm421_vm10, %v753_v60  ;;  %2994 = vmatmul.msk.f32.vlgmr.msrb.gmra.mxu3 %vm421_vm10, %v753_v60 }
 0xc21   :  { %1167 = vmatpush.msrb.mxu3 %v3537_v27 }
 0xc23   :  { %1168 = vmatpush.msrb.mxu3 %v3545_v28 }
 0xc25   :  { %1169 = vmatpush.msrb.mxu3 %v3558_v33 }
 0xc27   :  { %1170 = vmatpush.msrb.mxu3 %v3570_v37 }
 0xca3   :  { %v776_v63 = vpop.f32.mrf.mxu3 }
 0xca4   :  { %v779_v0 = vadd.f32 %v776_v63, %v306_v62  ;;  %v43_v63 = vld [vmem:[%s4275_s1 + $0x38] sm:$0xff] }
 0xca6   :  { %3154 = vtanh.f32 %v779_v0  ;;  %v2995_v3 = vmul.f32 -1.442695, %v779_v0 }
 0xca8   :  { %3156 = vpow2.f32 %v2995_v3 }
 0xcac   :  { %v3155_v1 = vpop.eup %3154 }
 0xcad   :  { %802 = vrot.lane.b32.xlu0 %v3155_v1, %s3402_s10 }
 0xcae   :  { %v3157_v4 = vpop.eup %3156 }
 0xcaf   :  { %v783_v5 = vadd.f32 1.0, %v3157_v4 }
 0xcb1   :  { %3158 = vrcp.f32 %v783_v5  ;;  %v795_v11 = vand.u32 2147483648, %v783_v5  ;;  %vm789_vm6 = vweird.f32 %v783_v5  ;;  %v793_v12 = vand.u32 2147483647, %v783_v5 }
 0xcb3   :  { %v796_v14 = vor.u32 1.1754944e-38, %v795_v11  ;;  %vm794_vm8 = vcmp.eq.f32.partialorder %v793_v12, 8.507059e+37 }
 0xcb5   :  { %86 = vperm.xlu0 %3109, %v42_v2  }
 0xcb7   :  { %v3159_v6 = vpop.eup %3158 }
 0xcb8   :  { %v785_v7 = vmul.f32 %v3159_v6, %v783_v5  ;;  %vm790_vm5 = vweird.f32 %v3159_v6 }
 0xcb9   :  { %vm791_vm7 = vmor %vm789_vm6, %vm790_vm5 }
 0xcba   :  { %v786_v8 = vsub.f32 1.0, %v785_v7 }
 0xcbc   :  { %v787_v9 = vmul.f32 %v3159_v6, %v786_v8 }
 0xcbe   :  { %v788_v10 = vadd.f32 %v3159_v6, %v787_v9 }
 0xcc0   :  { %v792_v13 = vsel %vm791_vm7, %v3159_v6, %v788_v10 }
 0xcc1   :  { %v797_v16 = vsel %vm794_vm8, %v796_v14, %v792_v13 }
 0xcc2   :  { %v800_v19 = vmul.f32 %v797_v16, %v744_v45 }
 0xd1f   :  { %v803_v15 = vpop.permute.xlu0 %802 }
 0xd20   :  { %v805_v17 = vmul.f32 %v803_v15, %v797_v16 }
 0xd22   :  { %807 = vrot.lane.b32.xlu1 %v805_v17, %s3401_s30 }
 0xd27   :  { %v87_v18 = vpop.permute.xlu0 %86 }
 0xd28   :  { %vm166_vm9 = vcmp.eq.s32.totalorder %v3551_v30, %v87_v18 }
 0xd29   :  { %2959 = vmatmul.msk.f32.gmra.mxu0 %vm166_vm9, %v3400_v32 }
 0xd94   :  { %v808_v20 = vpop.permute.xlu1 %807 }
 0xd95   :  { %v810_v21 = vadd.f32 %v808_v20, %v800_v19 }
 0xd97   :  { %3160 = vtanh.f32 %v810_v21 }
 0xd9d   :  { %v3161_v22 = vpop.eup %3160 }
 0xd9e   :  { %813 = vrot.lane.b32.xlu2 %v3161_v22, %s3402_s10 }
 0xda6   :  { %v308_v26 = vpop.f32.mrf.mxu0 }
 0xda7   :  { %v309_v31 = vadd.f32 %v3634_v56, %v308_v26 }
 0xdf8   :  { %v814_v23 = vpop.permute.xlu2 %813 }
 0xdf9   :  { %v816_v24 = vmul.f32 %v814_v23, %v797_v16 }
 0xdfb   :  { %818 = vrot.lane.b32.xlu1 %v816_v24, %s3401_s30 }
 0xe6d   :  { %v819_v25 = vpop.permute.xlu1 %818 }
 0xe6e   :  { %821 = vst.msk [vmem:[#allocation3 + $0x28] sm:$0xff] %vm421_vm10, %v819_v25  ;;  %2996 = vmatmul.msk.f32.vlgmr.msrb.gmra.mxu1 %vm421_vm10, %v819_v25 }
 0xe6f   :  { %1233 = vmatpush.msrb.mxu1 %v3537_v27 }
 0xe71   :  { %1234 = vmatpush.msrb.mxu1 %v3545_v28 }
 0xe73   :  { %1235 = vmatpush.msrb.mxu1 %v3558_v33 }
 0xe75   :  { %1236 = vmatpush.msrb.mxu1 %v3570_v37 }
 0xeeb   :  { %v842_v34 = vpop.f32.mrf.mxu1 }
 0xeec   :  { %v845_v35 = vadd.f32 %v842_v34, %v309_v31  ;;  %v44_v34 = vld [vmem:[%s4275_s1 + $0x40] sm:$0xff] }
 0xeee   :  { %3162 = vtanh.f32 %v845_v35  ;;  %v2997_v38 = vmul.f32 -1.442695, %v845_v35 }
 0xef0   :  { %3164 = vpow2.f32 %v2997_v38 }
 0xef4   :  { %v3163_v36 = vpop.eup %3162 }
 0xef5   :  { %868 = vrot.lane.b32.xlu2 %v3163_v36, %s3402_s10 }
 0xef6   :  { %v3165_v39 = vpop.eup %3164 }
 0xef7   :  { %v849_v40 = vadd.f32 1.0, %v3165_v39 }
 0xef9   :  { %3166 = vrcp.f32 %v849_v40  ;;  %v861_v55 = vand.u32 2147483648, %v849_v40  ;;  %vm855_vm12 = vweird.f32 %v849_v40  ;;  %v859_v57 = vand.u32 2147483647, %v849_v40 }
 0xefb   :  { %v862_v59 = vor.u32 1.1754944e-38, %v861_v55  ;;  %vm860_vm14 = vcmp.eq.f32.partialorder %v859_v57, 8.507059e+37 }
 0xeff   :  { %v3167_v41 = vpop.eup %3166 }
 0xf00   :  { %v851_v42 = vmul.f32 %v3167_v41, %v849_v40  ;;  %vm856_vm11 = vweird.f32 %v3167_v41 }
 0xf01   :  { %vm857_vm13 = vmor %vm855_vm12, %vm856_vm11 }
 0xf02   :  { %v852_v43 = vsub.f32 1.0, %v851_v42 }
 0xf04   :  { %v853_v44 = vmul.f32 %v3167_v41, %v852_v43 }
 0xf06   :  { %v854_v45 = vadd.f32 %v3167_v41, %v853_v44 }
 0xf08   :  { %v858_v58 = vsel %vm857_vm13, %v3167_v41, %v854_v45 }
 0xf09   :  { %v863_v61 = vsel %vm860_vm14, %v862_v59, %v858_v58  ;;  %v45_v59 = vld [vmem:[%s4275_s1 + $0x48] sm:$0xff] }
 0xf0a   :  { %v866_v0 = vmul.f32 %v863_v61, %v810_v21 }
 0xf4f   :  { %v869_v60 = vpop.permute.xlu2 %868 }
 0xf50   :  { %v871_v62 = vmul.f32 %v869_v60, %v863_v61 }
 0xf52   :  { %873 = vrot.lane.b32.xlu0 %v871_v62, %s3401_s30 }
 0xf5a   :  { %89 = vperm.xlu0 %3109, %v43_v63  }
 0xfc4   :  { %v874_v1 = vpop.permute.xlu0 %873 }
 0xfc5   :  { %v876_v2 = vadd.f32 %v874_v1, %v866_v0 }
 0xfc7   :  { %3168 = vtanh.f32 %v876_v2 }
 0xfcc   :  { %v90_v3 = vpop.permute.xlu0 %89 }
 0xfcd   :  { %v3169_v4 = vpop.eup %3168  ;;  %vm167_vm15 = vcmp.eq.s32.totalorder %v3551_v30, %v90_v3 }
 0xfce   :  { %2960 = vmatmul.msk.f32.gmra.mxu0 %vm167_vm15, %v3400_v32  ;;  %879 = vrot.lane.b32.xlu1 %v3169_v4, %s3402_s10 }
0x1040   :  { %v880_v5 = vpop.permute.xlu1 %879 }
0x1041   :  { %v882_v6 = vmul.f32 %v880_v5, %v863_v61 }
0x1043   :  { %884 = vrot.lane.b32.xlu2 %v882_v6, %s3401_s30 }
0x104b   :  { %v311_v8 = vpop.f32.mrf.mxu0 }
0x104c   :  { %v312_v9 = vadd.f32 %v3634_v56, %v311_v8 }
0x109d   :  { %v885_v7 = vpop.permute.xlu2 %884 }
0x109e   :  { %887 = vst.msk [vmem:[#allocation3 + $0x30] sm:$0xff] %vm421_vm10, %v885_v7  ;;  %2998 = vmatmul.msk.f32.vlgmr.msra.gmra.mxu2 %vm421_vm10, %v885_v7 }
0x109f   :  { %1299 = vmatpush.msra.mxu2 %v3537_v27 }
0x10a1   :  { %1300 = vmatpush.msra.mxu2 %v3545_v28 }
0x10a3   :  { %1301 = vmatpush.msra.mxu2 %v3558_v33 }
0x10a5   :  { %1302 = vmatpush.msra.mxu2 %v3570_v37 }
0x1121   :  { %v908_v10 = vpop.f32.mrf.mxu2 }
0x1122   :  { %v911_v11 = vadd.f32 %v908_v10, %v312_v9 }
0x1124   :  { %3170 = vtanh.f32 %v911_v11  ;;  %v2999_v13 = vmul.f32 -1.442695, %v911_v11 }
0x1126   :  { %3172 = vpow2.f32 %v2999_v13 }
0x112a   :  { %v3171_v12 = vpop.eup %3170 }
0x112b   :  { %934 = vrot.lane.b32.xlu1 %v3171_v12, %s3402_s10 }
0x112c   :  { %v3173_v14 = vpop.eup %3172 }
0x112d   :  { %v915_v15 = vadd.f32 1.0, %v3173_v14 }
0x112f   :  { %3174 = vrcp.f32 %v915_v15  ;;  %v927_v21 = vand.u32 2147483648, %v915_v15  ;;  %vm921_vm1 = vweird.f32 %v915_v15  ;;  %v925_v22 = vand.u32 2147483647, %v915_v15 }
0x1131   :  { %v928_v24 = vor.u32 1.1754944e-38, %v927_v21  ;;  %vm926_vm3 = vcmp.eq.f32.partialorder %v925_v22, 8.507059e+37 }
0x1135   :  { %v3175_v16 = vpop.eup %3174 }
0x1136   :  { %v917_v17 = vmul.f32 %v3175_v16, %v915_v15  ;;  %vm922_vm0 = vweird.f32 %v3175_v16 }
0x1137   :  { %vm923_vm2 = vmor %vm921_vm1, %vm922_vm0 }
0x1138   :  { %v918_v18 = vsub.f32 1.0, %v917_v17  ;;  %v3785_v17 = vld [vmem:[%s4277_s3 + $0x10] sm:$0xff] }
0x113a   :  { %v919_v19 = vmul.f32 %v3175_v16, %v918_v18  ;;  %v3791_v18 = vld [vmem:[%s4277_s3 + $0x8] sm:$0xff] }
0x113c   :  { %v920_v20 = vadd.f32 %v3175_v16, %v919_v19 }
0x113e   :  { %v924_v23 = vsel %vm923_vm2, %v3175_v16, %v920_v20  ;;  %v3779_v16 = vld [vmem:[%s4277_s3 + $0x18] sm:$0xff] }
0x113f   :  { %v929_v26 = vsel %vm926_vm3, %v928_v24, %v924_v23 }
0x1140   :  { %v932_v35 = vmul.f32 %v929_v26, %v876_v2 }
0x119d   :  { %v935_v25 = vpop.permute.xlu1 %934 }
0x119e   :  { %v937_v31 = vmul.f32 %v935_v25, %v929_v26 }
0x11a0   :  { %939 = vrot.lane.b32.xlu2 %v937_v31, %s3401_s30 }
0x11a8   :  { %92 = vperm.xlu2 %3111, %v44_v34  }
0x11fa   :  { %v940_v36 = vpop.permute.xlu2 %939 }
0x11fb   :  { %v942_v38 = vadd.f32 %v940_v36, %v932_v35 }
0x11fd   :  { %3176 = vtanh.f32 %v942_v38 }
0x1202   :  { %v93_v39 = vpop.permute.xlu2 %92 }
0x1203   :  { %v3177_v40 = vpop.eup %3176  ;;  %vm168_vm4 = vcmp.eq.s32.totalorder %v3551_v30, %v93_v39 }
0x1204   :  { %2961 = vmatmul.msk.f32.gmra.mxu0 %vm168_vm4, %v3400_v32  ;;  %945 = vrot.lane.b32.xlu0 %v3177_v40, %s3402_s10 }
0x1276   :  { %v946_v41 = vpop.permute.xlu0 %945 }
0x1277   :  { %v948_v42 = vmul.f32 %v946_v41, %v929_v26 }
0x1279   :  { %950 = vrot.lane.b32.xlu1 %v948_v42, %s3401_s30 }
0x1281   :  { %v314_v44 = vpop.f32.mrf.mxu0 }
0x1282   :  { %v315_v45 = vadd.f32 %v3634_v56, %v314_v44 }
0x12eb   :  { %v951_v43 = vpop.permute.xlu1 %950 }
0x12ec   :  { %953 = vst.msk [vmem:[#allocation3 + $0x38] sm:$0xff] %vm421_vm10, %v951_v43  ;;  %3000 = vmatmul.msk.f32.vlgmr.msra.gmra.mxu3 %vm421_vm10, %v951_v43 }
0x12ed   :  { %1365 = vmatpush.msra.mxu3 %v3537_v27 }
0x12ef   :  { %1366 = vmatpush.msra.mxu3 %v3545_v28 }
0x12f1   :  { %1367 = vmatpush.msra.mxu3 %v3558_v33 }
0x12f3   :  { %1368 = vmatpush.msra.mxu3 %v3570_v37 }
0x136f   :  { %v974_v55 = vpop.f32.mrf.mxu3 }
0x1370   :  { %v977_v57 = vadd.f32 %v974_v55, %v315_v45  ;;  %v46_v45 = vld [vmem:[%s4275_s1 + $0x50] sm:$0xff] }
0x1372   :  { %3178 = vtanh.f32 %v977_v57  ;;  %v3001_v27 = vmul.f32 -1.442695, %v977_v57 }
0x1374   :  { %3180 = vpow2.f32 %v3001_v27 }
0x1378   :  { %v3179_v58 = vpop.eup %3178 }
0x1379   :  { %1000 = vrot.lane.b32.xlu0 %v3179_v58, %s3402_s10 }
0x137a   :  { %v3181_v28 = vpop.eup %3180 }
0x137b   :  { %v981_v33 = vadd.f32 1.0, %v3181_v28 }
0x137d   :  { %3182 = vrcp.f32 %v981_v33  ;;  %v993_v1 = vand.u32 2147483648, %v981_v33  ;;  %vm987_vm6 = vweird.f32 %v981_v33  ;;  %v991_v2 = vand.u32 2147483647, %v981_v33 }
0x137f   :  { %v994_v4 = vor.u32 1.1754944e-38, %v993_v1  ;;  %vm992_vm8 = vcmp.eq.f32.partialorder %v991_v2, 8.507059e+37 }
0x1381   :  { %95 = vperm.xlu0 %3109, %v45_v59  }
0x1383   :  { %v3183_v60 = vpop.eup %3182 }
0x1384   :  { %v983_v61 = vmul.f32 %v3183_v60, %v981_v33  ;;  %vm988_vm5 = vweird.f32 %v3183_v60 }
0x1385   :  { %vm989_vm7 = vmor %vm987_vm6, %vm988_vm5 }
0x1386   :  { %v984_v62 = vsub.f32 1.0, %v983_v61  ;;  %v3813_v61 = vld [vmem:[%s4277_s3] sm:$0xff] }
0x1388   :  { %v985_v63 = vmul.f32 %v3183_v60, %v984_v62 }
0x138a   :  { %v986_v0 = vadd.f32 %v3183_v60, %v985_v63 }
0x138c   :  { %v990_v3 = vsel %vm989_vm7, %v3183_v60, %v986_v0 }
0x138d   :  { %v995_v6 = vsel %vm992_vm8, %v994_v4, %v990_v3 }
0x138e   :  { %v998_v9 = vmul.f32 %v995_v6, %v942_v38 }
0x13eb   :  { %v1001_v5 = vpop.permute.xlu0 %1000 }
0x13ec   :  { %v1003_v7 = vmul.f32 %v1001_v5, %v995_v6 }
0x13ee   :  { %1005 = vrot.lane.b32.xlu1 %v1003_v7, %s3401_s30 }
0x13f3   :  { %v96_v8 = vpop.permute.xlu0 %95 }
0x13f4   :  { %vm169_vm9 = vcmp.eq.s32.totalorder %v3551_v30, %v96_v8 }
0x13f5   :  { %2962 = vmatmul.msk.f32.gmra.mxu0 %vm169_vm9, %v3400_v32 }
0x1460   :  { %v1006_v10 = vpop.permute.xlu1 %1005 }
0x1461   :  { %v1008_v11 = vadd.f32 %v1006_v10, %v998_v9 }
0x1463   :  { %3184 = vtanh.f32 %v1008_v11 }
0x1469   :  { %v3185_v12 = vpop.eup %3184 }
0x146a   :  { %1011 = vrot.lane.b32.xlu2 %v3185_v12, %s3402_s10 }
0x1472   :  { %v317_v19 = vpop.f32.mrf.mxu0 }
0x1473   :  { %v318_v20 = vadd.f32 %v3634_v56, %v317_v19 }
0x14c4   :  { %v1012_v13 = vpop.permute.xlu2 %1011 }
0x14c5   :  { %v1014_v14 = vmul.f32 %v1012_v13, %v995_v6 }
0x14c7   :  { %1016 = vrot.lane.b32.xlu1 %v1014_v14, %s3401_s30 }
0x1539   :  { %v1017_v15 = vpop.permute.xlu1 %1016 }
0x153a   :  { %1019 = vst.msk [vmem:[#allocation3 + $0x40] sm:$0xff] %vm421_vm10, %v1017_v15  ;;  %3002 = vmatmul.msk.f32.vlgmr.msra.gmra.mxu1 %vm421_vm10, %v1017_v15 }
0x153b   :  { %1431 = vmatpush.msra.mxu1 %v3779_v16 }
0x153d   :  { %1432 = vmatpush.msra.mxu1 %v3785_v17 }
0x153f   :  { %1433 = vmatpush.msra.mxu1 %v3791_v18 }
0x1541   :  { %1434 = vmatpush.msra.mxu1 %v3570_v37 }
0x15b7   :  { %v1040_v21 = vpop.f32.mrf.mxu1 }
0x15b8   :  { %v1043_v22 = vadd.f32 %v1040_v21, %v318_v20  ;;  %v47_v20 = vld [vmem:[%s4275_s1 + $0x58] sm:$0xff] }
0x15ba   :  { %3186 = vtanh.f32 %v1043_v22  ;;  %v3003_v24 = vmul.f32 -1.442695, %v1043_v22 }
0x15bc   :  { %3188 = vpow2.f32 %v3003_v24 }
0x15c0   :  { %v3187_v23 = vpop.eup %3186 }
0x15c1   :  { %1066 = vrot.lane.b32.xlu2 %v3187_v23, %s3402_s10 }
0x15c2   :  { %v3189_v25 = vpop.eup %3188 }
0x15c3   :  { %v1047_v26 = vadd.f32 1.0, %v3189_v25 }
0x15c5   :  { %3190 = vrcp.f32 %v1047_v26  ;;  %v1059_v37 = vand.u32 2147483648, %v1047_v26  ;;  %vm1053_vm12 = vweird.f32 %v1047_v26  ;;  %v1057_v39 = vand.u32 2147483647, %v1047_v26 }
0x15c7   :  { %v1060_v41 = vor.u32 1.1754944e-38, %v1059_v37  ;;  %vm1058_vm14 = vcmp.eq.f32.partialorder %v1057_v39, 8.507059e+37 }
0x15cb   :  { %v3191_v31 = vpop.eup %3190 }
0x15cc   :  { %v1049_v34 = vmul.f32 %v3191_v31, %v1047_v26  ;;  %vm1054_vm11 = vweird.f32 %v3191_v31 }
0x15cd   :  { %vm1055_vm13 = vmor %vm1053_vm12, %vm1054_vm11 }
0x15ce   :  { %v1050_v35 = vsub.f32 1.0, %v1049_v34 }
0x15d0   :  { %v1051_v36 = vmul.f32 %v3191_v31, %v1050_v35 }
0x15d2   :  { %v1052_v38 = vadd.f32 %v3191_v31, %v1051_v36  ;;  %v3835_v36 = vld [vmem:[%s4278_s4] ss:$0 sm:$0xff] }
0x15d4   :  { %v1056_v40 = vsel %vm1055_vm13, %v3191_v31, %v1052_v38 }
0x15d5   :  { %v1061_v43 = vsel %vm1058_vm14, %v1060_v41, %v1056_v40  ;;  %v48_v41 = vld [vmem:[%s4275_s1 + $0x60] sm:$0xff] }
0x15d6   :  { %v1064_v55 = vmul.f32 %v1061_v43, %v1008_v11 }
0x161b   :  { %v1067_v42 = vpop.permute.xlu2 %1066 }
0x161c   :  { %v1069_v44 = vmul.f32 %v1067_v42, %v1061_v43 }
0x161e   :  { %1071 = vrot.lane.b32.xlu0 %v1069_v44, %s3401_s30 }
0x1626   :  { %98 = vperm.xlu0 %3109, %v46_v45  }
0x1690   :  { %v1072_v57 = vpop.permute.xlu0 %1071 }
0x1691   :  { %v1074_v58 = vadd.f32 %v1072_v57, %v1064_v55 }
0x1693   :  { %3192 = vtanh.f32 %v1074_v58 }
0x1698   :  { %v99_v59 = vpop.permute.xlu0 %98 }
0x1699   :  { %v3193_v27 = vpop.eup %3192  ;;  %vm170_vm15 = vcmp.eq.s32.totalorder %v3551_v30, %v99_v59 }
0x169a   :  { %2963 = vmatmul.msk.f32.gmra.mxu0 %vm170_vm15, %v3400_v32  ;;  %1077 = vrot.lane.b32.xlu1 %v3193_v27, %s3402_s10 }
0x170c   :  { %v1078_v28 = vpop.permute.xlu1 %1077 }
0x170d   :  { %v1080_v33 = vmul.f32 %v1078_v28, %v1061_v43 }
0x170f   :  { %1082 = vrot.lane.b32.xlu2 %v1080_v33, %s3401_s30 }
0x1717   :  { %v320_v62 = vpop.f32.mrf.mxu0 }
0x1718   :  { %v321_v63 = vadd.f32 %v3634_v56, %v320_v62 }
0x1769   :  { %v1083_v60 = vpop.permute.xlu2 %1082 }
0x176a   :  { %1085 = vst.msk [vmem:[#allocation3 + $0x48] sm:$0xff] %vm421_vm10, %v1083_v60  ;;  %3004 = vmatmul.msk.f32.vlgmr.msrb.gmra.mxu2 %vm421_vm10, %v1083_v60 }
0x176b   :  { %1497 = vmatpush.msrb.mxu2 %v3779_v16 }
0x176d   :  { %1498 = vmatpush.msrb.mxu2 %v3785_v17 }
0x176f   :  { %1499 = vmatpush.msrb.mxu2 %v3791_v18 }
0x1771   :  { %1500 = vmatpush.msrb.mxu2 %v3813_v61 }
0x17ed   :  { %v1106_v0 = vpop.f32.mrf.mxu2 }
0x17ee   :  { %v1109_v1 = vadd.f32 %v1106_v0, %v321_v63 }
0x17f0   :  { %3194 = vtanh.f32 %v1109_v1  ;;  %v3005_v3 = vmul.f32 -1.442695, %v1109_v1 }
0x17f2   :  { %3196 = vpow2.f32 %v3005_v3 }
0x17f6   :  { %v3195_v2 = vpop.eup %3194 }
0x17f7   :  { %1132 = vrot.lane.b32.xlu1 %v3195_v2, %s3402_s10 }
0x17f8   :  { %v3197_v4 = vpop.eup %3196 }
0x17f9   :  { %v1113_v5 = vadd.f32 1.0, %v3197_v4 }
0x17fb   :  { %3198 = vrcp.f32 %v1113_v5  ;;  %v1125_v11 = vand.u32 2147483648, %v1113_v5  ;;  %vm1119_vm1 = vweird.f32 %v1113_v5  ;;  %v1123_v56 = vand.u32 2147483647, %v1113_v5 }
0x17fd   :  { %v1126_v13 = vor.u32 1.1754944e-38, %v1125_v11  ;;  %vm1124_vm3 = vcmp.eq.f32.partialorder %v1123_v56, 8.507059e+37 }
0x1801   :  { %v3199_v6 = vpop.eup %3198 }
0x1802   :  { %v1115_v7 = vmul.f32 %v3199_v6, %v1113_v5  ;;  %vm1120_vm0 = vweird.f32 %v3199_v6 }
0x1803   :  { %vm1121_vm2 = vmor %vm1119_vm1, %vm1120_vm0 }
0x1804   :  { %v1116_v8 = vsub.f32 1.0, %v1115_v7 }
0x1806   :  { %v1117_v9 = vmul.f32 %v3199_v6, %v1116_v8 }
0x1808   :  { %v1118_v10 = vadd.f32 %v3199_v6, %v1117_v9 }
0x180a   :  { %v1122_v12 = vsel %vm1121_vm2, %v3199_v6, %v1118_v10 }
0x180b   :  { %v1127_v15 = vsel %vm1124_vm3, %v1126_v13, %v1122_v12 }
0x180c   :  { %v1130_v21 = vmul.f32 %v1127_v15, %v1074_v58 }
0x1869   :  { %v1133_v14 = vpop.permute.xlu1 %1132 }
0x186a   :  { %v1135_v19 = vmul.f32 %v1133_v14, %v1127_v15 }
0x186c   :  { %1137 = vrot.lane.b32.xlu2 %v1135_v19, %s3401_s30 }
0x1874   :  { %101 = vperm.xlu2 %3111, %v47_v20  }
0x18c6   :  { %v1138_v22 = vpop.permute.xlu2 %1137 }
0x18c7   :  { %v1140_v23 = vadd.f32 %v1138_v22, %v1130_v21 }
0x18c9   :  { %3200 = vtanh.f32 %v1140_v23 }
0x18ce   :  { %v102_v24 = vpop.permute.xlu2 %101 }
0x18cf   :  { %v3201_v25 = vpop.eup %3200  ;;  %vm171_vm4 = vcmp.eq.s32.totalorder %v3551_v30, %v102_v24 }
0x18d0   :  { %2964 = vmatmul.msk.f32.gmra.mxu0 %vm171_vm4, %v3400_v32  ;;  %1143 = vrot.lane.b32.xlu0 %v3201_v25, %s3402_s10 }
0x1942   :  { %v1144_v26 = vpop.permute.xlu0 %1143 }
0x1943   :  { %v1146_v31 = vmul.f32 %v1144_v26, %v1127_v15 }
0x1945   :  { %1148 = vrot.lane.b32.xlu1 %v1146_v31, %s3401_s30 }
0x194d   :  { %v323_v35 = vpop.f32.mrf.mxu0 }
0x194e   :  { %v324_v38 = vadd.f32 %v3835_v36, %v323_v35 }
0x19b7   :  { %v1149_v34 = vpop.permute.xlu1 %1148 }
0x19b8   :  { %1151 = vst.msk [vmem:[#allocation3 + $0x50] sm:$0xff] %vm421_vm10, %v1149_v34  ;;  %3006 = vmatmul.msk.f32.vlgmr.msrb.gmra.mxu3 %vm421_vm10, %v1149_v34 }
0x19b9   :  { %1563 = vmatpush.msrb.mxu3 %v3779_v16 }
0x19bb   :  { %1564 = vmatpush.msrb.mxu3 %v3785_v17 }
0x19bd   :  { %1565 = vmatpush.msrb.mxu3 %v3791_v18 }
0x19bf   :  { %1566 = vmatpush.msrb.mxu3 %v3813_v61 }
0x1a3b   :  { %v1172_v37 = vpop.f32.mrf.mxu3 }
0x1a3c   :  { %v1175_v39 = vadd.f32 %v1172_v37, %v324_v38  ;;  %v49_v37 = vld [vmem:[%s4275_s1 + $0x68] sm:$0xff] }
0x1a3e   :  { %3202 = vtanh.f32 %v1175_v39  ;;  %v3007_v42 = vmul.f32 -1.442695, %v1175_v39 }
0x1a40   :  { %3204 = vpow2.f32 %v3007_v42 }
0x1a44   :  { %v3203_v40 = vpop.eup %3202 }
0x1a45   :  { %1198 = vrot.lane.b32.xlu0 %v3203_v40, %s3402_s10 }
0x1a46   :  { %v3205_v43 = vpop.eup %3204 }
0x1a47   :  { %v1179_v44 = vadd.f32 1.0, %v3205_v43 }
0x1a49   :  { %3206 = vrcp.f32 %v1179_v44  ;;  %v1191_v27 = vand.u32 2147483648, %v1179_v44  ;;  %vm1185_vm6 = vweird.f32 %v1179_v44  ;;  %v1189_v28 = vand.u32 2147483647, %v1179_v44 }
0x1a4b   :  { %v1192_v60 = vor.u32 1.1754944e-38, %v1191_v27  ;;  %vm1190_vm8 = vcmp.eq.f32.partialorder %v1189_v28, 8.507059e+37 }
0x1a4d   :  { %104 = vperm.xlu0 %3109, %v48_v41  }
0x1a4f   :  { %v3207_v45 = vpop.eup %3206 }
0x1a50   :  { %v1181_v55 = vmul.f32 %v3207_v45, %v1179_v44  ;;  %vm1186_vm5 = vweird.f32 %v3207_v45 }
0x1a51   :  { %vm1187_vm7 = vmor %vm1185_vm6, %vm1186_vm5 }
0x1a52   :  { %v1182_v57 = vsub.f32 1.0, %v1181_v55 }
0x1a54   :  { %v1183_v58 = vmul.f32 %v3207_v45, %v1182_v57 }
0x1a56   :  { %v1184_v59 = vadd.f32 %v3207_v45, %v1183_v58 }
0x1a58   :  { %v1188_v33 = vsel %vm1187_vm7, %v3207_v45, %v1184_v59 }
0x1a59   :  { %v1193_v63 = vsel %vm1190_vm8, %v1192_v60, %v1188_v33 }
0x1a5a   :  { %v1196_v2 = vmul.f32 %v1193_v63, %v1140_v23 }
0x1ab7   :  { %v1199_v62 = vpop.permute.xlu0 %1198 }
0x1ab8   :  { %v1201_v0 = vmul.f32 %v1199_v62, %v1193_v63 }
0x1aba   :  { %1203 = vrot.lane.b32.xlu1 %v1201_v0, %s3401_s30 }
0x1abf   :  { %v105_v1 = vpop.permute.xlu0 %104 }
0x1ac0   :  { %vm172_vm9 = vcmp.eq.s32.totalorder %v3551_v30, %v105_v1 }
0x1ac1   :  { %2965 = vmatmul.msk.f32.gmra.mxu0 %vm172_vm9, %v3400_v32 }
0x1b2c   :  { %v1204_v3 = vpop.permute.xlu1 %1203 }
0x1b2d   :  { %v1206_v4 = vadd.f32 %v1204_v3, %v1196_v2 }
0x1b2f   :  { %3208 = vtanh.f32 %v1206_v4 }
0x1b35   :  { %v3209_v5 = vpop.eup %3208 }
0x1b36   :  { %1209 = vrot.lane.b32.xlu2 %v3209_v5, %s3402_s10 }
0x1b3e   :  { %v326_v9 = vpop.f32.mrf.mxu0 }
0x1b3f   :  { %v327_v10 = vadd.f32 %v3835_v36, %v326_v9 }
0x1b90   :  { %v1210_v6 = vpop.permute.xlu2 %1209 }
0x1b91   :  { %v1212_v7 = vmul.f32 %v1210_v6, %v1193_v63 }
0x1b93   :  { %1214 = vrot.lane.b32.xlu1 %v1212_v7, %s3401_s30 }
0x1c05   :  { %v1215_v8 = vpop.permute.xlu1 %1214 }
0x1c06   :  { %1217 = vst.msk [vmem:[#allocation3 + $0x58] sm:$0xff] %vm421_vm10, %v1215_v8  ;;  %3008 = vmatmul.msk.f32.vlgmr.msrb.gmra.mxu1 %vm421_vm10, %v1215_v8 }
0x1c07   :  { %1629 = vmatpush.msrb.mxu1 %v3779_v16 }
0x1c09   :  { %1630 = vmatpush.msrb.mxu1 %v3785_v17 }
0x1c0b   :  { %1631 = vmatpush.msrb.mxu1 %v3791_v18 }
0x1c0d   :  { %1632 = vmatpush.msrb.mxu1 %v3813_v61 }
0x1c83   :  { %v1238_v11 = vpop.f32.mrf.mxu1 }
0x1c84   :  { %v1241_v56 = vadd.f32 %v1238_v11, %v327_v10  ;;  %v50_v11 = vld [vmem:[%s4275_s1 + $0x70] sm:$0xff] }
0x1c86   :  { %3210 = vtanh.f32 %v1241_v56  ;;  %v3009_v13 = vmul.f32 -1.442695, %v1241_v56 }
0x1c88   :  { %3212 = vpow2.f32 %v3009_v13 }
0x1c8c   :  { %v3211_v12 = vpop.eup %3210 }
0x1c8d   :  { %1264 = vrot.lane.b32.xlu2 %v3211_v12, %s3402_s10 }
0x1c8e   :  { %v3213_v14 = vpop.eup %3212 }
0x1c8f   :  { %v1245_v15 = vadd.f32 1.0, %v3213_v14 }
0x1c91   :  { %3214 = vrcp.f32 %v1245_v15  ;;  %v1257_v24 = vand.u32 2147483648, %v1245_v15  ;;  %vm1251_vm12 = vweird.f32 %v1245_v15  ;;  %v1255_v25 = vand.u32 2147483647, %v1245_v15 }
0x1c93   :  { %v1258_v31 = vor.u32 1.1754944e-38, %v1257_v24  ;;  %vm1256_vm14 = vcmp.eq.f32.partialorder %v1255_v25, 8.507059e+37 }
0x1c97   :  { %v3215_v19 = vpop.eup %3214 }
0x1c98   :  { %v1247_v20 = vmul.f32 %v3215_v19, %v1245_v15  ;;  %vm1252_vm11 = vweird.f32 %v3215_v19 }
0x1c99   :  { %vm1253_vm13 = vmor %vm1251_vm12, %vm1252_vm11 }
0x1c9a   :  { %v1248_v21 = vsub.f32 1.0, %v1247_v20 }
0x1c9c   :  { %v1249_v22 = vmul.f32 %v3215_v19, %v1248_v21 }
0x1c9e   :  { %v1250_v23 = vadd.f32 %v3215_v19, %v1249_v22 }
0x1ca0   :  { %v1254_v26 = vsel %vm1253_vm13, %v3215_v19, %v1250_v23 }
0x1ca1   :  { %v1259_v35 = vsel %vm1256_vm14, %v1258_v31, %v1254_v26  ;;  %v51_v31 = vld [vmem:[%s4275_s1 + $0x78] sm:$0xff] }
0x1ca2   :  { %v1262_v39 = vmul.f32 %v1259_v35, %v1206_v4 }
0x1ce7   :  { %v1265_v34 = vpop.permute.xlu2 %1264 }
0x1ce8   :  { %v1267_v38 = vmul.f32 %v1265_v34, %v1259_v35 }
0x1cea   :  { %1269 = vrot.lane.b32.xlu0 %v1267_v38, %s3401_s30 }
0x1cf2   :  { %107 = vperm.xlu0 %3109, %v49_v37  }
0x1d5c   :  { %v1270_v40 = vpop.permute.xlu0 %1269 }
0x1d5d   :  { %v1272_v41 = vadd.f32 %v1270_v40, %v1262_v39 }
0x1d5f   :  { %3216 = vtanh.f32 %v1272_v41 }
0x1d64   :  { %v108_v42 = vpop.permute.xlu0 %107 }
0x1d65   :  { %v3217_v43 = vpop.eup %3216  ;;  %vm173_vm15 = vcmp.eq.s32.totalorder %v3551_v30, %v108_v42 }
0x1d66   :  { %2966 = vmatmul.msk.f32.gmra.mxu0 %vm173_vm15, %v3400_v32  ;;  %1275 = vrot.lane.b32.xlu1 %v3217_v43, %s3402_s10 }
0x1dd8   :  { %v1276_v44 = vpop.permute.xlu1 %1275 }
0x1dd9   :  { %v1278_v45 = vmul.f32 %v1276_v44, %v1259_v35 }
0x1ddb   :  { %1280 = vrot.lane.b32.xlu2 %v1278_v45, %s3401_s30 }
0x1de3   :  { %v329_v57 = vpop.f32.mrf.mxu0 }
0x1de4   :  { %v330_v58 = vadd.f32 %v3835_v36, %v329_v57 }
0x1e35   :  { %v1281_v55 = vpop.permute.xlu2 %1280 }
0x1e36   :  { %1283 = vst.msk [vmem:[#allocation3 + $0x60] sm:$0xff] %vm421_vm10, %v1281_v55  ;;  %3010 = vmatmul.msk.f32.vlgmr.msra.gmra.mxu2 %vm421_vm10, %v1281_v55 }
0x1e37   :  { %1695 = vmatpush.msra.mxu2 %v3779_v16 }
0x1e39   :  { %1696 = vmatpush.msra.mxu2 %v3785_v17 }
0x1e3b   :  { %1697 = vmatpush.msra.mxu2 %v3791_v18 }
0x1e3d   :  { %1698 = vmatpush.msra.mxu2 %v3813_v61 }
0x1eb9   :  { %v1304_v59 = vpop.f32.mrf.mxu2 }
0x1eba   :  { %v1307_v27 = vadd.f32 %v1304_v59, %v330_v58 }
0x1ebc   :  { %3218 = vtanh.f32 %v1307_v27  ;;  %v3011_v33 = vmul.f32 -1.442695, %v1307_v27 }
0x1ebe   :  { %3220 = vpow2.f32 %v3011_v33 }
0x1ec2   :  { %v3219_v28 = vpop.eup %3218 }
0x1ec3   :  { %1330 = vrot.lane.b32.xlu1 %v3219_v28, %s3402_s10 }
0x1ec4   :  { %v3221_v60 = vpop.eup %3220 }
0x1ec5   :  { %v1311_v62 = vadd.f32 1.0, %v3221_v60 }
0x1ec7   :  { %3222 = vrcp.f32 %v1311_v62  ;;  %v1323_v4 = vand.u32 2147483648, %v1311_v62  ;;  %vm1317_vm1 = vweird.f32 %v1311_v62  ;;  %v1321_v5 = vand.u32 2147483647, %v1311_v62 }
0x1ec9   :  { %v1324_v7 = vor.u32 1.1754944e-38, %v1323_v4  ;;  %vm1322_vm3 = vcmp.eq.f32.partialorder %v1321_v5, 8.507059e+37 }
0x1ecd   :  { %v3223_v63 = vpop.eup %3222 }
0x1ece   :  { %v1313_v0 = vmul.f32 %v3223_v63, %v1311_v62  ;;  %vm1318_vm0 = vweird.f32 %v3223_v63 }
0x1ecf   :  { %vm1319_vm2 = vmor %vm1317_vm1, %vm1318_vm0 }
0x1ed0   :  { %v1314_v1 = vsub.f32 1.0, %v1313_v0 }
0x1ed2   :  { %v1315_v2 = vmul.f32 %v3223_v63, %v1314_v1 }
0x1ed4   :  { %v1316_v3 = vadd.f32 %v3223_v63, %v1315_v2 }
0x1ed6   :  { %v1320_v6 = vsel %vm1319_vm2, %v3223_v63, %v1316_v3 }
0x1ed7   :  { %v1325_v9 = vsel %vm1322_vm3, %v1324_v7, %v1320_v6 }
0x1ed8   :  { %v1328_v56 = vmul.f32 %v1325_v9, %v1272_v41 }
0x1f35   :  { %v1331_v8 = vpop.permute.xlu1 %1330 }
0x1f36   :  { %v1333_v10 = vmul.f32 %v1331_v8, %v1325_v9 }
0x1f38   :  { %1335 = vrot.lane.b32.xlu2 %v1333_v10, %s3401_s30 }
0x1f40   :  { %110 = vperm.xlu2 %3111, %v50_v11  }
0x1f92   :  { %v1336_v12 = vpop.permute.xlu2 %1335 }
0x1f93   :  { %v1338_v13 = vadd.f32 %v1336_v12, %v1328_v56 }
0x1f95   :  { %3224 = vtanh.f32 %v1338_v13 }
0x1f9a   :  { %v111_v14 = vpop.permute.xlu2 %110 }
0x1f9b   :  { %v3225_v15 = vpop.eup %3224  ;;  %vm174_vm4 = vcmp.eq.s32.totalorder %v3551_v30, %v111_v14 }
0x1f9c   :  { %2967 = vmatmul.msk.f32.gmra.mxu0 %vm174_vm4, %v3400_v32  ;;  %1341 = vrot.lane.b32.xlu0 %v3225_v15, %s3402_s10 }
0x200e   :  { %v1342_v19 = vpop.permute.xlu0 %1341 }
0x200f   :  { %v1344_v20 = vmul.f32 %v1342_v19, %v1325_v9 }
0x2011   :  { %1346 = vrot.lane.b32.xlu1 %v1344_v20, %s3401_s30 }
0x2019   :  { %v332_v22 = vpop.f32.mrf.mxu0 }
0x201a   :  { %v333_v23 = vadd.f32 %v3835_v36, %v332_v22 }
0x2083   :  { %v1347_v21 = vpop.permute.xlu1 %1346 }
0x2084   :  { %1349 = vst.msk [vmem:[#allocation3 + $0x68] sm:$0xff] %vm421_vm10, %v1347_v21  ;;  %3012 = vmatmul.msk.f32.vlgmr.msra.gmra.mxu3 %vm421_vm10, %v1347_v21 }
0x2085   :  { %1761 = vmatpush.msra.mxu3 %v3779_v16 }
0x2087   :  { %1762 = vmatpush.msra.mxu3 %v3785_v17 }
0x2089   :  { %1763 = vmatpush.msra.mxu3 %v3791_v18 }
0x208b   :  { %1764 = vmatpush.msra.mxu3 %v3813_v61 }
0x2107   :  { %v1370_v24 = vpop.f32.mrf.mxu3 }
0x2108   :  { %v1373_v25 = vadd.f32 %v1370_v24, %v333_v23  ;;  %v52_v24 = vld [vmem:[%s4275_s1 + $0x80] sm:$0xff] }
0x210a   :  { %3226 = vtanh.f32 %v1373_v25  ;;  %v3013_v34 = vmul.f32 -1.442695, %v1373_v25 }
0x210c   :  { %3228 = vpow2.f32 %v3013_v34 }
0x2110   :  { %v3227_v26 = vpop.eup %3226 }
0x2111   :  { %1396 = vrot.lane.b32.xlu0 %v3227_v26, %s3402_s10 }
0x2112   :  { %v3229_v35 = vpop.eup %3228 }
0x2113   :  { %v1377_v38 = vadd.f32 1.0, %v3229_v35 }
0x2115   :  { %3230 = vrcp.f32 %v1377_v38  ;;  %v1389_v43 = vand.u32 2147483648, %v1377_v38  ;;  %vm1383_vm6 = vweird.f32 %v1377_v38  ;;  %v1387_v44 = vand.u32 2147483647, %v1377_v38 }
0x2117   :  { %v1390_v55 = vor.u32 1.1754944e-38, %v1389_v43  ;;  %vm1388_vm8 = vcmp.eq.f32.partialorder %v1387_v44, 8.507059e+37 }
0x2119   :  { %113 = vperm.xlu0 %3109, %v51_v31  }
0x211b   :  { %v3231_v37 = vpop.eup %3230 }
0x211c   :  { %v1379_v39 = vmul.f32 %v3231_v37, %v1377_v38  ;;  %vm1384_vm5 = vweird.f32 %v3231_v37 }
0x211d   :  { %vm1385_vm7 = vmor %vm1383_vm6, %vm1384_vm5 }
0x211e   :  { %v1380_v40 = vsub.f32 1.0, %v1379_v39 }
0x2120   :  { %v1381_v41 = vmul.f32 %v3231_v37, %v1380_v40 }
0x2122   :  { %v1382_v42 = vadd.f32 %v3231_v37, %v1381_v41 }
0x2124   :  { %v1386_v45 = vsel %vm1385_vm7, %v3231_v37, %v1382_v42 }
0x2125   :  { %v1391_v58 = vsel %vm1388_vm8, %v1390_v55, %v1386_v45 }
0x2126   :  { %v1394_v28 = vmul.f32 %v1391_v58, %v1338_v13 }
0x2183   :  { %v1397_v57 = vpop.permute.xlu0 %1396 }
0x2184   :  { %v1399_v59 = vmul.f32 %v1397_v57, %v1391_v58 }
0x2186   :  { %1401 = vrot.lane.b32.xlu1 %v1399_v59, %s3401_s30 }
0x218b   :  { %v114_v27 = vpop.permute.xlu0 %113 }
0x218c   :  { %vm175_vm9 = vcmp.eq.s32.totalorder %v3551_v30, %v114_v27 }
0x218d   :  { %2968 = vmatmul.msk.f32.gmra.mxu0 %vm175_vm9, %v3400_v32 }
0x21f8   :  { %v1402_v33 = vpop.permute.xlu1 %1401 }
0x21f9   :  { %v1404_v60 = vadd.f32 %v1402_v33, %v1394_v28 }
0x21fb   :  { %3232 = vtanh.f32 %v1404_v60 }
0x2201   :  { %v3233_v62 = vpop.eup %3232 }
0x2202   :  { %1407 = vrot.lane.b32.xlu2 %v3233_v62, %s3402_s10 }
0x220a   :  { %v335_v2 = vpop.f32.mrf.mxu0 }
0x220b   :  { %v336_v3 = vadd.f32 %v3835_v36, %v335_v2 }
0x225c   :  { %v1408_v63 = vpop.permute.xlu2 %1407 }
0x225d   :  { %v1410_v0 = vmul.f32 %v1408_v63, %v1391_v58 }
0x225f   :  { %1412 = vrot.lane.b32.xlu1 %v1410_v0, %s3401_s30 }
0x22d1   :  { %v1413_v1 = vpop.permute.xlu1 %1412 }
0x22d2   :  { %1415 = vst.msk [vmem:[#allocation3 + $0x70] sm:$0xff] %vm421_vm10, %v1413_v1  ;;  %3014 = vmatmul.msk.f32.vlgmr.msra.gmra.mxu1 %vm421_vm10, %v1413_v1 }
0x22d3   :  { %1827 = vmatpush.msra.mxu1 %v3779_v16 }
0x22d5   :  { %1828 = vmatpush.msra.mxu1 %v3785_v17 }
0x22d7   :  { %1829 = vmatpush.msra.mxu1 %v3791_v18 }
0x22d9   :  { %1830 = vmatpush.msra.mxu1 %v3813_v61 }
0x234f   :  { %v1436_v4 = vpop.f32.mrf.mxu1 }
0x2350   :  { %v1439_v5 = vadd.f32 %v1436_v4, %v336_v3  ;;  %v53_v4 = vld [vmem:[%s4275_s1 + $0x88] sm:$0xff] }
0x2352   :  { %3234 = vtanh.f32 %v1439_v5  ;;  %v3015_v7 = vmul.f32 -1.442695, %v1439_v5 }
0x2354   :  { %3236 = vpow2.f32 %v3015_v7 }
0x2358   :  { %v3235_v6 = vpop.eup %3234 }
0x2359   :  { %1462 = vrot.lane.b32.xlu2 %v3235_v6, %s3402_s10 }
0x235a   :  { %v3237_v8 = vpop.eup %3236 }
0x235b   :  { %v1443_v9 = vadd.f32 1.0, %v3237_v8 }
0x235d   :  { %3238 = vrcp.f32 %v1443_v9  ;;  %v1455_v14 = vand.u32 2147483648, %v1443_v9  ;;  %vm1449_vm12 = vweird.f32 %v1443_v9  ;;  %v1453_v15 = vand.u32 2147483647, %v1443_v9 }
0x235f   :  { %v1456_v20 = vor.u32 1.1754944e-38, %v1455_v14  ;;  %vm1454_vm14 = vcmp.eq.f32.partialorder %v1453_v15, 8.507059e+37 }
0x2363   :  { %v3239_v10 = vpop.eup %3238 }
0x2364   :  { %v1445_v11 = vmul.f32 %v3239_v10, %v1443_v9  ;;  %vm1450_vm11 = vweird.f32 %v3239_v10 }
0x2365   :  { %vm1451_vm13 = vmor %vm1449_vm12, %vm1450_vm11 }
0x2366   :  { %v1446_v56 = vsub.f32 1.0, %v1445_v11 }
0x2368   :  { %v1447_v12 = vmul.f32 %v3239_v10, %v1446_v56 }
0x236a   :  { %v1448_v13 = vadd.f32 %v3239_v10, %v1447_v12 }
0x236c   :  { %v1452_v19 = vsel %vm1451_vm13, %v3239_v10, %v1448_v13 }
0x236d   :  { %v1457_v22 = vsel %vm1454_vm14, %v1456_v20, %v1452_v19  ;;  %v54_v20 = vld [vmem:[%s4275_s1 + $0x90] sm:$0xff] }
0x236e   :  { %v1460_v25 = vmul.f32 %v1457_v22, %v1404_v60 }
0x23b3   :  { %v1463_v21 = vpop.permute.xlu2 %1462 }
0x23b4   :  { %v1465_v23 = vmul.f32 %v1463_v21, %v1457_v22 }
0x23b6   :  { %1467 = vrot.lane.b32.xlu0 %v1465_v23, %s3401_s30 }
0x23be   :  { %116 = vperm.xlu0 %3109, %v52_v24  }
0x2428   :  { %v1468_v26 = vpop.permute.xlu0 %1467 }
0x2429   :  { %v1470_v31 = vadd.f32 %v1468_v26, %v1460_v25 }
0x242b   :  { %3240 = vtanh.f32 %v1470_v31 }
0x2430   :  { %v117_v34 = vpop.permute.xlu0 %116 }
0x2431   :  { %v3241_v35 = vpop.eup %3240  ;;  %vm176_vm15 = vcmp.eq.s32.totalorder %v3551_v30, %v117_v34 }
0x2432   :  { %2969 = vmatmul.msk.f32.gmra.mxu0 %vm176_vm15, %v3400_v32  ;;  %1473 = vrot.lane.b32.xlu1 %v3241_v35, %s3402_s10 }
0x24a4   :  { %v1474_v38 = vpop.permute.xlu1 %1473 }
0x24a5   :  { %v1476_v37 = vmul.f32 %v1474_v38, %v1457_v22 }
0x24a7   :  { %1478 = vrot.lane.b32.xlu2 %v1476_v37, %s3401_s30 }
0x24af   :  { %v338_v40 = vpop.f32.mrf.mxu0 }
0x24b0   :  { %v339_v41 = vadd.f32 %v3835_v36, %v338_v40 }
0x2501   :  { %v1479_v39 = vpop.permute.xlu2 %1478 }
0x2502   :  { %1481 = vst.msk [vmem:[#allocation3 + $0x78] sm:$0xff] %vm421_vm10, %v1479_v39  ;;  %3016 = vmatmul.msk.f32.vlgmr.msrb.gmra.mxu2 %vm421_vm10, %v1479_v39 }
0x2503   :  { %1893 = vmatpush.msrb.mxu2 %v3779_v16 }
0x2505   :  { %1894 = vmatpush.msrb.mxu2 %v3785_v17 }
0x2507   :  { %1895 = vmatpush.msrb.mxu2 %v3791_v18 }
0x2509   :  { %1896 = vmatpush.msrb.mxu2 %v3813_v61 }
0x2585   :  { %v1502_v42 = vpop.f32.mrf.mxu2 }
0x2586   :  { %v1505_v43 = vadd.f32 %v1502_v42, %v339_v41 }
0x2588   :  { %3242 = vtanh.f32 %v1505_v43  ;;  %v3017_v45 = vmul.f32 -1.442695, %v1505_v43 }
0x258a   :  { %3244 = vpow2.f32 %v3017_v45 }
0x258e   :  { %v3243_v44 = vpop.eup %3242 }
0x258f   :  { %1528 = vrot.lane.b32.xlu1 %v3243_v44, %s3402_s10 }
0x2590   :  { %v3245_v55 = vpop.eup %3244 }
0x2591   :  { %v1509_v57 = vadd.f32 1.0, %v3245_v55 }
0x2593   :  { %3246 = vrcp.f32 %v1509_v57  ;;  %v1521_v60 = vand.u32 2147483648, %v1509_v57  ;;  %vm1515_vm1 = vweird.f32 %v1509_v57  ;;  %v1519_v62 = vand.u32 2147483647, %v1509_v57 }
0x2595   :  { %v1522_v0 = vor.u32 1.1754944e-38, %v1521_v60  ;;  %vm1520_vm3 = vcmp.eq.f32.partialorder %v1519_v62, 8.507059e+37 }
0x2599   :  { %v3247_v58 = vpop.eup %3246 }
0x259a   :  { %v1511_v59 = vmul.f32 %v3247_v58, %v1509_v57  ;;  %vm1516_vm0 = vweird.f32 %v3247_v58 }
0x259b   :  { %vm1517_vm2 = vmor %vm1515_vm1, %vm1516_vm0 }
0x259c   :  { %v1512_v27 = vsub.f32 1.0, %v1511_v59 }
0x259e   :  { %v1513_v28 = vmul.f32 %v3247_v58, %v1512_v27 }
0x25a0   :  { %v1514_v33 = vadd.f32 %v3247_v58, %v1513_v28 }
0x25a2   :  { %v1518_v63 = vsel %vm1517_vm2, %v3247_v58, %v1514_v33 }
0x25a3   :  { %v1523_v2 = vsel %vm1520_vm3, %v1522_v0, %v1518_v63 }
0x25a4   :  { %v1526_v5 = vmul.f32 %v1523_v2, %v1470_v31 }
0x2601   :  { %v1529_v1 = vpop.permute.xlu1 %1528 }
0x2602   :  { %v1531_v3 = vmul.f32 %v1529_v1, %v1523_v2 }
0x2604   :  { %1533 = vrot.lane.b32.xlu2 %v1531_v3, %s3401_s30 }
0x260c   :  { %119 = vperm.xlu2 %3111, %v53_v4  }
0x265e   :  { %v1534_v6 = vpop.permute.xlu2 %1533 }
0x265f   :  { %v1536_v7 = vadd.f32 %v1534_v6, %v1526_v5 }
0x2661   :  { %3248 = vtanh.f32 %v1536_v7 }
0x2666   :  { %v120_v8 = vpop.permute.xlu2 %119 }
0x2667   :  { %v3249_v9 = vpop.eup %3248  ;;  %vm177_vm4 = vcmp.eq.s32.totalorder %v3551_v30, %v120_v8 }
0x2668   :  { %2970 = vmatmul.msk.f32.gmra.mxu0 %vm177_vm4, %v3400_v32  ;;  %1539 = vrot.lane.b32.xlu0 %v3249_v9, %s3402_s10 }
0x26da   :  { %v1540_v10 = vpop.permute.xlu0 %1539 }
0x26db   :  { %v1542_v11 = vmul.f32 %v1540_v10, %v1523_v2 }
0x26dd   :  { %1544 = vrot.lane.b32.xlu1 %v1542_v11, %s3401_s30 }
0x26e5   :  { %v341_v12 = vpop.f32.mrf.mxu0 }
0x26e6   :  { %v342_v13 = vadd.f32 %v3835_v36, %v341_v12 }
0x274f   :  { %v1545_v56 = vpop.permute.xlu1 %1544 }
0x2750   :  { %1547 = vst.msk [vmem:[#allocation3 + $0x80] sm:$0xff] %vm421_vm10, %v1545_v56  ;;  %3018 = vmatmul.msk.f32.vlgmr.msrb.gmra.mxu3 %vm421_vm10, %v1545_v56 }
0x2751   :  { %1959 = vmatpush.msrb.mxu3 %v3779_v16 }
0x2753   :  { %1960 = vmatpush.msrb.mxu3 %v3785_v17 }
0x2755   :  { %1961 = vmatpush.msrb.mxu3 %v3791_v18 }
0x2757   :  { %1962 = vmatpush.msrb.mxu3 %v3813_v61 }
0x27d3   :  { %v1568_v14 = vpop.f32.mrf.mxu3 }
0x27d4   :  { %v1571_v15 = vadd.f32 %v1568_v14, %v342_v13  ;;  %v55_v14 = vld [vmem:[%s4275_s1 + $0x98] sm:$0xff] }
0x27d6   :  { %3250 = vtanh.f32 %v1571_v15  ;;  %v3019_v21 = vmul.f32 -1.442695, %v1571_v15 }
0x27d8   :  { %3252 = vpow2.f32 %v3019_v21 }
0x27dc   :  { %v3251_v19 = vpop.eup %3250 }
0x27dd   :  { %1594 = vrot.lane.b32.xlu0 %v3251_v19, %s3402_s10 }
0x27de   :  { %v3253_v22 = vpop.eup %3252 }
0x27df   :  { %v1575_v23 = vadd.f32 1.0, %v3253_v22 }
0x27e1   :  { %3254 = vrcp.f32 %v1575_v23  ;;  %v1587_v35 = vand.u32 2147483648, %v1575_v23  ;;  %vm1581_vm6 = vweird.f32 %v1575_v23  ;;  %v1585_v38 = vand.u32 2147483647, %v1575_v23 }
0x27e3   :  { %v1588_v39 = vor.u32 1.1754944e-38, %v1587_v35  ;;  %vm1586_vm8 = vcmp.eq.f32.partialorder %v1585_v38, 8.507059e+37 }
0x27e5   :  { %122 = vperm.xlu0 %3109, %v54_v20  }
0x27e7   :  { %v3255_v24 = vpop.eup %3254 }
0x27e8   :  { %v1577_v25 = vmul.f32 %v3255_v24, %v1575_v23  ;;  %vm1582_vm5 = vweird.f32 %v3255_v24 }
0x27e9   :  { %vm1583_vm7 = vmor %vm1581_vm6, %vm1582_vm5 }
0x27ea   :  { %v1578_v26 = vsub.f32 1.0, %v1577_v25 }
0x27ec   :  { %v1579_v31 = vmul.f32 %v3255_v24, %v1578_v26 }
0x27ee   :  { %v1580_v34 = vadd.f32 %v3255_v24, %v1579_v31 }
0x27f0   :  { %v1584_v37 = vsel %vm1583_vm7, %v3255_v24, %v1580_v34 }
0x27f1   :  { %v1589_v41 = vsel %vm1586_vm8, %v1588_v39, %v1584_v37 }
0x27f2   :  { %v1592_v44 = vmul.f32 %v1589_v41, %v1536_v7 }
0x284f   :  { %v1595_v40 = vpop.permute.xlu0 %1594 }
0x2850   :  { %v1597_v42 = vmul.f32 %v1595_v40, %v1589_v41 }
0x2852   :  { %1599 = vrot.lane.b32.xlu1 %v1597_v42, %s3401_s30 }
0x2857   :  { %v123_v43 = vpop.permute.xlu0 %122 }
0x2858   :  { %vm178_vm9 = vcmp.eq.s32.totalorder %v3551_v30, %v123_v43 }
0x2859   :  { %2971 = vmatmul.msk.f32.gmra.mxu0 %vm178_vm9, %v3400_v32 }
0x28c4   :  { %v1600_v45 = vpop.permute.xlu1 %1599 }
0x28c5   :  { %v1602_v55 = vadd.f32 %v1600_v45, %v1592_v44 }
0x28c7   :  { %3256 = vtanh.f32 %v1602_v55 }
0x28cd   :  { %v3257_v57 = vpop.eup %3256 }
0x28ce   :  { %1605 = vrot.lane.b32.xlu2 %v3257_v57, %s3402_s10 }
0x28d6   :  { %v344_v28 = vpop.f32.mrf.mxu0 }
0x28d7   :  { %v345_v33 = vadd.f32 %v3835_v36, %v344_v28 }
0x2928   :  { %v1606_v58 = vpop.permute.xlu2 %1605 }
0x2929   :  { %v1608_v59 = vmul.f32 %v1606_v58, %v1589_v41 }
0x292b   :  { %1610 = vrot.lane.b32.xlu1 %v1608_v59, %s3401_s30 }
0x299d   :  { %v1611_v27 = vpop.permute.xlu1 %1610 }
0x299e   :  { %1613 = vst.msk [vmem:[#allocation3 + $0x88] sm:$0xff] %vm421_vm10, %v1611_v27  ;;  %3020 = vmatmul.msk.f32.vlgmr.msrb.gmra.mxu1 %vm421_vm10, %v1611_v27  ;;  %v56_v27 = vld [vmem:[%s4275_s1 + $0xa0] sm:$0xff] }
0x299f   :  { %2025 = vmatpush.msrb.mxu1 %v3779_v16 }
0x29a1   :  { %2026 = vmatpush.msrb.mxu1 %v3785_v17 }
0x29a3   :  { %2027 = vmatpush.msrb.mxu1 %v3791_v18 }
0x29a5   :  { %2028 = vmatpush.msrb.mxu1 %v3813_v61 }
0x2a1b   :  { %v1634_v60 = vpop.f32.mrf.mxu1 }
0x2a1c   :  { %v1637_v62 = vadd.f32 %v1634_v60, %v345_v33 }
0x2a1e   :  { %3258 = vtanh.f32 %v1637_v62  ;;  %v3021_v0 = vmul.f32 -1.442695, %v1637_v62 }
0x2a20   :  { %3260 = vpow2.f32 %v3021_v0 }
0x2a24   :  { %v3259_v63 = vpop.eup %3258 }
0x2a25   :  { %1660 = vrot.lane.b32.xlu2 %v3259_v63, %s3402_s10 }
0x2a26   :  { %v3261_v1 = vpop.eup %3260 }
0x2a27   :  { %v1641_v2 = vadd.f32 1.0, %v3261_v1 }
0x2a29   :  { %3262 = vrcp.f32 %v1641_v2  ;;  %v1653_v8 = vand.u32 2147483648, %v1641_v2  ;;  %vm1647_vm12 = vweird.f32 %v1641_v2  ;;  %v1651_v9 = vand.u32 2147483647, %v1641_v2 }
0x2a2b   :  { %v1654_v11 = vor.u32 1.1754944e-38, %v1653_v8  ;;  %vm1652_vm14 = vcmp.eq.f32.partialorder %v1651_v9, 8.507059e+37 }
0x2a2f   :  { %v3263_v3 = vpop.eup %3262 }
0x2a30   :  { %v1643_v4 = vmul.f32 %v3263_v3, %v1641_v2  ;;  %vm1648_vm11 = vweird.f32 %v3263_v3 }
0x2a31   :  { %vm1649_vm13 = vmor %vm1647_vm12, %vm1648_vm11 }
0x2a32   :  { %v1644_v5 = vsub.f32 1.0, %v1643_v4  ;;  %v3986_v4 = vld [vmem:[%s4277_s3 + $0x10] sm:$0xff] }
0x2a34   :  { %v1645_v6 = vmul.f32 %v3263_v3, %v1644_v5  ;;  %v3992_v5 = vld [vmem:[%s4277_s3 + $0x8] sm:$0xff] }
0x2a36   :  { %v1646_v7 = vadd.f32 %v3263_v3, %v1645_v6 }
0x2a38   :  { %v1650_v10 = vsel %vm1649_vm13, %v3263_v3, %v1646_v7  ;;  %v3980_v3 = vld [vmem:[%s4277_s3 + $0x18] sm:$0xff] }
0x2a39   :  { %v1655_v12 = vsel %vm1652_vm14, %v1654_v11, %v1650_v10  ;;  %v57_v11 = vld [vmem:[%s4275_s1 + $0xa8] sm:$0xff] }
0x2a3a   :  { %v1658_v15 = vmul.f32 %v1655_v12, %v1602_v55 }
0x2a7f   :  { %v1661_v56 = vpop.permute.xlu2 %1660 }
0x2a80   :  { %v1663_v13 = vmul.f32 %v1661_v56, %v1655_v12 }
0x2a82   :  { %1665 = vrot.lane.b32.xlu0 %v1663_v13, %s3401_s30 }
0x2a8a   :  { %125 = vperm.xlu0 %3109, %v55_v14  }
0x2af4   :  { %v1666_v19 = vpop.permute.xlu0 %1665 }
0x2af5   :  { %v1668_v20 = vadd.f32 %v1666_v19, %v1658_v15 }
0x2af7   :  { %3264 = vtanh.f32 %v1668_v20 }
0x2afc   :  { %v126_v21 = vpop.permute.xlu0 %125 }
0x2afd   :  { %v3265_v22 = vpop.eup %3264  ;;  %vm179_vm15 = vcmp.eq.s32.totalorder %v3551_v30, %v126_v21 }
0x2afe   :  { %2972 = vmatmul.msk.f32.gmra.mxu0 %vm179_vm15, %v3400_v32  ;;  %1671 = vrot.lane.b32.xlu1 %v3265_v22, %s3402_s10 }
0x2b70   :  { %v1672_v23 = vpop.permute.xlu1 %1671 }
0x2b71   :  { %v1674_v24 = vmul.f32 %v1672_v23, %v1655_v12 }
0x2b73   :  { %1676 = vrot.lane.b32.xlu2 %v1674_v24, %s3401_s30 }
0x2b7b   :  { %v347_v26 = vpop.f32.mrf.mxu0 }
0x2b7c   :  { %v348_v31 = vadd.f32 %v3835_v36, %v347_v26 }
0x2bcd   :  { %v1677_v25 = vpop.permute.xlu2 %1676 }
0x2bce   :  { %1679 = vst.msk [vmem:[#allocation3 + $0x90] sm:$0xff] %vm421_vm10, %v1677_v25  ;;  %3022 = vmatmul.msk.f32.vlgmr.msra.gmra.mxu2 %vm421_vm10, %v1677_v25 }
0x2bcf   :  { %2091 = vmatpush.msra.mxu2 %v3779_v16 }
0x2bd1   :  { %2092 = vmatpush.msra.mxu2 %v3785_v17 }
0x2bd3   :  { %2093 = vmatpush.msra.mxu2 %v3791_v18 }
0x2bd5   :  { %2094 = vmatpush.msra.mxu2 %v3813_v61 }
0x2c51   :  { %v1700_v34 = vpop.f32.mrf.mxu2 }
0x2c52   :  { %v1703_v35 = vadd.f32 %v1700_v34, %v348_v31 }
0x2c54   :  { %3266 = vtanh.f32 %v1703_v35  ;;  %v3023_v37 = vmul.f32 -1.442695, %v1703_v35 }
0x2c56   :  { %3268 = vpow2.f32 %v3023_v37 }
0x2c5a   :  { %v3267_v38 = vpop.eup %3266 }
0x2c5b   :  { %1726 = vrot.lane.b32.xlu1 %v3267_v38, %s3402_s10 }
0x2c5c   :  { %v3269_v39 = vpop.eup %3268 }
0x2c5d   :  { %v1707_v40 = vadd.f32 1.0, %v3269_v39 }
0x2c5f   :  { %3270 = vrcp.f32 %v1707_v40  ;;  %v1719_v43 = vand.u32 2147483648, %v1707_v40  ;;  %vm1713_vm1 = vweird.f32 %v1707_v40  ;;  %v1717_v44 = vand.u32 2147483647, %v1707_v40 }
0x2c61   :  { %v1720_v55 = vor.u32 1.1754944e-38, %v1719_v43  ;;  %vm1718_vm3 = vcmp.eq.f32.partialorder %v1717_v44, 8.507059e+37 }
0x2c65   :  { %v3271_v16 = vpop.eup %3270 }
0x2c66   :  { %v1709_v17 = vmul.f32 %v3271_v16, %v1707_v40  ;;  %vm1714_vm0 = vweird.f32 %v3271_v16 }
0x2c67   :  { %vm1715_vm2 = vmor %vm1713_vm1, %vm1714_vm0 }
0x2c68   :  { %v1710_v41 = vsub.f32 1.0, %v1709_v17 }
0x2c6a   :  { %v1711_v18 = vmul.f32 %v3271_v16, %v1710_v41 }
0x2c6c   :  { %v1712_v42 = vadd.f32 %v3271_v16, %v1711_v18 }
0x2c6e   :  { %v1716_v45 = vsel %vm1715_vm2, %v3271_v16, %v1712_v42 }
0x2c6f   :  { %v1721_v58 = vsel %vm1718_vm3, %v1720_v55, %v1716_v45 }
0x2c70   :  { %v1724_v28 = vmul.f32 %v1721_v58, %v1668_v20 }
0x2ccd   :  { %v1727_v57 = vpop.permute.xlu1 %1726 }
0x2cce   :  { %v1729_v59 = vmul.f32 %v1727_v57, %v1721_v58 }
0x2cd0   :  { %1731 = vrot.lane.b32.xlu2 %v1729_v59, %s3401_s30 }
0x2cd8   :  { %128 = vperm.xlu2 %3111, %v56_v27  }
0x2d2a   :  { %v1732_v33 = vpop.permute.xlu2 %1731 }
0x2d2b   :  { %v1734_v60 = vadd.f32 %v1732_v33, %v1724_v28 }
0x2d2d   :  { %3272 = vtanh.f32 %v1734_v60 }
0x2d32   :  { %v129_v62 = vpop.permute.xlu2 %128 }
0x2d33   :  { %v3273_v63 = vpop.eup %3272  ;;  %vm180_vm4 = vcmp.eq.s32.totalorder %v3551_v30, %v129_v62 }
0x2d34   :  { %2973 = vmatmul.msk.f32.gmra.mxu0 %vm180_vm4, %v3400_v32  ;;  %1737 = vrot.lane.b32.xlu0 %v3273_v63, %s3402_s10 }
0x2da6   :  { %v1738_v0 = vpop.permute.xlu0 %1737 }
0x2da7   :  { %v1740_v1 = vmul.f32 %v1738_v0, %v1721_v58 }
0x2da9   :  { %1742 = vrot.lane.b32.xlu1 %v1740_v1, %s3401_s30 }
0x2db1   :  { %v350_v6 = vpop.f32.mrf.mxu0 }
0x2db2   :  { %v351_v7 = vadd.f32 %v3835_v36, %v350_v6 }
0x2e1b   :  { %v1743_v2 = vpop.permute.xlu1 %1742 }
0x2e1c   :  { %1745 = vst.msk [vmem:[#allocation3 + $0x98] sm:$0xff] %vm421_vm10, %v1743_v2  ;;  %3024 = vmatmul.msk.f32.vlgmr.msra.gmra.mxu3 %vm421_vm10, %v1743_v2 }
0x2e1d   :  { %2157 = vmatpush.msra.mxu3 %v3980_v3 }
0x2e1f   :  { %2158 = vmatpush.msra.mxu3 %v3986_v4 }
0x2e21   :  { %2159 = vmatpush.msra.mxu3 %v3992_v5 }
0x2e23   :  { %2160 = vmatpush.msra.mxu3 %v3813_v61 }
0x2e9f   :  { %v1766_v8 = vpop.f32.mrf.mxu3 }
0x2ea0   :  { %v1769_v9 = vadd.f32 %v1766_v8, %v351_v7 }
0x2ea2   :  { %3274 = vtanh.f32 %v1769_v9  ;;  %v3025_v56 = vmul.f32 -1.442695, %v1769_v9 }
0x2ea4   :  { %3276 = vpow2.f32 %v3025_v56  ;;  %v4031_v56 = vld [vmem:[%s4278_s4] ss:$0 sm:$0xff] }
0x2ea8   :  { %v3275_v10 = vpop.eup %3274 }
0x2ea9   :  { %1792 = vrot.lane.b32.xlu0 %v3275_v10, %s3402_s10 }
0x2eaa   :  { %v3277_v12 = vpop.eup %3276 }
0x2eab   :  { %v1773_v13 = vadd.f32 1.0, %v3277_v12  ;;  %v357_v12 = vadd.f32 %v4031_v56, %v3613_v46 }
0x2ead   :  { %3278 = vrcp.f32 %v1773_v13  ;;  %v1785_v21 = vand.u32 2147483648, %v1773_v13  ;;  %vm1779_vm6 = vweird.f32 %v1773_v13  ;;  %v1783_v22 = vand.u32 2147483647, %v1773_v13 }
0x2eaf   :  { %v1786_v24 = vor.u32 1.1754944e-38, %v1785_v21  ;;  %vm1784_vm8 = vcmp.eq.f32.partialorder %v1783_v22, 8.507059e+37 }
0x2eb1   :  { %131 = vperm.xlu0 %3109, %v57_v11  }
0x2eb3   :  { %v3279_v61 = vpop.eup %3278 }
0x2eb4   :  { %v1775_v14 = vmul.f32 %v3279_v61, %v1773_v13  ;;  %vm1780_vm5 = vweird.f32 %v3279_v61 }
0x2eb5   :  { %vm1781_vm7 = vmor %vm1779_vm6, %vm1780_vm5 }
0x2eb6   :  { %v1776_v15 = vsub.f32 1.0, %v1775_v14 }
0x2eb8   :  { %v1777_v19 = vmul.f32 %v3279_v61, %v1776_v15 }
0x2eba   :  { %v1778_v20 = vadd.f32 %v3279_v61, %v1777_v19 }
0x2ebc   :  { %v1782_v23 = vsel %vm1781_vm7, %v3279_v61, %v1778_v20 }
0x2ebd   :  { %v1787_v26 = vsel %vm1784_vm8, %v1786_v24, %v1782_v23 }
0x2ebe   :  { %v1790_v35 = vmul.f32 %v1787_v26, %v1734_v60 }
0x2f1b   :  { %v1793_v25 = vpop.permute.xlu0 %1792 }
0x2f1c   :  { %v1795_v31 = vmul.f32 %v1793_v25, %v1787_v26 }
0x2f1e   :  { %1797 = vrot.lane.b32.xlu1 %v1795_v31, %s3401_s30 }
0x2f23   :  { %v132_v34 = vpop.permute.xlu0 %131 }
0x2f24   :  { %vm181_vm9 = vcmp.eq.s32.totalorder %v3551_v30, %v132_v34  ;;  %v4014_v30 = vld [vmem:[%s4277_s3] sm:$0xff] }
0x2f25   :  { %2974 = vmatmul.msk.f32.gmra.mxu0 %vm181_vm9, %v3400_v32 }
0x2f90   :  { %v1798_v38 = vpop.permute.xlu1 %1797 }
0x2f91   :  { %v1800_v37 = vadd.f32 %v1798_v38, %v1790_v35 }
0x2f93   :  { %3280 = vtanh.f32 %v1800_v37 }
0x2f99   :  { %v3281_v39 = vpop.eup %3280 }
0x2f9a   :  { %1803 = vrot.lane.b32.xlu2 %v3281_v39, %s3402_s10 }
0x2fa2   :  { %v353_v32 = vpop.f32.mrf.mxu0 }
0x2fa3   :  { %v354_v41 = vadd.f32 %v3835_v36, %v353_v32 }
0x2ff4   :  { %v1804_v40 = vpop.permute.xlu2 %1803 }
0x2ff5   :  { %v1806_v16 = vmul.f32 %v1804_v40, %v1787_v26 }
0x2ff7   :  { %1808 = vrot.lane.b32.xlu1 %v1806_v16, %s3401_s30 }
0x3069   :  { %v1809_v17 = vpop.permute.xlu1 %1808 }
0x306a   :  { %1811 = vst.msk [vmem:[#allocation3 + $0xa0] sm:$0xff] %vm421_vm10, %v1809_v17  ;;  %3026 = vmatmul.msk.f32.vlgmr.msra.gmra.mxu1 %vm421_vm10, %v1809_v17 }
0x306b   :  { %2223 = vmatpush.msra.mxu1 %v3980_v3 }
0x306d   :  { %2224 = vmatpush.msra.mxu1 %v3986_v4 }
0x306f   :  { %2225 = vmatpush.msra.mxu1 %v3992_v5 }
0x3071   :  { %2226 = vmatpush.msra.mxu1 %v4014_v30 }
0x30e7   :  { %v1832_v18 = vpop.f32.mrf.mxu1 }
0x30e8   :  { %v1835_v42 = vadd.f32 %v1832_v18, %v354_v41 }
0x30ea   :  { %3282 = vtanh.f32 %v1835_v42  ;;  %v3027_v44 = vmul.f32 -1.442695, %v1835_v42  ;;  %v360_v42 = vadd.f32 %v4031_v56, %v3615_v47 }
0x30ec   :  { %3284 = vpow2.f32 %v3027_v44 }
0x30f0   :  { %v3283_v43 = vpop.eup %3282 }
0x30f1   :  { %1858 = vrot.lane.b32.xlu2 %v3283_v43, %s3402_s10 }
0x30f2   :  { %v3285_v45 = vpop.eup %3284 }
0x30f3   :  { %v1839_v55 = vadd.f32 1.0, %v3285_v45 }
0x30f5   :  { %3286 = vrcp.f32 %v1839_v55  ;;  %v1851_v33 = vand.u32 2147483648, %v1839_v55  ;;  %vm1845_vm12 = vweird.f32 %v1839_v55  ;;  %v1849_v36 = vand.u32 2147483647, %v1839_v55 }
0x30f7   :  { %v1852_v62 = vor.u32 1.1754944e-38, %v1851_v33  ;;  %vm1850_vm14 = vcmp.eq.f32.partialorder %v1849_v36, 8.507059e+37 }
0x30fb   :  { %v3287_v57 = vpop.eup %3286 }
0x30fc   :  { %v1841_v58 = vmul.f32 %v3287_v57, %v1839_v55  ;;  %vm1846_vm11 = vweird.f32 %v3287_v57 }
0x30fd   :  { %vm1847_vm13 = vmor %vm1845_vm12, %vm1846_vm11 }
0x30fe   :  { %v1842_v59 = vsub.f32 1.0, %v1841_v58 }
0x3100   :  { %v1843_v27 = vmul.f32 %v3287_v57, %v1842_v59 }
0x3102   :  { %v1844_v28 = vadd.f32 %v3287_v57, %v1843_v27 }
0x3104   :  { %v1848_v60 = vsel %vm1847_vm13, %v3287_v57, %v1844_v28 }
0x3105   :  { %v1853_v0 = vsel %vm1850_vm14, %v1852_v62, %v1848_v60 }
0x3106   :  { %v1856_v2 = vmul.f32 %v1853_v0, %v1800_v37 }
0x314b   :  { %v1859_v63 = vpop.permute.xlu2 %1858 }
0x314c   :  { %v1861_v1 = vmul.f32 %v1859_v63, %v1853_v0 }
0x314e   :  { %1863 = vrot.lane.b32.xlu0 %v1861_v1, %s3401_s30 }
0x31c0   :  { %v1864_v6 = vpop.permute.xlu0 %1863 }
0x31c1   :  { %v1866_v7 = vadd.f32 %v1864_v6, %v1856_v2 }
0x31c3   :  { %3288 = vtanh.f32 %v1866_v7 }
0x31c9   :  { %v3289_v8 = vpop.eup %3288 }
0x31ca   :  { %1869 = vrot.lane.b32.xlu1 %v3289_v8, %s3402_s10 }
0x323c   :  { %v1870_v9 = vpop.permute.xlu1 %1869 }
0x323d   :  { %v1872_v10 = vmul.f32 %v1870_v9, %v1853_v0 }
0x323f   :  { %1874 = vrot.lane.b32.xlu2 %v1872_v10, %s3401_s30 }
0x3299   :  { %v1875_v11 = vpop.permute.xlu2 %1874 }
0x329a   :  { %1877 = vst.msk [vmem:[#allocation3 + $0xa8] sm:$0xff] %vm421_vm10, %v1875_v11  ;;  %3028 = vmatmul.msk.f32.vlgmr.msrb.gmra.mxu2 %vm421_vm10, %v1875_v11 }
0x329b   :  { %2289 = vmatpush.msrb.mxu2 %v3980_v3 }
0x329d   :  { %2290 = vmatpush.msrb.mxu2 %v3986_v4 }
0x329f   :  { %2291 = vmatpush.msrb.mxu2 %v3992_v5 }
0x32a1   :  { %2292 = vmatpush.msrb.mxu2 %v4014_v30 }
0x331d   :  { %v1898_v13 = vpop.f32.mrf.mxu2 }
0x331e   :  { %v1901_v61 = vadd.f32 %v1898_v13, %v357_v12  ;;  %v363_v13 = vadd.f32 %v4031_v56, %v3617_v48 }
0x3320   :  { %3290 = vtanh.f32 %v1901_v61  ;;  %v3029_v15 = vmul.f32 -1.442695, %v1901_v61 }
0x3322   :  { %3292 = vpow2.f32 %v3029_v15 }
0x3326   :  { %v3291_v14 = vpop.eup %3290 }
0x3327   :  { %1924 = vrot.lane.b32.xlu0 %v3291_v14, %s3402_s10 }
0x3328   :  { %v3293_v19 = vpop.eup %3292 }
0x3329   :  { %v1905_v20 = vadd.f32 1.0, %v3293_v19 }
0x332b   :  { %3294 = vrcp.f32 %v1905_v20  ;;  %v1917_v26 = vand.u32 2147483648, %v1905_v20  ;;  %vm1911_vm0 = vweird.f32 %v1905_v20  ;;  %v1915_v46 = vand.u32 2147483647, %v1905_v20 }
0x332d   :  { %v1918_v34 = vor.u32 1.1754944e-38, %v1917_v26  ;;  %vm1916_vm2 = vcmp.eq.f32.partialorder %v1915_v46, 8.507059e+37 }
0x3331   :  { %v3295_v21 = vpop.eup %3294 }
0x3332   :  { %v1907_v22 = vmul.f32 %v3295_v21, %v1905_v20  ;;  %vm1912_vm15 = vweird.f32 %v3295_v21 }
0x3333   :  { %vm1913_vm1 = vmor %vm1911_vm0, %vm1912_vm15 }
0x3334   :  { %v1908_v23 = vsub.f32 1.0, %v1907_v22 }
0x3336   :  { %v1909_v24 = vmul.f32 %v3295_v21, %v1908_v23 }
0x3338   :  { %v1910_v25 = vadd.f32 %v3295_v21, %v1909_v24 }
0x333a   :  { %v1914_v31 = vsel %vm1913_vm1, %v3295_v21, %v1910_v25 }
0x333b   :  { %v1919_v38 = vsel %vm1916_vm2, %v1918_v34, %v1914_v31 }
0x333c   :  { %v1922_v39 = vmul.f32 %v1919_v38, %v1866_v7 }
0x3399   :  { %v1925_v35 = vpop.permute.xlu0 %1924 }
0x339a   :  { %v1927_v37 = vmul.f32 %v1925_v35, %v1919_v38 }
0x339c   :  { %1929 = vrot.lane.b32.xlu1 %v1927_v37, %s3401_s30 }
0x340e   :  { %v1930_v40 = vpop.permute.xlu1 %1929 }
0x340f   :  { %v1932_v16 = vadd.f32 %v1930_v40, %v1922_v39 }
0x3411   :  { %3296 = vtanh.f32 %v1932_v16 }
0x3417   :  { %v3297_v17 = vpop.eup %3296 }
0x3418   :  { %1935 = vrot.lane.b32.xlu2 %v3297_v17, %s3402_s10  ;;  %v366_v17 = vadd.f32 %v4031_v56, %v3619_v49 }
0x3472   :  { %v1936_v32 = vpop.permute.xlu2 %1935 }
0x3473   :  { %v1938_v41 = vmul.f32 %v1936_v32, %v1919_v38 }
0x3475   :  { %1940 = vrot.lane.b32.xlu0 %v1938_v41, %s3401_s30 }
0x34e7   :  { %v1941_v18 = vpop.permute.xlu0 %1940 }
0x34e8   :  { %1943 = vst.msk [vmem:[#allocation3 + $0xb0] sm:$0xff] %vm421_vm10, %v1941_v18  ;;  %3030 = vmatmul.msk.f32.vlgmr.msrb.gmra.mxu3 %vm421_vm10, %v1941_v18 }
0x34e9   :  { %2355 = vmatpush.msrb.mxu3 %v3980_v3 }
0x34eb   :  { %2356 = vmatpush.msrb.mxu3 %v3986_v4 }
0x34ed   :  { %2357 = vmatpush.msrb.mxu3 %v3992_v5 }
0x34ef   :  { %2358 = vmatpush.msrb.mxu3 %v4014_v30 }
0x356b   :  { %v1964_v43 = vpop.f32.mrf.mxu3 }
0x356c   :  { %v1967_v44 = vadd.f32 %v1964_v43, %v360_v42 }
0x356e   :  { %3298 = vtanh.f32 %v1967_v44  ;;  %v3031_v55 = vmul.f32 -1.442695, %v1967_v44 }
0x3570   :  { %3300 = vpow2.f32 %v3031_v55 }
0x3574   :  { %v3299_v45 = vpop.eup %3298 }
0x3575   :  { %1990 = vrot.lane.b32.xlu1 %v3299_v45, %s3402_s10 }
0x3576   :  { %v3301_v57 = vpop.eup %3300 }
0x3577   :  { %v1971_v58 = vadd.f32 1.0, %v3301_v57 }
0x3579   :  { %3302 = vrcp.f32 %v1971_v58  ;;  %v1983_v60 = vand.u32 2147483648, %v1971_v58  ;;  %vm1977_vm4 = vweird.f32 %v1971_v58  ;;  %v1981_v47 = vand.u32 2147483647, %v1971_v58 }
0x357b   :  { %v1984_v63 = vor.u32 1.1754944e-38, %v1983_v60  ;;  %vm1982_vm6 = vcmp.eq.f32.partialorder %v1981_v47, 8.507059e+37 }
0x357f   :  { %v3303_v59 = vpop.eup %3302 }
0x3580   :  { %v1973_v27 = vmul.f32 %v3303_v59, %v1971_v58  ;;  %vm1978_vm3 = vweird.f32 %v3303_v59 }
0x3581   :  { %vm1979_vm5 = vmor %vm1977_vm4, %vm1978_vm3 }
0x3582   :  { %v1974_v28 = vsub.f32 1.0, %v1973_v27 }
0x3584   :  { %v1975_v33 = vmul.f32 %v3303_v59, %v1974_v28 }
0x3586   :  { %v1976_v36 = vadd.f32 %v3303_v59, %v1975_v33 }
0x3588   :  { %v1980_v62 = vsel %vm1979_vm5, %v3303_v59, %v1976_v36 }
0x3589   :  { %v1985_v1 = vsel %vm1982_vm6, %v1984_v63, %v1980_v62 }
0x358a   :  { %v1988_v6 = vmul.f32 %v1985_v1, %v1932_v16 }
0x35e7   :  { %v1991_v0 = vpop.permute.xlu1 %1990 }
0x35e8   :  { %v1993_v2 = vmul.f32 %v1991_v0, %v1985_v1 }
0x35ea   :  { %1995 = vrot.lane.b32.xlu2 %v1993_v2, %s3401_s30 }
0x3644   :  { %v1996_v7 = vpop.permute.xlu2 %1995 }
0x3645   :  { %v1998_v8 = vadd.f32 %v1996_v7, %v1988_v6 }
0x3647   :  { %3304 = vtanh.f32 %v1998_v8 }
0x364d   :  { %v3305_v9 = vpop.eup %3304 }
0x364e   :  { %2001 = vrot.lane.b32.xlu0 %v3305_v9, %s3402_s10 }
0x36c0   :  { %v2002_v10 = vpop.permute.xlu0 %2001 }
0x36c1   :  { %v2004_v11 = vmul.f32 %v2002_v10, %v1985_v1 }
0x36c3   :  { %2006 = vrot.lane.b32.xlu1 %v2004_v11, %s3401_s30 }
0x3735   :  { %v2007_v12 = vpop.permute.xlu1 %2006 }
0x3736   :  { %2009 = vst.msk [vmem:[#allocation3 + $0xb8] sm:$0xff] %vm421_vm10, %v2007_v12  ;;  %3032 = vmatmul.msk.f32.vlgmr.msrb.gmra.mxu1 %vm421_vm10, %v2007_v12 }
0x3737   :  { %2421 = vmatpush.msrb.mxu1 %v3980_v3 }
0x3739   :  { %2422 = vmatpush.msrb.mxu1 %v3986_v4 }
0x373b   :  { %2423 = vmatpush.msrb.mxu1 %v3992_v5 }
0x373d   :  { %2424 = vmatpush.msrb.mxu1 %v4014_v30 }
0x37b3   :  { %v2030_v61 = vpop.f32.mrf.mxu1 }
0x37b4   :  { %v2033_v14 = vadd.f32 %v2030_v61, %v363_v13 }
0x37b6   :  { %3306 = vtanh.f32 %v2033_v14  ;;  %v3033_v19 = vmul.f32 -1.442695, %v2033_v14 }
0x37b8   :  { %3308 = vpow2.f32 %v3033_v19 }
0x37bc   :  { %v3307_v15 = vpop.eup %3306 }
0x37bd   :  { %2056 = vrot.lane.b32.xlu2 %v3307_v15, %s3402_s10 }
0x37be   :  { %v3309_v20 = vpop.eup %3308 }
0x37bf   :  { %v2037_v21 = vadd.f32 1.0, %v3309_v20 }
0x37c1   :  { %3310 = vrcp.f32 %v2037_v21  ;;  %v2049_v30 = vand.u32 2147483648, %v2037_v21  ;;  %vm2043_vm8 = vweird.f32 %v2037_v21  ;;  %v2047_v48 = vand.u32 2147483647, %v2037_v21 }
0x37c3   :  { %v2050_v25 = vor.u32 1.1754944e-38, %v2049_v30  ;;  %vm2048_vm11 = vcmp.eq.f32.partialorder %v2047_v48, 8.507059e+37 }
0x37c7   :  { %v3311_v3 = vpop.eup %3310 }
0x37c8   :  { %v2039_v4 = vmul.f32 %v3311_v3, %v2037_v21  ;;  %vm2044_vm7 = vweird.f32 %v3311_v3 }
0x37c9   :  { %vm2045_vm9 = vmor %vm2043_vm8, %vm2044_vm7 }
0x37ca   :  { %v2040_v22 = vsub.f32 1.0, %v2039_v4 }
0x37cc   :  { %v2041_v5 = vmul.f32 %v3311_v3, %v2040_v22 }
0x37ce   :  { %v2042_v23 = vadd.f32 %v3311_v3, %v2041_v5 }
0x37d0   :  { %v2046_v24 = vsel %vm2045_vm9, %v3311_v3, %v2042_v23 }
0x37d1   :  { %v2051_v46 = vsel %vm2048_vm11, %v2050_v25, %v2046_v24 }
0x37d2   :  { %v2054_v34 = vmul.f32 %v2051_v46, %v1998_v8  ;;  %v369_v8 = vadd.f32 %v4031_v56, %v3621_v50 }
0x3817   :  { %v2057_v26 = vpop.permute.xlu2 %2056 }
0x3818   :  { %v2059_v31 = vmul.f32 %v2057_v26, %v2051_v46 }
0x381a   :  { %2061 = vrot.lane.b32.xlu0 %v2059_v31, %s3401_s30 }
0x388c   :  { %v2062_v35 = vpop.permute.xlu0 %2061 }
0x388d   :  { %v2064_v38 = vadd.f32 %v2062_v35, %v2054_v34  ;;  %v372_v35 = vadd.f32 %v4031_v56, %v3623_v51 }
0x388f   :  { %3312 = vtanh.f32 %v2064_v38 }
0x3895   :  { %v3313_v37 = vpop.eup %3312 }
0x3896   :  { %2067 = vrot.lane.b32.xlu1 %v3313_v37, %s3402_s10 }
0x3908   :  { %v2068_v39 = vpop.permute.xlu1 %2067 }
0x3909   :  { %v2070_v40 = vmul.f32 %v2068_v39, %v2051_v46 }
0x390b   :  { %2072 = vrot.lane.b32.xlu2 %v2070_v40, %s3401_s30 }
0x3965   :  { %v2073_v16 = vpop.permute.xlu2 %2072 }
0x3966   :  { %2075 = vst.msk [vmem:[#allocation3 + $0xc0] sm:$0xff] %vm421_vm10, %v2073_v16  ;;  %3034 = vmatmul.msk.f32.vlgmr.msra.gmra.mxu2 %vm421_vm10, %v2073_v16 }
0x39e9   :  { %v2096_v32 = vpop.f32.mrf.mxu2 }
0x39ea   :  { %v2099_v41 = vadd.f32 %v2096_v32, %v366_v17 }
0x39ec   :  { %3314 = vtanh.f32 %v2099_v41  ;;  %v3035_v42 = vmul.f32 -1.442695, %v2099_v41 }
0x39ee   :  { %3316 = vpow2.f32 %v3035_v42 }
0x39f2   :  { %v3315_v18 = vpop.eup %3314 }
0x39f3   :  { %2122 = vrot.lane.b32.xlu0 %v3315_v18, %s3402_s10 }
0x39f4   :  { %v3317_v43 = vpop.eup %3316 }
0x39f5   :  { %v2103_v44 = vadd.f32 1.0, %v3317_v43 }
0x39f7   :  { %3318 = vrcp.f32 %v2103_v44  ;;  %v2115_v27 = vand.u32 2147483648, %v2103_v44  ;;  %vm2109_vm13 = vweird.f32 %v2103_v44  ;;  %v2113_v49 = vand.u32 2147483647, %v2103_v44 }
0x39f9   :  { %v2116_v33 = vor.u32 1.1754944e-38, %v2115_v27  ;;  %vm2114_vm15 = vcmp.eq.f32.partialorder %v2113_v49, 8.507059e+37 }
0x39fd   :  { %v3319_v45 = vpop.eup %3318 }
0x39fe   :  { %v2105_v55 = vmul.f32 %v3319_v45, %v2103_v44  ;;  %vm2110_vm12 = vweird.f32 %v3319_v45 }
0x39ff   :  { %vm2111_vm14 = vmor %vm2109_vm13, %vm2110_vm12 }
0x3a00   :  { %v2106_v57 = vsub.f32 1.0, %v2105_v55 }
0x3a02   :  { %v2107_v58 = vmul.f32 %v3319_v45, %v2106_v57 }
0x3a04   :  { %v2108_v59 = vadd.f32 %v3319_v45, %v2107_v58 }
0x3a06   :  { %v2112_v28 = vsel %vm2111_vm14, %v3319_v45, %v2108_v59 }
0x3a07   :  { %v2117_v60 = vsel %vm2114_vm15, %v2116_v33, %v2112_v28 }
0x3a08   :  { %v2120_v62 = vmul.f32 %v2117_v60, %v2064_v38 }
0x3a65   :  { %v2123_v36 = vpop.permute.xlu0 %2122 }
0x3a66   :  { %v2125_v47 = vmul.f32 %v2123_v36, %v2117_v60 }
0x3a68   :  { %2127 = vrot.lane.b32.xlu1 %v2125_v47, %s3401_s30  ;;  %v2506_v47 = vld [vmem:[%s4279_s5 + $0x18] sm:$0xff] }
0x3a69   :  { %3094 = vmatpush.msra.mxu2 %v2506_v47 }
0x3ada   :  { %v2128_v63 = vpop.permute.xlu1 %2127 }
0x3adb   :  { %v2130_v0 = vadd.f32 %v2128_v63, %v2120_v62  ;;  %v2505_v62 = vld [vmem:[%s4279_s5 + $0x10] sm:$0xff]  ;;  %v2504_v63 = vld [vmem:[%s4279_s5 + $0x8] sm:$0xff] }
0x3adc   :  { %3096 = vmatpush.msra.mxu2 %v2505_v62 }
0x3add   :  { %3320 = vtanh.f32 %v2130_v0 }
0x3ade   :  { %3098 = vmatpush.msra.mxu2 %v2504_v63 }
0x3ae3   :  { %v3321_v1 = vpop.eup %3320 }
0x3ae4   :  { %2133 = vrot.lane.b32.xlu2 %v3321_v1, %s3402_s10 }
0x3b3e   :  { %v2134_v2 = vpop.permute.xlu2 %2133 }
0x3b3f   :  { %v2136_v6 = vmul.f32 %v2134_v2, %v2117_v60  ;;  %v2474_v2 = vld [vmem:[#allocation3 + $0x10] sm:$0xff] }
0x3b41   :  { %2138 = vrot.lane.b32.xlu0 %v2136_v6, %s3401_s30  ;;  %v2475_v6 = vld [vmem:[#allocation3 + $0x18] sm:$0xff] }
0x3bb3   :  { %v2139_v7 = vpop.permute.xlu0 %2138 }
0x3bb4   :  { %2141 = vst.msk [vmem:[#allocation3 + $0xc8] sm:$0xff] %vm421_vm10, %v2139_v7  ;;  %3036 = vmatmul.msk.f32.vlgmr.msra.gmra.mxu3 %vm421_vm10, %v2139_v7  ;;  %v2476_v7 = vld [vmem:[#allocation3 + $0x20] sm:$0xff] }
0x3bb5   :  { %3095 = vmatpush.msra.mxu3 %v2506_v47 }
0x3bb7   :  { %3097 = vmatpush.msra.mxu3 %v2505_v62 }
0x3bb9   :  { %3099 = vmatpush.msra.mxu3 %v2504_v63 }
0x3c37   :  { %v2162_v9 = vpop.f32.mrf.mxu3 }
0x3c38   :  { %v2165_v10 = vadd.f32 %v2162_v9, %v369_v8  ;;  %v2477_v8 = vld [vmem:[#allocation3 + $0x28] sm:$0xff]  ;;  %v2478_v9 = vld [vmem:[#allocation3 + $0x30] sm:$0xff] }
0x3c3a   :  { %3322 = vtanh.f32 %v2165_v10  ;;  %v3037_v12 = vmul.f32 -1.442695, %v2165_v10  ;;  %v2479_v10 = vld [vmem:[#allocation3 + $0x38] sm:$0xff] }
0x3c3c   :  { %3324 = vpow2.f32 %v3037_v12  ;;  %v2481_v12 = vld [vmem:[#allocation3 + $0x48] sm:$0xff] }
0x3c40   :  { %v3323_v11 = vpop.eup %3322 }
0x3c41   :  { %2188 = vrot.lane.b32.xlu1 %v3323_v11, %s3402_s10  ;;  %v2480_v11 = vld [vmem:[#allocation3 + $0x40] sm:$0xff] }
0x3c42   :  { %v3325_v13 = vpop.eup %3324 }
0x3c43   :  { %v2169_v61 = vadd.f32 1.0, %v3325_v13  ;;  %v2482_v13 = vld [vmem:[#allocation3 + $0x50] sm:$0xff] }
0x3c45   :  { %3326 = vrcp.f32 %v2169_v61  ;;  %v2181_v3 = vand.u32 2147483648, %v2169_v61  ;;  %vm2175_vm1 = vweird.f32 %v2169_v61  ;;  %v2179_v50 = vand.u32 2147483647, %v2169_v61 }
0x3c47   :  { %v2182_v22 = vor.u32 1.1754944e-38, %v2181_v3  ;;  %vm2180_vm3 = vcmp.eq.f32.partialorder %v2179_v50, 8.507059e+37  ;;  %v4121_v50 = vshrl.u32 %v34_v29, 7 }
0x3c4b   :  { %v3327_v14 = vpop.eup %3326 }
0x3c4c   :  { %v2171_v15 = vmul.f32 %v3327_v14, %v2169_v61  ;;  %vm2176_vm0 = vweird.f32 %v3327_v14  ;;  %v2483_v61 = vld [vmem:[#allocation3 + $0x58] sm:$0xff] }
0x3c4d   :  { %vm2177_vm2 = vmor %vm2175_vm1, %vm2176_vm0 }
0x3c4e   :  { %v2172_v19 = vsub.f32 1.0, %v2171_v15  ;;  %v2485_v15 = vld [vmem:[#allocation3 + $0x68] sm:$0xff] }
0x3c50   :  { %v2173_v20 = vmul.f32 %v3327_v14, %v2172_v19  ;;  %v2486_v19 = vld [vmem:[#allocation3 + $0x70] sm:$0xff] }
0x3c52   :  { %v2174_v21 = vadd.f32 %v3327_v14, %v2173_v20  ;;  %v2487_v20 = vld [vmem:[#allocation3 + $0x78] sm:$0xff] }
0x3c54   :  { %v2178_v4 = vsel %vm2177_vm2, %v3327_v14, %v2174_v21  ;;  %v2484_v14 = vld [vmem:[#allocation3 + $0x60] sm:$0xff]  ;;  %v375_v21 = vadd.f32 %v4031_v56, %v3625_v52 }
0x3c55   :  { %v2183_v23 = vsel %vm2180_vm3, %v2182_v22, %v2178_v4  ;;  %v2717_v22 = vadd.s32 16, %v4121_v50 }
0x3c56   :  { %v2186_v48 = vmul.f32 %v2183_v23, %v2130_v0  ;;  %v2503_v0 = vld [vmem:[%s4279_s5] sm:$0xff] }
0x3c57   :  { %3100 = vmatpush.msra.mxu2 %v2503_v0  ;;  %3101 = vmatpush.msra.mxu3 %v2503_v0 }
0x3cb3   :  { %v2189_v5 = vpop.permute.xlu1 %2188 }
0x3cb4   :  { %v2191_v30 = vmul.f32 %v2189_v5, %v2183_v23  ;;  %v4130_v5 = vld [vmem:[%s4280_s6] ss:$0 sm:$0xff] }
0x3cb6   :  { %2193 = vrot.lane.b32.xlu2 %v2191_v30, %s3401_s30 }
0x3d10   :  { %v2194_v24 = vpop.permute.xlu2 %2193 }
0x3d11   :  { %v2196_v25 = vadd.f32 %v2194_v24, %v2186_v48  ;;  %v2718_v24 = vadd.s32 24, %v4121_v50 }
0x3d13   :  { %3328 = vtanh.f32 %v2196_v25 }
0x3d19   :  { %v3329_v26 = vpop.eup %3328 }
0x3d1a   :  { %2199 = vrot.lane.b32.xlu0 %v3329_v26, %s3402_s10 }
0x3d8c   :  { %v2200_v46 = vpop.permute.xlu0 %2199 }
0x3d8d   :  { %v2202_v31 = vmul.f32 %v2200_v46, %v2183_v23  ;;  %v4132_v23 = vstv %s3077_s14 }
0x3d8e   :  { %vm2751_vm8 = vcmp.lt.s32.totalorder %v2717_v22, %v4132_v23  ;;  %vm2752_vm9 = vcmp.lt.s32.totalorder %v2718_v24, %v4132_v23 }
0x3d8f   :  { %2204 = vrot.lane.b32.xlu1 %v2202_v31, %s3401_s30  ;;  %v2719_v31 = vadd.s32 32, %v4121_v50 }
0x3d91   :  { %vm2753_vm11 = vcmp.lt.s32.totalorder %v2719_v31, %v4132_v23 }
0x3e01   :  { %v2205_v34 = vpop.permute.xlu1 %2204 }
0x3e02   :  { %2207 = vst.msk [vmem:[#allocation3 + $0xd0] sm:$0xff] %vm421_vm10, %v2205_v34  ;;  %3038 = vmatmul.msk.f32.vlgmr.msra.gmra.mxu1 %vm421_vm10, %v2205_v34 }
0x3e03   :  { %2616 = vmatpush.msra.mxu1 %v2506_v47 }
0x3e05   :  { %2617 = vmatpush.msra.mxu1 %v2505_v62 }
0x3e07   :  { %2618 = vmatpush.msra.mxu1 %v2504_v63  ;;  %v2726_v63 = vadd.s32 88, %v4121_v50 }
0x3e09   :  { %2619 = vmatpush.msra.mxu1 %v2503_v0  ;;  %vm2760_vm2 = vcmp.lt.s32.totalorder %v2726_v63, %v4132_v23  ;;  %v2731_v63 = vadd.s32 128, %v4121_v50 }
0x3e7f   :  { %v2228_v38 = vpop.f32.mrf.mxu1 }
0x3e80   :  { %v2231_v37 = vadd.f32 %v2228_v38, %v372_v35 }
0x3e82   :  { %3330 = vtanh.f32 %v2231_v37  ;;  %v3039_v40 = vmul.f32 -1.442695, %v2231_v37  ;;  %v2720_v37 = vadd.s32 40, %v4121_v50 }
0x3e84   :  { %3332 = vpow2.f32 %v3039_v40  ;;  %vm2754_vm12 = vcmp.lt.s32.totalorder %v2720_v37, %v4132_v23 }
0x3e88   :  { %v3331_v39 = vpop.eup %3330 }
0x3e89   :  { %2254 = vrot.lane.b32.xlu2 %v3331_v39, %s3402_s10 }
0x3e8a   :  { %v3333_v16 = vpop.eup %3332 }
0x3e8b   :  { %v2235_v17 = vadd.f32 1.0, %v3333_v16 }
0x3e8d   :  { %3334 = vrcp.f32 %v2235_v17  ;;  %v2247_v44 = vand.u32 2147483648, %v2235_v17  ;;  %vm2241_vm5 = vweird.f32 %v2235_v17  ;;  %v2245_v51 = vand.u32 2147483647, %v2235_v17 }
0x3e8f   :  { %v2248_v55 = vor.u32 1.1754944e-38, %v2247_v44  ;;  %vm2246_vm7 = vcmp.eq.f32.partialorder %v2245_v51, 8.507059e+37 }
0x3e93   :  { %v3335_v32 = vpop.eup %3334 }
0x3e94   :  { %v2237_v41 = vmul.f32 %v3335_v32, %v2235_v17  ;;  %vm2242_vm4 = vweird.f32 %v3335_v32  ;;  %v2721_v17 = vadd.s32 48, %v4121_v50 }
0x3e95   :  { %vm2243_vm6 = vmor %vm2241_vm5, %vm2242_vm4 }
0x3e96   :  { %v2238_v18 = vsub.f32 1.0, %v2237_v41  ;;  %vm2755_vm13 = vcmp.lt.s32.totalorder %v2721_v17, %v4132_v23 }
0x3e98   :  { %v2239_v42 = vmul.f32 %v3335_v32, %v2238_v18 }
0x3e9a   :  { %v2240_v43 = vadd.f32 %v3335_v32, %v2239_v42  ;;  %v2722_v42 = vadd.s32 56, %v4121_v50 }
0x3e9c   :  { %v2244_v45 = vsel %vm2243_vm6, %v3335_v32, %v2240_v43  ;;  %vm2756_vm14 = vcmp.lt.s32.totalorder %v2722_v42, %v4132_v23 }
0x3e9d   :  { %v2249_v58 = vsel %vm2246_vm7, %v2248_v55, %v2244_v45  ;;  %v2723_v45 = vadd.s32 64, %v4121_v50 }
0x3e9e   :  { %v2252_v27 = vmul.f32 %v2249_v58, %v2196_v25 }
0x3e9f   :  { %vm2757_vm15 = vcmp.lt.s32.totalorder %v2723_v45, %v4132_v23  ;;  %v2492_v45 = vld [vmem:[#allocation3 + $0xa0] sm:$0xff] }
0x3ee3   :  { %v2255_v57 = vpop.permute.xlu2 %2254 }
0x3ee4   :  { %v2257_v59 = vmul.f32 %v2255_v57, %v2249_v58 }
0x3ee6   :  { %2259 = vrot.lane.b32.xlu0 %v2257_v59, %s3401_s30  ;;  %v2724_v59 = vadd.s32 72, %v4121_v50 }
0x3ee8   :  { %vm2758_vm0 = vcmp.lt.s32.totalorder %v2724_v59, %v4132_v23  ;;  %v2496_v59 = vld [vmem:[#allocation3 + $0xc0] sm:$0xff] }
0x3f58   :  { %v2260_v49 = vpop.permute.xlu0 %2259 }
0x3f59   :  { %v4085_v28 = vadd.f32 %v2260_v49, %v2252_v27 }
0x3f5b   :  { %3336 = vtanh.f32 %v4085_v28 }
0x3f61   :  { %v3337_v33 = vpop.eup %3336 }
0x3f62   :  { %2265 = vrot.lane.b32.xlu1 %v3337_v33, %s3402_s10 }
0x3fd4   :  { %v2266_v36 = vpop.permute.xlu1 %2265 }
0x3fd5   :  { %v2268_v60 = vmul.f32 %v2266_v36, %v2249_v58  ;;  %v2725_v36 = vadd.s32 80, %v4121_v50 }
0x3fd7   :  { %2270 = vrot.lane.b32.xlu2 %v2268_v60, %s3401_s30  ;;  %vm2759_vm1 = vcmp.lt.s32.totalorder %v2725_v36, %v4132_v23 }
0x4031   :  { %v2271_v1 = vpop.permute.xlu2 %2270 }
0x4032   :  { %2273 = vst.msk [vmem:[#allocation3 + $0xd8] sm:$0xff] %vm421_vm10, %v2271_v1  ;;  %3040 = vmatmul.msk.f32.vlgmr.msrb.gmra.mxu2 %vm421_vm10, %v2271_v1 }
0x403a   :  { %3048 = vmatmul.msk.f32.vlgmr.msra.gmra.mxu2 %vm421_vm10, %v2474_v2 }
0x4042   :  { %3049 = vmatmul.msk.f32.gmra.mxu2 %vm421_vm10, %v2475_v6 }
0x404a   :  { %3050 = vmatmul.msk.f32.gmra.mxu2 %vm421_vm10, %v2476_v7  ;;  %v2727_v7 = vadd.s32 96, %v4121_v50 }
0x404c   :  { %vm2761_vm3 = vcmp.lt.s32.totalorder %v2727_v7, %v4132_v23  ;;  %v2732_v7 = vadd.s32 136, %v4121_v50 }
0x4052   :  { %3051 = vmatmul.msk.f32.gmra.mxu2 %vm421_vm10, %v2477_v8 }
0x405a   :  { %3052 = vmatmul.msk.f32.gmra.mxu2 %vm421_vm10, %v2478_v9 }
0x4062   :  { %3053 = vmatmul.msk.f32.gmra.mxu2 %vm421_vm10, %v2479_v10 }
0x406a   :  { %3054 = vmatmul.msk.f32.gmra.mxu2 %vm421_vm10, %v2480_v11 }
0x4072   :  { %3055 = vmatmul.msk.f32.gmra.mxu2 %vm421_vm10, %v2481_v12 }
0x407a   :  { %3056 = vmatmul.msk.f32.gmra.mxu2 %vm421_vm10, %v2482_v13  ;;  %v2728_v13 = vadd.s32 104, %v4121_v50 }
0x407c   :  { %vm2762_vm4 = vcmp.lt.s32.totalorder %v2728_v13, %v4132_v23  ;;  %v2734_v13 = vadd.s32 152, %v4121_v50 }
0x4082   :  { %3057 = vmatmul.msk.f32.gmra.mxu2 %vm421_vm10, %v2483_v61 }
0x408a   :  { %3058 = vmatmul.msk.f32.gmra.mxu2 %vm421_vm10, %v2484_v14 }
0x4092   :  { %3059 = vmatmul.msk.f32.gmra.mxu2 %vm421_vm10, %v2485_v15 }
0x409a   :  { %3060 = vmatmul.msk.f32.gmra.mxu2 %vm421_vm10, %v2486_v19  ;;  %v2729_v19 = vadd.s32 112, %v4121_v50 }
0x409c   :  { %vm2763_vm5 = vcmp.lt.s32.totalorder %v2729_v19, %v4132_v23  ;;  %v2735_v19 = vadd.s32 160, %v4121_v50 }
0x40a2   :  { %3061 = vmatmul.msk.f32.gmra.mxu2 %vm421_vm10, %v2487_v20 }
0x40b5   :  { %v2294_v3 = vpop.f32.mrf.mxu2 }
0x40b6   :  { %v2297_v4 = vadd.f32 %v2294_v3, %v375_v21 }
0x40b8   :  { %3338 = vtanh.f32 %v2297_v4  ;;  %v3041_v0 = vmul.f32 -1.442695, %v2297_v4 }
0x40ba   :  { %3340 = vpow2.f32 %v3041_v0 }
0x40bd   :  { %v2627_v52 = vpop.f32.mrf.mxu2 }
0x40be   :  { %v3339_v29 = vpop.eup %3338  ;;  %v2628_v30 = vadd.f32 %v4130_v5, %v2627_v52  ;;  %v2730_v52 = vadd.s32 120, %v4121_v50 }
0x40bf   :  { %2320 = vrot.lane.b32.xlu0 %v3339_v29, %s3402_s10 }
0x40c0   :  { %v2844_v48 = vsel %vm2751_vm8, %v2628_v30, 0.0  ;;  %v3341_v9 = vpop.eup %3340  ;;  %vm2764_vm6 = vcmp.lt.s32.totalorder %v2730_v52, %v4132_v23 }
0x40c1   :  { %2875 = vst [vmem:[#allocation5 + $0x10] sm:$0xff] %v2844_v48  ;;  %v2301_v12 = vadd.f32 1.0, %v3341_v9  ;;  %v2733_v9 = vadd.s32 144, %v4121_v50 }
0x40c3   :  { %3342 = vrcp.f32 %v2301_v12  ;;  %vm2307_vm8 = vweird.f32 %v2301_v12  ;;  %v2311_v31 = vand.u32 2147483647, %v2301_v12 }
0x40c5   :  { %v2630_v25 = vpop.f32.mrf.mxu2 }
0x40c6   :  { %v2631_v26 = vadd.f32 %v4130_v5, %v2630_v25 }
0x40c8   :  { %v2845_v46 = vsel %vm2752_vm9, %v2631_v26, 0.0 }
0x40c9   :  { %2876 = vst [vmem:[#allocation5 + $0x18] sm:$0xff] %v2845_v46  ;;  %v3343_v20 = vpop.eup %3342  ;;  %v2313_v46 = vand.u32 2147483648, %v2301_v12 }
0x40ca   :  { %v2303_v4 = vmul.f32 %v3343_v20, %v2301_v12  ;;  %vm2308_vm7 = vweird.f32 %v3343_v20 }
0x40cb   :  { %vm2309_vm9 = vmor %vm2307_vm8, %vm2308_vm7 }
0x40cc   :  { %v2304_v29 = vsub.f32 1.0, %v2303_v4  ;;  %v2736_v4 = vadd.s32 168, %v4121_v50 }
0x40cd   :  { %v2633_v34 = vpop.f32.mrf.mxu2 }
0x40ce   :  { %v2634_v35 = vadd.f32 %v4130_v5, %v2633_v34  ;;  %v2305_v24 = vmul.f32 %v3343_v20, %v2304_v29 }
0x40d0   :  { %v2846_v38 = vsel %vm2753_vm11, %v2634_v35, 0.0  ;;  %v2306_v26 = vadd.f32 %v3343_v20, %v2305_v24  ;;  %v2314_v35 = vor.u32 1.1754944e-38, %v2313_v46  ;;  %vm2312_vm11 = vcmp.eq.f32.partialorder %v2311_v31, 8.507059e+37 }
0x40d1   :  { %2877 = vst [vmem:[#allocation5 + $0x20] sm:$0xff] %v2846_v38 }
0x40d2   :  { %v2310_v34 = vsel %vm2309_vm9, %v3343_v20, %v2306_v26  ;;  %v2738_v26 = vadd.s32 184, %v4121_v50 }
0x40d3   :  { %v2315_v37 = vsel %vm2312_vm11, %v2314_v35, %v2310_v34  ;;  %v2739_v35 = vadd.s32 192, %v4121_v50 }
0x40d5   :  { %v2636_v39 = vpop.f32.mrf.mxu2 }
0x40d6   :  { %v2637_v40 = vadd.f32 %v4130_v5, %v2636_v39 }
0x40d8   :  { %v2847_v16 = vsel %vm2754_vm12, %v2637_v40, 0.0  ;;  %v2318_v40 = vmul.f32 %v2315_v37, %v4085_v28  ;;  %v2489_v28 = vld [vmem:[#allocation3 + $0x88] sm:$0xff]  ;;  %vm2765_vm12 = vcmp.lt.s32.totalorder %v2731_v63, %v4132_v23 }
0x40d9   :  { %2878 = vst [vmem:[#allocation5 + $0x28] sm:$0xff] %v2847_v16 }
0x40dd   :  { %v2639_v32 = vpop.f32.mrf.mxu2 }
0x40de   :  { %v2640_v41 = vadd.f32 %v4130_v5, %v2639_v32 }
0x40e0   :  { %v2848_v18 = vsel %vm2755_vm13, %v2640_v41, 0.0  ;;  %vm2766_vm13 = vcmp.lt.s32.totalorder %v2732_v7, %v4132_v23 }
0x40e1   :  { %2879 = vst [vmem:[#allocation5 + $0x30] sm:$0xff] %v2848_v18 }
0x40e5   :  { %v2642_v43 = vpop.f32.mrf.mxu2 }
0x40e6   :  { %v2643_v44 = vadd.f32 %v4130_v5, %v2642_v43  ;;  %v2488_v43 = vld [vmem:[#allocation3 + $0x80] sm:$0xff] }
0x40e8   :  { %v2849_v51 = vsel %vm2756_vm14, %v2643_v44, 0.0  ;;  %v2490_v44 = vld [vmem:[#allocation3 + $0x90] sm:$0xff]  ;;  %vm2767_vm14 = vcmp.lt.s32.totalorder %v2733_v9, %v4132_v23 }
0x40e9   :  { %2880 = vst [vmem:[#allocation5 + $0x38] sm:$0xff] %v2849_v51  ;;  %v2491_v51 = vld [vmem:[#allocation3 + $0x98] sm:$0xff] }
0x40ed   :  { %v2645_v55 = vpop.f32.mrf.mxu2 }
0x40ee   :  { %v2646_v57 = vadd.f32 %v4130_v5, %v2645_v55  ;;  %v2493_v55 = vld [vmem:[#allocation3 + $0xa8] sm:$0xff] }
0x40f0   :  { %v2850_v58 = vsel %vm2757_vm15, %v2646_v57, 0.0  ;;  %v2494_v57 = vld [vmem:[#allocation3 + $0xb0] sm:$0xff]  ;;  %vm2768_vm15 = vcmp.lt.s32.totalorder %v2734_v13, %v4132_v23 }
0x40f1   :  { %2881 = vst [vmem:[#allocation5 + $0x40] sm:$0xff] %v2850_v58  ;;  %v2495_v58 = vld [vmem:[#allocation3 + $0xb8] sm:$0xff] }
0x40f5   :  { %v2648_v27 = vpop.f32.mrf.mxu2 }
0x40f6   :  { %v2649_v49 = vadd.f32 %v4130_v5, %v2648_v27  ;;  %v2497_v27 = vld [vmem:[#allocation3 + $0xc8] sm:$0xff] }
0x40f8   :  { %v2851_v33 = vsel %vm2758_vm0, %v2649_v49, 0.0  ;;  %v2498_v49 = vld [vmem:[#allocation3 + $0xd0] sm:$0xff]  ;;  %vm2769_vm0 = vcmp.lt.s32.totalorder %v2735_v19, %v4132_v23 }
0x40f9   :  { %2882 = vst [vmem:[#allocation5 + $0x48] sm:$0xff] %v2851_v33  ;;  %v2499_v33 = vld [vmem:[#allocation3 + $0xd8] sm:$0xff] }
0x40fd   :  { %v2651_v60 = vpop.f32.mrf.mxu2 }
0x40fe   :  { %v2652_v47 = vadd.f32 %v4130_v5, %v2651_v60  ;;  %v378_v60 = vadd.f32 %v4031_v56, %v3627_v53 }
0x4100   :  { %v2852_v62 = vsel %vm2759_vm1, %v2652_v47, 0.0  ;;  %vm2770_vm1 = vcmp.lt.s32.totalorder %v2736_v4, %v4132_v23 }
0x4101   :  { %2883 = vst [vmem:[#allocation5 + $0x50] sm:$0xff] %v2852_v62 }
0x4105   :  { %v2654_v1 = vpop.f32.mrf.mxu2 }
0x4106   :  { %v2655_v2 = vadd.f32 %v4130_v5, %v2654_v1 }
0x4108   :  { %v2853_v6 = vsel %vm2760_vm2, %v2655_v2, 0.0 }
0x4109   :  { %2884 = vst [vmem:[#allocation5 + $0x58] sm:$0xff] %v2853_v6 }
0x410d   :  { %v2657_v8 = vpop.f32.mrf.mxu2 }
0x410e   :  { %v2658_v10 = vadd.f32 %v4130_v5, %v2657_v8 }
0x4110   :  { %v2854_v11 = vsel %vm2761_vm3, %v2658_v10, 0.0  ;;  %vm2772_vm3 = vcmp.lt.s32.totalorder %v2738_v26, %v4132_v23 }
0x4111   :  { %2885 = vst [vmem:[#allocation5 + $0x60] sm:$0xff] %v2854_v11 }
0x4115   :  { %v2660_v61 = vpop.f32.mrf.mxu2 }
0x4116   :  { %v2661_v14 = vadd.f32 %v4130_v5, %v2660_v61 }
0x4118   :  { %v2855_v15 = vsel %vm2762_vm4, %v2661_v14, 0.0  ;;  %vm2773_vm4 = vcmp.lt.s32.totalorder %v2739_v35, %v4132_v23 }
0x4119   :  { %2886 = vst [vmem:[#allocation5 + $0x68] sm:$0xff] %v2855_v15 }
0x411d   :  { %v2663_v21 = vpop.f32.mrf.mxu2 }
0x411e   :  { %v2664_v3 = vadd.f32 %v4130_v5, %v2663_v21 }
0x4120   :  { %v2856_v22 = vsel %vm2763_vm5, %v2664_v3, 0.0 }
0x4121   :  { %2887 = vst [vmem:[#allocation5 + $0x70] sm:$0xff] %v2856_v22 }
0x4125   :  { %v2666_v30 = vpop.f32.mrf.mxu2 }
0x4126   :  { %v2667_v48 = vadd.f32 %v4130_v5, %v2666_v30  ;;  %v2737_v30 = vadd.s32 176, %v4121_v50 }
0x4128   :  { %v2857_v25 = vsel %vm2764_vm6, %v2667_v48, 0.0  ;;  %vm2771_vm2 = vcmp.lt.s32.totalorder %v2737_v30, %v4132_v23  ;;  %v2744_v30 = vadd.s32 232, %v4121_v50 }
0x4129   :  { %2888 = vst [vmem:[#allocation5 + $0x78] sm:$0xff] %v2857_v25 }
0x4131   :  { %v2321_v38 = vpop.permute.xlu0 %2320 }
0x4132   :  { %v2323_v39 = vmul.f32 %v2321_v38, %v2315_v37 }
0x4134   :  { %2325 = vrot.lane.b32.xlu1 %v2323_v39, %s3401_s30 }
0x41a6   :  { %v2326_v16 = vpop.permute.xlu1 %2325 }
0x41a7   :  { %v4178_v17 = vadd.f32 %v2326_v16, %v2318_v40  ;;  %v2740_v40 = vadd.s32 200, %v4121_v50 }
0x41a9   :  { %3344 = vtanh.f32 %v4178_v17  ;;  %vm2774_vm5 = vcmp.lt.s32.totalorder %v2740_v40, %v4132_v23 }
0x41af   :  { %v3345_v32 = vpop.eup %3344 }
0x41b0   :  { %2331 = vrot.lane.b32.xlu2 %v3345_v32, %s3402_s10 }
0x420a   :  { %v2332_v41 = vpop.permute.xlu2 %2331 }
0x420b   :  { %v2334_v18 = vmul.f32 %v2332_v41, %v2315_v37 }
0x420d   :  { %2336 = vrot.lane.b32.xlu0 %v2334_v18, %s3401_s30 }
0x427f   :  { %v2337_v42 = vpop.permute.xlu0 %2336 }
0x4280   :  { %2339 = vst.msk [vmem:[#allocation3 + $0xe0] sm:$0xff] %vm421_vm10, %v2337_v42  ;;  %3042 = vmatmul.msk.f32.vlgmr.msrb.gmra.mxu3 %vm421_vm10, %v2337_v42  ;;  %v2741_v42 = vadd.s32 208, %v4121_v50 }
0x4282   :  { %vm2775_vm6 = vcmp.lt.s32.totalorder %v2741_v42, %v4132_v23 }
0x4287   :  { %v2500_v36 = vld [vmem:[#allocation3 + $0xe0] sm:$0xff] }
0x4288   :  { %3062 = vmatmul.msk.f32.vlgmr.msra.gmra.mxu3 %vm421_vm10, %v2488_v43 }
0x4290   :  { %3063 = vmatmul.msk.f32.gmra.mxu3 %vm421_vm10, %v2489_v28 }
0x4298   :  { %3064 = vmatmul.msk.f32.gmra.mxu3 %vm421_vm10, %v2490_v44 }
0x42a0   :  { %3065 = vmatmul.msk.f32.gmra.mxu3 %vm421_vm10, %v2491_v51 }
0x42a8   :  { %3066 = vmatmul.msk.f32.gmra.mxu3 %vm421_vm10, %v2492_v45 }
0x42b0   :  { %3067 = vmatmul.msk.f32.gmra.mxu3 %vm421_vm10, %v2493_v55  ;;  %v2742_v55 = vadd.s32 216, %v4121_v50 }
0x42b2   :  { %vm2776_vm7 = vcmp.lt.s32.totalorder %v2742_v55, %v4132_v23 }
0x42b8   :  { %3068 = vmatmul.msk.f32.gmra.mxu3 %vm421_vm10, %v2494_v57 }
0x42c0   :  { %3069 = vmatmul.msk.f32.gmra.mxu3 %vm421_vm10, %v2495_v58 }
0x42c8   :  { %3070 = vmatmul.msk.f32.gmra.mxu3 %vm421_vm10, %v2496_v59 }
0x42d0   :  { %3071 = vmatmul.msk.f32.gmra.mxu3 %vm421_vm10, %v2497_v27  ;;  %v2743_v27 = vadd.s32 224, %v4121_v50 }
0x42d2   :  { %vm2777_vm8 = vcmp.lt.s32.totalorder %v2743_v27, %v4132_v23 }
0x42d8   :  { %3072 = vmatmul.msk.f32.gmra.mxu3 %vm421_vm10, %v2498_v49 }
0x42e0   :  { %3073 = vmatmul.msk.f32.gmra.mxu3 %vm421_vm10, %v2499_v33 }
0x42e8   :  { %3074 = vmatmul.msk.f32.gmra.mxu3 %vm421_vm10, %v2500_v36 }
0x4303   :  { %v2360_v47 = vpop.f32.mrf.mxu3 }
0x4304   :  { %v2363_v62 = vadd.f32 %v2360_v47, %v378_v60 }
0x4306   :  { %3346 = vtanh.f32 %v2363_v62  ;;  %v3043_v16 = vmul.f32 -1.442695, %v2363_v62 }
0x4308   :  { %3348 = vpow2.f32 %v3043_v16 }
0x430b   :  { %v2669_v0 = vpop.f32.mrf.mxu3 }
0x430c   :  { %v3347_v1 = vpop.eup %3346  ;;  %v2670_v2 = vadd.f32 %v4130_v5, %v2669_v0 }
0x430d   :  { %2386 = vrot.lane.b32.xlu1 %v3347_v1, %s3402_s10 }
0x430e   :  { %v2858_v6 = vsel %vm2765_vm12, %v2670_v2, 0.0  ;;  %v3349_v28 = vpop.eup %3348 }
0x430f   :  { %2889 = vst [vmem:[#allocation5 + $0x80] sm:$0xff] %v2858_v6  ;;  %v2367_v45 = vadd.f32 1.0, %v3349_v28 }
0x4311   :  { %3350 = vrcp.f32 %v2367_v45  ;;  %v2379_v1 = vand.u32 2147483648, %v2367_v45  ;;  %vm2373_vm11 = vweird.f32 %v2367_v45  ;;  %v2377_v2 = vand.u32 2147483647, %v2367_v45 }
0x4313   :  { %v2672_v8 = vpop.f32.mrf.mxu3  ;;  %v2380_v7 = vor.u32 1.1754944e-38, %v2379_v1 }
0x4314   :  { %v2673_v53 = vadd.f32 %v4130_v5, %v2672_v8 }
0x4316   :  { %v2859_v56 = vsel %vm2766_vm13, %v2673_v53, 0.0  ;;  %vm2378_vm13 = vcmp.eq.f32.partialorder %v2377_v2, 8.507059e+37 }
0x4317   :  { %2890 = vst [vmem:[#allocation5 + $0x88] sm:$0xff] %v2859_v56  ;;  %v3351_v49 = vpop.eup %3350 }
0x4318   :  { %v2369_v60 = vmul.f32 %v3351_v49, %v2367_v45  ;;  %vm2374_vm9 = vweird.f32 %v3351_v49 }
0x4319   :  { %vm2375_vm12 = vmor %vm2373_vm11, %vm2374_vm9 }
0x431a   :  { %v2370_v62 = vsub.f32 1.0, %v2369_v60  ;;  %v2745_v60 = vadd.s32 240, %v4121_v50 }
0x431b   :  { %v2675_v10 = vpop.f32.mrf.mxu3 }
0x431c   :  { %v2676_v11 = vadd.f32 %v4130_v5, %v2675_v10  ;;  %v2371_v63 = vmul.f32 %v3351_v49, %v2370_v62 }
0x431e   :  { %v2860_v12 = vsel %vm2767_vm14, %v2676_v11, 0.0  ;;  %v2372_v0 = vadd.f32 %v3351_v49, %v2371_v63  ;;  %vm2749_vm14 = vcmp.lt.s32.totalorder %v4121_v50, %v4132_v23 }
0x431f   :  { %2891 = vst [vmem:[#allocation5 + $0x90] sm:$0xff] %v2860_v12 }
0x4320   :  { %v2376_v6 = vsel %vm2375_vm12, %v3351_v49, %v2372_v0 }
0x4321   :  { %v2381_v53 = vsel %vm2378_vm13, %v2380_v7, %v2376_v6 }
0x4322   :  { %v2384_v9 = vmul.f32 %v2381_v53, %v4178_v17  ;;  %v2473_v17 = vld [vmem:[#allocation3 + $0x8] sm:$0xff] }
0x4323   :  { %v2678_v61 = vpop.f32.mrf.mxu3 }
0x4324   :  { %v2679_v14 = vadd.f32 %v4130_v5, %v2678_v61 }
0x4326   :  { %v2861_v15 = vsel %vm2768_vm15, %v2679_v14, 0.0  ;;  %vm2778_vm15 = vcmp.lt.s32.totalorder %v2744_v30, %v4132_v23 }
0x4327   :  { %2892 = vst [vmem:[#allocation5 + $0x98] sm:$0xff] %v2861_v15  ;;  %v2472_v15 = vld [vmem:[#allocation3] sm:$0xff] }
0x432b   :  { %v2681_v20 = vpop.f32.mrf.mxu3 }
0x432c   :  { %v2682_v21 = vadd.f32 %v4130_v5, %v2681_v20  ;;  %v3372_v20 = vld [vmem:[%s4278_s4] ss:$0 sm:$0xff]  ;;  %s3403_s4 = smov [#allocation5]  }
0x432d   :  { %s2908_s17 = sshll.u32 %s3403_s4, 4  ;;  %s2909_s17 = int_to_ptr.vmem [resolvable:$true] %s2908_s17 }
0x432e   :  { %v2862_v3 = vsel %vm2769_vm0, %v2682_v21, 0.0  ;;  %v381_v21 = vadd.f32 %v3372_v20, %v3629_v54 }
0x432f   :  { %2893 = vst [vmem:[#allocation5 + $0xa0] sm:$0xff] %v2862_v3 }
0x4333   :  { %v2684_v22 = vpop.f32.mrf.mxu3 }
0x4334   :  { %v2685_v52 = vadd.f32 %v4130_v5, %v2684_v22 }
0x4336   :  { %v2863_v29 = vsel %vm2770_vm1, %v2685_v52, 0.0 }
0x4337   :  { %2894 = vst [vmem:[#allocation5 + $0xa8] sm:$0xff] %v2863_v29 }
0x433b   :  { %v2687_v48 = vpop.f32.mrf.mxu3 }
0x433c   :  { %v2688_v24 = vadd.f32 %v4130_v5, %v2687_v48 }
0x433e   :  { %v2864_v25 = vsel %vm2771_vm2, %v2688_v24, 0.0  ;;  %v2716_v24 = vadd.s32 8, %v4121_v50 }
0x433f   :  { %2895 = vst [vmem:[#allocation5 + $0xb0] sm:$0xff] %v2864_v25 }
0x4340   :  { %vm2750_vm0 = vcmp.lt.s32.totalorder %v2716_v24, %v4132_v23 }
0x4343   :  { %v2690_v46 = vpop.f32.mrf.mxu3 }
0x4344   :  { %v2691_v31 = vadd.f32 %v4130_v5, %v2690_v46 }
0x4346   :  { %v2865_v34 = vsel %vm2772_vm3, %v2691_v31, 0.0 }
0x4347   :  { %2896 = vst [vmem:[#allocation5 + $0xb8] sm:$0xff] %v2865_v34 }
0x434b   :  { %v2693_v38 = vpop.f32.mrf.mxu3 }
0x434c   :  { %v2694_v37 = vadd.f32 %v4130_v5, %v2693_v38 }
0x434e   :  { %v2866_v39 = vsel %vm2773_vm4, %v2694_v37, 0.0 }
0x434f   :  { %2897 = vst [vmem:[#allocation5 + $0xc0] sm:$0xff] %v2866_v39 }
0x4353   :  { %v2696_v32 = vpop.f32.mrf.mxu3 }
0x4354   :  { %v2697_v41 = vadd.f32 %v4130_v5, %v2696_v32 }
0x4356   :  { %v2867_v18 = vsel %vm2774_vm5, %v2697_v41, 0.0  ;;  %vm2779_vm5 = vcmp.lt.s32.totalorder %v2745_v60, %v4132_v23 }
0x4357   :  { %2898 = vst [vmem:[#allocation5 + $0xc8] sm:$0xff] %v2867_v18 }
0x435b   :  { %v2699_v43 = vpop.f32.mrf.mxu3 }
0x435c   :  { %v2700_v44 = vadd.f32 %v4130_v5, %v2699_v43 }
0x435e   :  { %v2868_v51 = vsel %vm2775_vm6, %v2700_v44, 0.0 }
0x435f   :  { %2899 = vst [vmem:[#allocation5 + $0xd0] sm:$0xff] %v2868_v51 }
0x4363   :  { %v2702_v57 = vpop.f32.mrf.mxu3 }
0x4364   :  { %v2703_v58 = vadd.f32 %v4130_v5, %v2702_v57 }
0x4366   :  { %v2869_v59 = vsel %vm2776_vm7, %v2703_v58, 0.0 }
0x4367   :  { %2900 = vst [vmem:[#allocation5 + $0xd8] sm:$0xff] %v2869_v59 }
0x436b   :  { %v2705_v33 = vpop.f32.mrf.mxu3 }
0x436c   :  { %v2706_v36 = vadd.f32 %v4130_v5, %v2705_v33 }
0x436e   :  { %v2870_v47 = vsel %vm2777_vm8, %v2706_v36, 0.0 }
0x436f   :  { %2901 = vst [vmem:[#allocation5 + $0xe0] sm:$0xff] %v2870_v47 }
0x437f   :  { %v2387_v8 = vpop.permute.xlu1 %2386 }
0x4380   :  { %v2389_v56 = vmul.f32 %v2387_v8, %v2381_v53 }
0x4382   :  { %2391 = vrot.lane.b32.xlu2 %v2389_v56, %s3401_s30 }
0x43dc   :  { %v2392_v10 = vpop.permute.xlu2 %2391 }
0x43dd   :  { %v2394_v11 = vadd.f32 %v2392_v10, %v2384_v9 }
0x43df   :  { %3352 = vtanh.f32 %v2394_v11 }
0x43e5   :  { %v3353_v12 = vpop.eup %3352 }
0x43e6   :  { %2397 = vrot.lane.b32.xlu0 %v3353_v12, %s3402_s10 }
0x4458   :  { %v2398_v13 = vpop.permute.xlu0 %2397 }
0x4459   :  { %v2400_v61 = vmul.f32 %v2398_v13, %v2381_v53 }
0x445b   :  { %2402 = vrot.lane.b32.xlu1 %v2400_v61, %s3401_s30 }
0x44cd   :  { %v2403_v14 = vpop.permute.xlu1 %2402 }
0x44ce   :  { %2405 = vst.msk [vmem:[#allocation3 + $0xe8] sm:$0xff] %vm421_vm10, %v2403_v14  ;;  %3044 = vmatmul.msk.f32.vlgmr.msrb.gmra.mxu1 %vm421_vm10, %v2403_v14 }
0x44d5   :  { %v2501_v19 = vld [vmem:[#allocation3 + $0xe8] sm:$0xff] }
0x44d6   :  { %3046 = vmatmul.msk.f32.vlgmr.msra.gmra.mxu1 %vm421_vm10, %v2472_v15  ;;  %3075 = vmatmul.msk.f32.gmra.mxu3 %vm421_vm10, %v2501_v19 }
0x44de   :  { %3047 = vmatmul.msk.f32.gmra.mxu1 %vm421_vm10, %v2473_v17 }
0x454b   :  { %v2426_v3 = vpop.f32.mrf.mxu1 }
0x454c   :  { %v2429_v4 = vadd.f32 %v2426_v3, %v381_v21 }
0x454e   :  { %3354 = vtanh.f32 %v2429_v4  ;;  %v3045_v35 = vmul.f32 -1.442695, %v2429_v4 }
0x4550   :  { %3356 = vpow2.f32 %v3045_v35 }
0x4553   :  { %v2621_v22 = vpop.f32.mrf.mxu1 }
0x4554   :  { %v3355_v52 = vpop.eup %3354  ;;  %v2622_v29 = vadd.f32 %v4130_v5, %v2621_v22 }
0x4555   :  { %2452 = vrot.lane.b32.xlu2 %v3355_v52, %s3402_s10 }
0x4556   :  { %v2842_v48 = vsel %vm2749_vm14, %v2622_v29, 0.0  ;;  %v3357_v38 = vpop.eup %3356 }
0x4557   :  { %2873 = vst [vmem:[#allocation5] sm:$0xff] %v2842_v48  ;;  %v2433_v37 = vadd.f32 1.0, %v3357_v38 }
0x4559   :  { %v2708_v25 = vpop.f32.mrf.mxu3  ;;  %3358 = vrcp.f32 %v2433_v37  ;;  %v2445_v18 = vand.u32 2147483648, %v2433_v37  ;;  %vm2439_vm2 = vweird.f32 %v2433_v37  ;;  %v2443_v42 = vand.u32 2147483647, %v2433_v37 }
0x455a   :  { %v2709_v54 = vadd.f32 %v4130_v5, %v2708_v25 }
0x455b   :  { %v2624_v26 = vpop.f32.mrf.mxu1  ;;  %v2446_v28 = vor.u32 1.1754944e-38, %v2445_v18  ;;  %vm2444_vm4 = vcmp.eq.f32.partialorder %v2443_v42, 8.507059e+37 }
0x455c   :  { %v2871_v46 = vsel %vm2778_vm15, %v2709_v54, 0.0  ;;  %v2625_v31 = vadd.f32 %v4130_v5, %v2624_v26 }
0x455d   :  { %2902 = vst [vmem:[#allocation5 + $0xe8] sm:$0xff] %v2871_v46 }
0x455e   :  { %v2843_v34 = vsel %vm2750_vm0, %v2625_v31, 0.0 }
0x455f   :  { %2874 = vst [vmem:[#allocation5 + $0x8] sm:$0xff] %v2843_v34  ;;  %v3359_v39 = vpop.eup %3358 }
0x4560   :  { %v2435_v40 = vmul.f32 %v3359_v39, %v2433_v37  ;;  %vm2440_vm1 = vweird.f32 %v3359_v39 }
0x4561   :  { %vm2441_vm3 = vmor %vm2439_vm2, %vm2440_vm1 }
0x4562   :  { %v2436_v16 = vsub.f32 1.0, %v2435_v40 }
0x4564   :  { %v2437_v32 = vmul.f32 %v3359_v39, %v2436_v16 }
0x4566   :  { %v2438_v41 = vadd.f32 %v3359_v39, %v2437_v32 }
0x4568   :  { %v2442_v43 = vsel %vm2441_vm3, %v3359_v39, %v2438_v41 }
0x4569   :  { %v2447_v51 = vsel %vm2444_vm4, %v2446_v28, %v2442_v43 }
0x456a   :  { %v2450_v55 = vmul.f32 %v2447_v51, %v2394_v11 }
0x45af   :  { %v2453_v44 = vpop.permute.xlu2 %2452 }
0x45b0   :  { %v2455_v45 = vmul.f32 %v2453_v44, %v2447_v51 }
0x45b2   :  { %2457 = vrot.lane.b32.xlu0 %v2455_v45, %s3401_s30 }
0x4624   :  { %v2458_v57 = vpop.permute.xlu0 %2457 }
0x4625   :  { %v2460_v58 = vadd.f32 %v2458_v57, %v2450_v55 }
0x4627   :  { %3360 = vtanh.f32 %v2460_v58 }
0x462d   :  { %v3361_v59 = vpop.eup %3360 }
0x462e   :  { %2463 = vrot.lane.b32.xlu1 %v3361_v59, %s3402_s10  ;;  %s3405_s10 = smov 8  }
0x46a0   :  { %v2464_v27 = vpop.permute.xlu1 %2463 }
0x46a1   :  { %v2466_v49 = vmul.f32 %v2464_v27, %v2447_v51 }
0x46a3   :  { %2468 = vrot.lane.b32.xlu2 %v2466_v49, %s3401_s30  ;;  %s3404_s30 = smov 128  }
0x46fd   :  { %v2469_v33 = vpop.permute.xlu2 %2468 }
0x46fe   :  { %2471 = vst.msk [vmem:[#allocation3 + $0xf0] sm:$0xff] %vm421_vm10, %v2469_v33 }
0x4705   :  { %v2502_v36 = vld [vmem:[#allocation3 + $0xf0] sm:$0xff] }
0x4706   :  { %3076 = vmatmul.msk.f32.gmra.mxu3 %vm421_vm10, %v2502_v36 }
0x4789   :  { %v2711_v47 = vpop.f32.mrf.mxu3 }
0x478a   :  { %v2712_v62 = vadd.f32 %v4130_v5, %v2711_v47 }
0x478c   :  { %v2872_v63 = vsel %vm2779_vm5, %v2712_v62, 0.0 }
0x478d   :  { %2903 = vst [vmem:[#allocation5 + $0xf0] sm:$0xff] %v2872_v63 }
0x478e   :  { %2916 = dma.vmem_to_hbm [thread:$0]  %s2909_s17, 3968, %s2911_s20, [#allocation6], %s3404_s30, %s3404_s30, %s3405_s10  }
0x478f   :  { %3397 = dma.done.wait [#allocation6], 3968  }
0x4790   :  { %3398 = vsyncadd [#allocation6], 4294963328 }
0x4791   :  { %2921 = vsyncpa [#allocation6], 1 }

</bundles_post_ra>
